<compile_context>
chip_gen: v7x
topology: tpu7x:2x2x1
jax: 0.10.0
libtpu: 0.0.40
codegen_flags: <defaults>
</compile_context>

<pallas_src>
import functools
import math

import jax
import jax.numpy as jnp
from jax.experimental import pallas as pl
from jax.experimental.pallas import tpu as pltpu

# ---------------- scaled-down SDXL configuration ----------------
BATCH = 2
IMG_SIZE = 32            # stands in for 1024
IMG_CH = 3
VAE_PATCH = 8            # SDXL VAE downscales 8x (32 -> 4 here)
LAT = IMG_SIZE // VAE_PATCH
LAT_CH = 4
VAE_SCALING = 0.13025
SEQ = 8                  # stands in for 77 tokens
ENC1_DIM = 32            # stands in for 768
ENC2_DIM = 32            # stands in for 1280
CTX_DIM = ENC1_DIM + ENC2_DIM   # stands in for 2048
CTX_P = 128              # lane-padded context dim
UNET_CH = 32             # stands in for 320
UNET_CH_P = 128          # lane-padded channel dim used for every UNet activation
TEMB_DIM = 64
TIME_SIN_DIM = 32
TIMEID_SIN_DIM = 8
N_STEPS = 1000
MIN_BETA = 0.00085
MAX_BETA = 0.012
CFG_RATIO = 0.1
VMEM_LIMIT_BYTES = 32 * 1024 * 1024


def _round_up(x, m):
    return (x + m - 1) // m * m


def _pick_tile(dim, cap, step, split=False):
    """Largest multiple of `step` <= cap that divides `dim` (dim is a multiple of step)."""
    cap = min(cap, dim)
    if split and dim >= 2 * step:
        cap = min(cap, max(step, (dim // 2 // step) * step))
    t = max(step, (cap // step) * step)
    while dim % t:
        t -= step
    return t


# ===================== tiled matmul kernel =====================

def _mm_kernel(a_ref, w_ref, b_ref, o_ref, acc_ref, *, act):
    k = pl.program_id(2)

    @pl.when(k == 0)
    def _():
        acc_ref[...] = jnp.zeros_like(acc_ref)

    acc_ref[...] += jnp.dot(a_ref[...], w_ref[...],
                            preferred_element_type=jnp.float32)

    @pl.when(k == pl.num_programs(2) - 1)
    def _():
        out = acc_ref[...] + b_ref[...]
        if act == "silu":
            out = out * jax.nn.sigmoid(out)
        o_ref[...] = out.astype(o_ref.dtype)


def pallas_matmul(a, w_p, b_p, act=None, out_dtype=jnp.bfloat16):
    """(M,K) @ (Kp,Np) + bias with fused SiLU epilogue.

    w_p: pre-padded bf16 weight (Kp, Np); b_p: pre-padded f32 bias (1, Np).
    Tiled grid with f32 VMEM accumulator; bf16 MXU inputs, f32 epilogue.
    """
    M, K = a.shape
    Kp, Np = w_p.shape
    Mp = _round_up(M, 8)
    a_p = a if a.dtype == jnp.bfloat16 else a.astype(jnp.bfloat16)
    if (Mp, Kp) != (M, K):
        a_p = jnp.zeros((Mp, Kp), jnp.bfloat16).at[:M, :K].set(a_p)

    tm = _pick_tile(Mp, 256, 8, split=True)     # >=2 M tiles -> both v7x TCs busy
    tk = _pick_tile(Kp, 256, 128)
    tn = _pick_tile(Np, 256, 128)
    grid = (Mp // tm, Np // tn, Kp // tk)

    out = pl.pallas_call(
        functools.partial(_mm_kernel, act=act),
        out_shape=jax.ShapeDtypeStruct((Mp, Np), out_dtype),
        grid=grid,
        in_specs=[pl.BlockSpec((tm, tk), lambda i, j, k: (i, k)),
                  pl.BlockSpec((tk, tn), lambda i, j, k: (k, j)),
                  pl.BlockSpec((1, tn), lambda i, j, k: (0, j))],
        out_specs=pl.BlockSpec((tm, tn), lambda i, j, k: (i, j)),
        scratch_shapes=[pltpu.VMEM((tm, tn), jnp.float32)],
        compiler_params=pltpu.CompilerParams(
            dimension_semantics=("parallel", "parallel", "arbitrary"),
            vmem_limit_bytes=VMEM_LIMIT_BYTES),
    )(a_p, w_p, b_p)
    return out[:M] if Mp != M else out


# ===================== 3x3 conv kernel (in-kernel im2col) =====================

def _conv3x3_kernel(*refs, H, W, act, add_emb, add_res):
    x_ref, w_ref, b_ref = refs[0], refs[1], refs[2]
    i = 3
    emb_ref = res_ref = None
    if add_emb:
        emb_ref = refs[i]; i += 1
    if add_res:
        res_ref = refs[i]; i += 1
    o_ref = refs[i]

    wp2 = W + 2
    n_acc = H * wp2 - 2                      # flat (haloed-grid) anchors covering all outputs
    cout = o_ref.shape[-1]

    acc = jnp.zeros((n_acc, cout), jnp.float32)
    for t in range(9):                       # 9 shifted-tap matmuls, all in VMEM
        dh, dw = divmod(t, 3)
        off = dh * wp2 + dw
        tap = x_ref[0, off:off + n_acc, :]   # (n_acc, Cin) bf16
        acc = acc + jnp.dot(tap, w_ref[t], preferred_element_type=jnp.float32)

    acc = acc + b_ref[...]                   # bias (1, Cout) broadcast
    if act == "silu":
        acc = acc * jax.nn.sigmoid(acc)
    if add_emb:
        acc = acc + emb_ref[0]               # per-batch time-embedding broadcast

    for h in range(H):                       # extract the H x W valid anchors
        row = acc[h * wp2: h * wp2 + W, :]
        if add_res:
            row = row + res_ref[0, h].astype(jnp.float32)
        o_ref[0, h] = row.astype(o_ref.dtype)


def pallas_conv3x3(x, w, b, act=None, emb=None, residual=None):
    """3x3 same conv on channel-padded NHWC bf16 input.

    x: (B,H,W,Cin_p) bf16; w: (9,Cin_p,Cout_p) bf16; b: (1,Cout_p) f32.
    Optional fused epilogues: `emb` (B,1,Cout_p) broadcast add after activation,
    `residual` (B,H,W,Cout_p) add before store.
    """
    B, H, W, cin = x.shape
    cout = w.shape[-1]
    # TODO(synk): at production sizes use an overlapping-row index_map / manual
    # halo DMA instead of this tiny XLA halo pad.
    xh = jnp.pad(x, ((0, 0), (1, 1), (1, 1), (0, 0)))
    xh = xh.reshape(B, (H + 2) * (W + 2), cin)

    inputs = [xh, w, b]
    in_specs = [
        pl.BlockSpec((1, (H + 2) * (W + 2), cin), lambda bi: (bi, 0, 0)),
        pl.BlockSpec((9, cin, cout), lambda bi: (0, 0, 0)),
        pl.BlockSpec((1, cout), lambda bi: (0, 0)),
    ]
    if emb is not None:
        inputs.append(emb)
        in_specs.append(pl.BlockSpec((1, 1, cout), lambda bi: (bi, 0, 0)))
    if residual is not None:
        inputs.append(residual)
        in_specs.append(pl.BlockSpec((1, H, W, cout), lambda bi: (bi, 0, 0, 0)))

    return pl.pallas_call(
        functools.partial(_conv3x3_kernel, H=H, W=W, act=act,
                          add_emb=emb is not None, add_res=residual is not None),
        out_shape=jax.ShapeDtypeStruct((B, H, W, cout), jnp.bfloat16),
        grid=(B,),
        in_specs=in_specs,
        out_specs=pl.BlockSpec((1, H, W, cout), lambda bi: (bi, 0, 0, 0)),
        compiler_params=pltpu.CompilerParams(
            dimension_semantics=("parallel",),
            vmem_limit_bytes=VMEM_LIMIT_BYTES),
    )(*inputs)


# ========== fully-fused cross-attention kernel (Q/K/V proj + softmax + out-proj + residual) ==========

def _attn_kernel(x_ref, wq_ref, bq_ref, ctx_ref, wkv_ref, bkv_ref, wo_ref, o_ref,
                 *, scale, d):
    x = x_ref[0]                                           # (Tq, D) bf16, also the residual
    q = jnp.dot(x, wq_ref[...], preferred_element_type=jnp.float32) + bq_ref[...]
    ctx = ctx_ref[0]                                       # (Tk, CTX_P) bf16
    # fused K|V weight: K cols [0:D], V cols [D:2D] (lane-tile-aligned static slices)
    k = jnp.dot(ctx, wkv_ref[:, :d], preferred_element_type=jnp.float32) + bkv_ref[:, :d]
    v = jnp.dot(ctx, wkv_ref[:, d:], preferred_element_type=jnp.float32) + bkv_ref[:, d:]
    s = jax.lax.dot_general(q.astype(jnp.bfloat16), k.astype(jnp.bfloat16),
                            (((1,), (1,)), ((), ())),
                            preferred_element_type=jnp.float32) * scale
    s = s - jnp.max(s, axis=-1, keepdims=True)
    p = jnp.exp(s)
    p = p * pl.reciprocal(jnp.sum(p, axis=-1, keepdims=True), approx=True)
    av = jnp.dot(p.astype(jnp.bfloat16), v.astype(jnp.bfloat16),
                 preferred_element_type=jnp.float32)
    out = jnp.dot(av.astype(jnp.bfloat16), wo_ref[...],
                  preferred_element_type=jnp.float32)
    out = out + x.astype(jnp.float32)                      # fused residual (h + attn)
    o_ref[0] = out.astype(o_ref.dtype)


def pallas_cross_attention(x, ctx, wq, bq, wkv, bkv, wo):
    """x:(B,Tq,D) tokens (also residual), ctx:(B,Tk,CTX_P) padded prompt embeds,
    wq:(D,D)+bq:(1,D), wkv:(CTX_P,2D)+bkv:(1,2D) fused K|V proj, wo:(D,D)."""
    B, Tq, D = x.shape
    Tk, ctx_dim = ctx.shape[1], ctx.shape[2]
    scale = 1.0 / math.sqrt(UNET_CH)          # real (unpadded) head dim
    return pl.pallas_call(
        functools.partial(_attn_kernel, scale=scale, d=D),
        out_shape=jax.ShapeDtypeStruct((B, Tq, D), jnp.bfloat16),
        grid=(B,),
        in_specs=[pl.BlockSpec((1, Tq, D), lambda b: (b, 0, 0)),
                  pl.BlockSpec((D, D), lambda b: (0, 0)),
                  pl.BlockSpec((1, D), lambda b: (0, 0)),
                  pl.BlockSpec((1, Tk, ctx_dim), lambda b: (b, 0, 0)),
                  pl.BlockSpec((ctx_dim, 2 * D), lambda b: (0, 0)),
                  pl.BlockSpec((1, 2 * D), lambda b: (0, 0)),
                  pl.BlockSpec((D, D), lambda b: (0, 0))],
        out_specs=pl.BlockSpec((1, Tq, D), lambda b: (b, 0, 0)),
        compiler_params=pltpu.CompilerParams(
            dimension_semantics=("parallel",),
            vmem_limit_bytes=VMEM_LIMIT_BYTES),
    )(x, wq, bq, ctx, wkv, bkv, wo)


# ===================== DDPM forward-noising kernel =====================

def _mix_kernel(scale_ref, x0_ref, eps_ref, o_ref):
    b = pl.program_id(0)
    sa = scale_ref[b, 0]
    sb = scale_ref[b, 1]
    o_ref[...] = (sa * x0_ref[...] + sb * eps_ref[...]).astype(o_ref.dtype)


def pallas_ddpm_mix(x0_p, eps_p, scales):
    """x_t = sqrt(a_bar)*x0 + sqrt(1-a_bar)*eps on channel-padded latents."""
    B, H, W, C = x0_p.shape
    return pl.pallas_call(
        _mix_kernel,
        out_shape=jax.ShapeDtypeStruct((B, H, W, C), jnp.bfloat16),
        grid=(B,),
        in_specs=[pl.BlockSpec(memory_space=pltpu.MemorySpace.SMEM),
                  pl.BlockSpec((1, H, W, C), lambda b: (b, 0, 0, 0)),
                  pl.BlockSpec((1, H, W, C), lambda b: (b, 0, 0, 0))],
        out_specs=pl.BlockSpec((1, H, W, C), lambda b: (b, 0, 0, 0)),
        compiler_params=pltpu.CompilerParams(dimension_semantics=("parallel",)),
    )(scales, x0_p, eps_p)


# ===================== tiled MSE reduction (channel-padded inputs) =====================

def _mse_kernel(p_ref, t_ref, o_ref, acc_ref):
    i = pl.program_id(0)

    @pl.when(i == 0)
    def _():
        acc_ref[0, 0] = 0.0

    d = p_ref[...].astype(jnp.float32) - t_ref[...].astype(jnp.float32)
    acc_ref[0, 0] = acc_ref[0, 0] + jnp.sum(d * d)

    @pl.when(i == pl.num_programs(0) - 1)
    def _():
        o_ref[0, 0] = acc_ref[0, 0]


def pallas_mse_padded(pred_p, target_p, n_real):
    """MSE over channel-padded (..., 128) buffers.

    Both buffers have exactly-zero padded lanes (zero weight/bias columns and
    zero-padded targets), so the padded lanes contribute nothing to the sum of
    squares; we divide by the real element count.  Inputs reshape to a
    lane-dense (rows, 128) slab with rows a multiple of 8 — no extra padding
    copies in XLA.
    """
    lanes = pred_p.shape[-1]
    rows = pred_p.size // lanes
    xp = pred_p.reshape(rows, lanes)
    yp = target_p.reshape(rows, lanes)
    tr = _pick_tile(rows, 256, 8)
    ssq = pl.pallas_call(
        _mse_kernel,
        out_shape=jax.ShapeDtypeStruct((1, 1), jnp.float32),
        grid=(rows // tr,),
        in_specs=[pl.BlockSpec((tr, lanes), lambda i: (i, 0)),
                  pl.BlockSpec((tr, lanes), lambda i: (i, 0))],
        out_specs=pl.BlockSpec(memory_space=pltpu.MemorySpace.SMEM),
        scratch_shapes=[pltpu.SMEM((1, 1), jnp.float32)],
        compiler_params=pltpu.CompilerParams(dimension_semantics=("arbitrary",)),
    )(xp, yp)
    return ssq[0, 0] / n_real


# ===================== glue (layout only) =====================

def patchify(x, p):
    # x: (B, H, W, C) -> (B*(H/p)*(W/p), p*p*C)
    B, H, W, C = x.shape
    x = x.reshape(B, H // p, p, W // p, p, C)
    x = x.transpose(0, 1, 3, 2, 4, 5)
    return x.reshape(B * (H // p) * (W // p), p * p * C)


def sinusoidal_embedding(t, dim):
    half = dim // 2
    freqs = jnp.exp(-jnp.log(10000.0) * jnp.arange(half, dtype=jnp.float32) / half)
    args = t.astype(jnp.float32)[:, None] * freqs[None, :]
    return jnp.concatenate([jnp.cos(args), jnp.sin(args)], axis=-1)


def _silu(x):
    return x * jax.nn.sigmoid(x)


# ===================== parameters (pre-padded once at init) =====================

def _dense(key, fin, fout):
    w = jax.random.normal(key, (fin, fout), jnp.float32) / math.sqrt(fin)
    return w, jnp.zeros((fout,), jnp.float32)


def _dense_pad(key, fin, fout, fin_p, fout_p):
    w = jax.random.normal(key, (fin, fout), jnp.float32) / math.sqrt(fin)
    w_p = jnp.zeros((fin_p, fout_p), jnp.float32).at[:fin, :fout].set(w)
    return w_p.astype(jnp.bfloat16), jnp.zeros((1, fout_p), jnp.float32)


def _conv_pad(key, cin, cout):
    w = jax.random.normal(key, (9, cin, cout), jnp.float32) / math.sqrt(9 * cin)
    w_p = jnp.zeros((9, UNET_CH_P, UNET_CH_P), jnp.float32).at[:, :cin, :cout].set(w)
    return w_p.astype(jnp.bfloat16), jnp.zeros((1, UNET_CH_P), jnp.float32)


def init_params(key):
    ks = jax.random.split(key, 20)
    p = {}
    # Pallas hot path: (8,128)-aligned bf16 weights / f32 biases, padded ONCE here.
    p["vae_proj"] = _dense_pad(ks[0], VAE_PATCH * VAE_PATCH * IMG_CH, 2 * LAT_CH,
                               _round_up(VAE_PATCH * VAE_PATCH * IMG_CH, 128), 128)
    p["conv_in"] = _conv_pad(ks[1], LAT_CH, UNET_CH)
    p["conv_r1"] = _conv_pad(ks[2], UNET_CH, UNET_CH)
    p["conv_r2"] = _conv_pad(ks[3], UNET_CH, UNET_CH)
    p["conv_out"] = _conv_pad(ks[4], UNET_CH, LAT_CH)
    p["attn_q"] = _dense_pad(ks[5], UNET_CH, UNET_CH, UNET_CH_P, UNET_CH_P)
    # fused K|V projection: K cols [0:UNET_CH], V cols [UNET_CH_P:UNET_CH_P+UNET_CH]
    wk = jax.random.normal(ks[6], (CTX_DIM, UNET_CH), jnp.float32) / math.sqrt(CTX_DIM)
    wv = jax.random.normal(ks[7], (CTX_DIM, UNET_CH), jnp.float32) / math.sqrt(CTX_DIM)
    wkv = (jnp.zeros((CTX_P, 2 * UNET_CH_P), jnp.float32)
           .at[:CTX_DIM, :UNET_CH].set(wk)
           .at[:CTX_DIM, UNET_CH_P:UNET_CH_P + UNET_CH].set(wv))
    p["attn_kv"] = (wkv.astype(jnp.bfloat16), jnp.zeros((1, 2 * UNET_CH_P), jnp.float32))
    wo = jax.random.normal(ks[8], (UNET_CH, UNET_CH), jnp.float32) / math.sqrt(UNET_CH)
    p["attn_o"] = (jnp.zeros((UNET_CH_P, UNET_CH_P), jnp.float32)
                   .at[:UNET_CH, :UNET_CH].set(wo)).astype(jnp.bfloat16)
    # Tiny launch-bound MLPs stay in plain XLA.
    p["enc1"] = _dense(ks[9], ENC1_DIM, ENC1_DIM)
    p["enc2"] = _dense(ks[10], ENC2_DIM, ENC2_DIM)
    p["text_proj2"] = _dense(ks[11], ENC2_DIM, ENC2_DIM)
    p["time_mlp1"] = _dense(ks[12], TIME_SIN_DIM, TEMB_DIM)
    p["time_mlp2"] = _dense(ks[13], TEMB_DIM, TEMB_DIM)
    p["add_mlp1"] = _dense(ks[14], ENC2_DIM + 6 * TIMEID_SIN_DIM, TEMB_DIM)
    p["add_mlp2"] = _dense(ks[15], TEMB_DIM, TEMB_DIM)
    p["temb_proj"] = _dense(ks[16], TEMB_DIM, UNET_CH)
    return p


# ===================== model =====================

def tiny_unet(params, x_p, t, prompt_embeds, add_text_embeds, add_time_ids):
    # TODO(synk): shape-faithful miniature of UNet2DConditionModel (1 res block +
    # 1 cross-attention, GroupNorm omitted), not the pretrained SDXL UNet.
    B, H, W, _ = x_p.shape

    # --- time / added-cond embeddings: tiny matmuls, left to XLA ---
    temb = sinusoidal_embedding(t.astype(jnp.float32), TIME_SIN_DIM)
    temb = _silu(temb @ params["time_mlp1"][0] + params["time_mlp1"][1])
    temb = temb @ params["time_mlp2"][0] + params["time_mlp2"][1]
    tid = sinusoidal_embedding(add_time_ids.reshape(-1), TIMEID_SIN_DIM).reshape(B, -1)
    aug = jnp.concatenate([add_text_embeds, tid], axis=-1)
    aug = _silu(aug @ params["add_mlp1"][0] + params["add_mlp1"][1])
    aug = aug @ params["add_mlp2"][0] + params["add_mlp2"][1]
    emb = temb + aug                                                   # (B, TEMB_DIM)
    emb_b = _silu(emb @ params["temb_proj"][0] + params["temb_proj"][1])   # (B, UNET_CH)
    emb_b = jnp.zeros((B, 1, UNET_CH_P), jnp.float32).at[:, 0, :UNET_CH].set(emb_b)

    # --- conv_in ---
    h = pallas_conv3x3(x_p, *params["conv_in"])                        # (B,H,W,128) bf16

    # --- res block: SiLU + time-embedding add fused into conv_r1, residual fused into conv_r2 ---
    r = pallas_conv3x3(h, *params["conv_r1"], act="silu", emb=emb_b)
    h = pallas_conv3x3(r, *params["conv_r2"], residual=h)

    # --- cross-attention: single fused kernel (Q/K|V proj + softmax + out-proj + residual) ---
    ctx_p = jnp.zeros((B, SEQ, CTX_P), jnp.bfloat16).at[:, :, :CTX_DIM].set(
        prompt_embeds.astype(jnp.bfloat16))
    h_tok = h.reshape(B, H * W, UNET_CH_P)
    h_tok = pallas_cross_attention(h_tok, ctx_p,
                                   params["attn_q"][0], params["attn_q"][1],
                                   params["attn_kv"][0], params["attn_kv"][1],
                                   params["attn_o"])
    h = h_tok.reshape(B, H, W, UNET_CH_P)

    # --- conv_out (lane-padded output; real eps prediction lives in channels [:LAT_CH]) ---
    return pallas_conv3x3(h, *params["conv_out"])


def sdxl_forward(params, pixel_values_nchw, key):
    kvae, kdrop, kt, keps = jax.random.split(key, 4)
    B = pixel_values_nchw.shape[0]

    # ---- VAE encode: patch conv -> (mean, logvar) -> reparameterized sample ----
    x = jnp.transpose(pixel_values_nchw, (0, 2, 3, 1))                 # NCHW -> NHWC
    moments = pallas_matmul(patchify(x, VAE_PATCH), *params["vae_proj"],
                            out_dtype=jnp.float32)
    moments = moments[:, :2 * LAT_CH].reshape(B, LAT, LAT, 2 * LAT_CH)
    mean, logvar = moments[..., :LAT_CH], moments[..., LAT_CH:]
    noise = jax.random.normal(kvae, mean.shape, jnp.float32)
    latent = (mean + jnp.exp(0.5 * logvar) * noise) * VAE_SCALING

    # ---- encode_prompt: two tiny CLIP text-encoder stand-ins (XLA: launch-bound) ----
    # TODO(synk): real pipeline tokenizes strings and runs pretrained CLIP encoders;
    # deterministic token embeddings stand in for tokenized prompts here.
    ktok1, ktok2 = jax.random.split(jax.random.PRNGKey(42), 2)
    tok1 = jax.random.normal(ktok1, (B, SEQ, ENC1_DIM), jnp.float32)
    tok2 = jax.random.normal(ktok2, (B, SEQ, ENC2_DIM), jnp.float32)
    pe1 = tok1 @ params["enc1"][0] + params["enc1"][1]
    pe2 = tok2 @ params["enc2"][0] + params["enc2"][1]
    prompt_embeds = jnp.concatenate([pe1, pe2], axis=-1)               # (B, SEQ, CTX_DIM)
    add_text_embeds = pe2[:, -1, :] @ params["text_proj2"][0] + params["text_proj2"][1]
    add_time_ids = jnp.tile(
        jnp.array([IMG_SIZE, IMG_SIZE, 0, 0, IMG_SIZE, IMG_SIZE], jnp.float32)[None, :],
        (B, 1))

    # ---- classifier-free-guidance dropout ----
    drop = jax.random.uniform(kdrop, (B,)) < CFG_RATIO
    prompt_embeds = jnp.where(drop[:, None, None], 0.0, prompt_embeds)
    add_text_embeds = jnp.where(drop[:, None], 0.0, add_text_embeds)

    # ---- DDPM forward diffusion (scaled_linear betas) ----
    betas = jnp.linspace(MIN_BETA ** 0.5, MAX_BETA ** 0.5, N_STEPS, dtype=jnp.float32) ** 2
    alpha_bars = jnp.cumprod(1.0 - betas)
    t = jax.random.randint(kt, (B,), 0, N_STEPS)
    ab_t = alpha_bars[t]
    eps = jax.random.normal(keps, latent.shape, jnp.float32)
    lat_p = jnp.zeros((B, LAT, LAT, UNET_CH_P), jnp.float32).at[..., :LAT_CH].set(latent)
    eps_p = jnp.zeros((B, LAT, LAT, UNET_CH_P), jnp.float32).at[..., :LAT_CH].set(eps)
    scales = jnp.stack([jnp.sqrt(ab_t), jnp.sqrt(1.0 - ab_t)], axis=-1)   # (B, 2)
    noised_p = pallas_ddpm_mix(lat_p, eps_p, scales)                      # (B,LAT,LAT,128) bf16

    # ---- UNet prediction + MSE loss ----
    # conv_out's padded output channels are exactly zero (zero weight columns,
    # zero bias) and eps_p's padded channels are zero, so MSE over the padded
    # buffers (divided by the real element count) equals MSE over [:LAT_CH].
    eps_theta_p = tiny_unet(params, noised_p, t, prompt_embeds,
                            add_text_embeds, add_time_ids)
    return pallas_mse_padded(eps_theta_p, eps_p, B * LAT * LAT * LAT_CH)


if __name__ == "__main__":
    key = jax.random.PRNGKey(0)
    kpix, kparams, kfwd = jax.random.split(key, 3)
    # PyTorch-style NCHW input
    pixel_values = jax.random.normal(kpix, (BATCH, IMG_CH, IMG_SIZE, IMG_SIZE), jnp.float32)
    params = init_params(kparams)
    loss = jax.jit(sdxl_forward)(params, pixel_values, kfwd)
    loss = jax.block_until_ready(loss)
    assert jnp.isfinite(loss), "loss is not finite"
    print("KERNEL_OK")
</pallas_src>

<mosaic_0001>
module attributes {stable_mosaic.version = 11 : i64} {
  func.func @_mm_kernel(%arg0: i32, %arg1: i32, %arg2: i32, %arg3: memref<16x256xbf16, #tpu.memory_space<vmem>>, %arg4: memref<256x128xbf16, #tpu.memory_space<vmem>>, %arg5: memref<1x128xf32, #tpu.memory_space<vmem>>, %arg6: memref<16x128xf32, #tpu.memory_space<vmem>>, %arg7: memref<16x128xf32, #tpu.memory_space<vmem>>) attributes {dimension_semantics = [#tpu.dimension_semantics<parallel>, #tpu.dimension_semantics<parallel>, #tpu.dimension_semantics<arbitrary>], iteration_bounds = array<i64: 2, 1, 1>, scalar_prefetch = 0 : i64, scratch_operands = 1 : i64, tpu.core_type = #tpu.core_type<tc>, window_params = [{transform_indices = @transform_0, window_bounds = array<i64: 16, 256>}, {transform_indices = @transform_1, window_bounds = array<i64: 256, 128>}, {transform_indices = @transform_2, window_bounds = array<i64: 1, 128>}, {transform_indices = @transform_3, window_bounds = array<i64: 16, 128>}]} {
    %c0_i32 = arith.constant 0 : i32
    %0 = arith.cmpi eq, %arg2, %c0_i32 : i32
    %1 = arith.extui %0 : i1 to i32
    %c0_i32_0 = arith.constant 0 : i32
    %2 = arith.cmpi ne, %1, %c0_i32_0 : i32
    scf.if %2 {
      %cst_10 = arith.constant 0.000000e+00 : f32
      %12 = vector.broadcast %cst_10 : f32 to vector<16x128xf32>
      %c0_11 = arith.constant 0 : index
      %c0_12 = arith.constant 0 : index
      %13 = vector.load %arg7[%c0_11, %c0_12] : memref<16x128xf32, #tpu.memory_space<vmem>>, vector<16x128xf32>
      tpu.vector_store %arg7[%c0_11, %c0_12], %12 {strides = array<i32>} : memref<16x128xf32, #tpu.memory_space<vmem>>, vector<16x128xf32>,
    } else {
    }
    %c0 = arith.constant 0 : index
    %c0_1 = arith.constant 0 : index
    %3 = vector.load %arg7[%c0, %c0_1] : memref<16x128xf32, #tpu.memory_space<vmem>>, vector<16x128xf32>
    %c0_2 = arith.constant 0 : index
    %c0_3 = arith.constant 0 : index
    %4 = vector.load %arg3[%c0_2, %c0_3] : memref<16x256xbf16, #tpu.memory_space<vmem>>, vector<16x256xbf16>
    %c0_4 = arith.constant 0 : index
    %c0_5 = arith.constant 0 : index
    %5 = vector.load %arg4[%c0_4, %c0_5] : memref<256x128xbf16, #tpu.memory_space<vmem>>, vector<256x128xbf16>
    %cst = arith.constant dense<0.000000e+00> : vector<16x128xf32>
    %6 = tpu.matmul %4, %5, %cst {dimension_numbers = #tpu.dot_dimension_numbers<[1], [0], [0], [1], [0, 0, 1, 1], [], []>} : vector<16x256xbf16>, vector<256x128xbf16>, vector<16x128xf32> -> vector<16x128xf32>
    %7 = arith.addf %3, %6 : vector<16x128xf32>
    %c0_6 = arith.constant 0 : index
    %c0_7 = arith.constant 0 : index
    %8 = vector.load %arg7[%c0_6, %c0_7] : memref<16x128xf32, #tpu.memory_space<vmem>>, vector<16x128xf32>
    tpu.vector_store %arg7[%c0_6, %c0_7], %7 {strides = array<i32>} : memref<16x128xf32, #tpu.memory_space<vmem>>, vector<16x128xf32>,
    %c0_i32_8 = arith.constant 0 : i32
    %9 = arith.cmpi eq, %arg2, %c0_i32_8 : i32
    %10 = arith.extui %9 : i1 to i32
    %c0_i32_9 = arith.constant 0 : i32
    %11 = arith.cmpi ne, %10, %c0_i32_9 : i32
    scf.if %11 {
      %c0_10 = arith.constant 0 : index
      %c0_11 = arith.constant 0 : index
      %12 = vector.load %arg7[%c0_10, %c0_11] : memref<16x128xf32, #tpu.memory_space<vmem>>, vector<16x128xf32>
      %c0_12 = arith.constant 0 : index
      %c0_13 = arith.constant 0 : index
      %13 = vector.load %arg5[%c0_12, %c0_13] : memref<1x128xf32, #tpu.memory_space<vmem>>, vector<1x128xf32>
      %14 = vector.broadcast %13 : vector<1x128xf32> to vector<16x128xf32>
      %15 = arith.addf %12, %14 : vector<16x128xf32>
      %c0_14 = arith.constant 0 : index
      %c0_15 = arith.constant 0 : index
      %16 = vector.load %arg6[%c0_14, %c0_15] : memref<16x128xf32, #tpu.memory_space<vmem>>, vector<16x128xf32>
      tpu.vector_store %arg6[%c0_14, %c0_15], %15 {strides = array<i32>} : memref<16x128xf32, #tpu.memory_space<vmem>>, vector<16x128xf32>,
    } else {
    }
    return
  }
  func.func @transform_0(%arg0: i32, %arg1: i32, %arg2: i32) -> (i32, i32) {
    %c0_i32 = arith.constant 0 : i32
    return %arg0, %arg2 : i32, i32
  }
  func.func @transform_1(%arg0: i32, %arg1: i32, %arg2: i32) -> (i32, i32) {
    %c0_i32 = arith.constant 0 : i32
    return %arg2, %arg1 : i32, i32
  }
  func.func @transform_2(%arg0: i32, %arg1: i32, %arg2: i32) -> (i32, i32) {
    %c0_i32 = arith.constant 0 : i32
    %c0_i32_0 = arith.constant 0 : i32
    return %c0_i32, %arg1 : i32, i32
  }
  func.func @transform_3(%arg0: i32, %arg1: i32, %arg2: i32) -> (i32, i32) {
    %c0_i32 = arith.constant 0 : i32
    return %arg0, %arg1 : i32, i32
  }
}

module attributes {stable_mosaic.version = 11 : i64} {
  func.func @_mix_kernel(%arg0: i32, %arg1: memref<2x2xf32, #tpu.memory_space<smem>>, %arg2: memref<1x4x4x128xf32, #tpu.memory_space<vmem>>, %arg3: memref<1x4x4x128xf32, #tpu.memory_space<vmem>>, %arg4: memref<1x4x4x128xbf16, #tpu.memory_space<vmem>>) attributes {dimension_semantics = [#tpu.dimension_semantics<parallel>], iteration_bounds = array<i64: 2>, scalar_prefetch = 0 : i64, scratch_operands = 0 : i64, tpu.core_type = #tpu.core_type<tc>, window_params = [{transform_indices = @transform_0, window_bounds = array<i64: 2, 2>}, {transform_indices = @transform_1, window_bounds = array<i64: 1, 4, 4, 128>}, {transform_indices = @transform_2, window_bounds = array<i64: 1, 4, 4, 128>}, {transform_indices = @transform_3, window_bounds = array<i64: 1, 4, 4, 128>}]} {
    %0 = arith.index_cast %arg0 : i32 to index
    %c0 = arith.constant 0 : index
    %1 = memref.load %arg1[%0, %c0] : memref<2x2xf32, #tpu.memory_space<smem>>
    %2 = arith.index_cast %arg0 : i32 to index
    %c1 = arith.constant 1 : index
    %3 = memref.load %arg1[%2, %c1] : memref<2x2xf32, #tpu.memory_space<smem>>
    %c0_0 = arith.constant 0 : index
    %c0_1 = arith.constant 0 : index
    %c0_2 = arith.constant 0 : index
    %c0_3 = arith.constant 0 : index
    %4 = vector.load %arg2[%c0_0, %c0_1, %c0_2, %c0_3] : memref<1x4x4x128xf32, #tpu.memory_space<vmem>>, vector<1x4x4x128xf32>
    %5 = vector.broadcast %1 : f32 to vector<1x4x4x128xf32>
    %6 = arith.mulf %5, %4 : vector<1x4x4x128xf32>
    %c0_4 = arith.constant 0 : index
    %c0_5 = arith.constant 0 : index
    %c0_6 = arith.constant 0 : index
    %c0_7 = arith.constant 0 : index
    %7 = vector.load %arg3[%c0_4, %c0_5, %c0_6, %c0_7] : memref<1x4x4x128xf32, #tpu.memory_space<vmem>>, vector<1x4x4x128xf32>
    %8 = vector.broadcast %3 : f32 to vector<1x4x4x128xf32>
    %9 = arith.mulf %8, %7 : vector<1x4x4x128xf32>
    %10 = arith.addf %6, %9 : vector<1x4x4x128xf32>
    %11 = arith.truncf %10 : vector<1x4x4x128xf32> to vector<1x4x4x128xbf16>
    %c0_8 = arith.constant 0 : index
    %c0_9 = arith.constant 0 : index
    %c0_10 = arith.constant 0 : index
    %c0_11 = arith.constant 0 : index
    %12 = vector.load %arg4[%c0_8, %c0_9, %c0_10, %c0_11] : memref<1x4x4x128xbf16, #tpu.memory_space<vmem>>, vector<1x4x4x128xbf16>
    tpu.vector_store %arg4[%c0_8, %c0_9, %c0_10, %c0_11], %11 {strides = array<i32>} : memref<1x4x4x128xbf16, #tpu.memory_space<vmem>>, vector<1x4x4x128xbf16>,
    return
  }
  func.func @transform_0(%arg0: i32) -> (i32, i32) {
    %c0_i32 = arith.constant 0 : i32
    %c0_i32_0 = arith.constant 0 : i32
    %c0_i32_1 = arith.constant 0 : i32
    return %c0_i32, %c0_i32_0 : i32, i32
  }
  func.func @transform_1(%arg0: i32) -> (i32, i32, i32, i32) {
    %c0_i32 = arith.constant 0 : i32
    %c0_i32_0 = arith.constant 0 : i32
    %c0_i32_1 = arith.constant 0 : i32
    %c0_i32_2 = arith.constant 0 : i32
    return %arg0, %c0_i32, %c0_i32_0, %c0_i32_1 : i32, i32, i32, i32
  }
  func.func @transform_2(%arg0: i32) -> (i32, i32, i32, i32) {
    %c0_i32 = arith.constant 0 : i32
    %c0_i32_0 = arith.constant 0 : i32
    %c0_i32_1 = arith.constant 0 : i32
    %c0_i32_2 = arith.constant 0 : i32
    return %arg0, %c0_i32, %c0_i32_0, %c0_i32_1 : i32, i32, i32, i32
  }
  func.func @transform_3(%arg0: i32) -> (i32, i32, i32, i32) {
    %c0_i32 = arith.constant 0 : i32
    %c0_i32_0 = arith.constant 0 : i32
    %c0_i32_1 = arith.constant 0 : i32
    %c0_i32_2 = arith.constant 0 : i32
    return %arg0, %c0_i32, %c0_i32_0, %c0_i32_1 : i32, i32, i32, i32
  }
}

module attributes {stable_mosaic.version = 11 : i64} {
  func.func @_conv3x3_kernel(%arg0: i32, %arg1: memref<1x36x128xbf16, #tpu.memory_space<vmem>>, %arg2: memref<9x128x128xbf16, #tpu.memory_space<vmem>>, %arg3: memref<1x128xf32, #tpu.memory_space<vmem>>, %arg4: memref<1x4x4x128xbf16, #tpu.memory_space<vmem>>) attributes {dimension_semantics = [#tpu.dimension_semantics<parallel>], iteration_bounds = array<i64: 2>, scalar_prefetch = 0 : i64, scratch_operands = 0 : i64, tpu.core_type = #tpu.core_type<tc>, window_params = [{transform_indices = @transform_0, window_bounds = array<i64: 1, 36, 128>}, {pipeline_mode = #tpu.pipeline_mode<synchronous>, transform_indices = @transform_1, window_bounds = array<i64: 9, 128, 128>}, {pipeline_mode = #tpu.pipeline_mode<synchronous>, transform_indices = @transform_2, window_bounds = array<i64: 1, 128>}, {transform_indices = @transform_3, window_bounds = array<i64: 1, 4, 4, 128>}]} {
    %cst = arith.constant 0.000000e+00 : f32
    %0 = vector.broadcast %cst : f32 to vector<22x128xf32>
    %c0 = arith.constant 0 : index
    %c0_0 = arith.constant 0 : index
    %c0_1 = arith.constant 0 : index
    %1 = vector.load %arg1[%c0, %c0_0, %c0_1] : memref<1x36x128xbf16, #tpu.memory_space<vmem>>, vector<1x22x128xbf16>
    %2 = vector.shape_cast %1 : vector<1x22x128xbf16> to vector<22x128xbf16>
    %c0_2 = arith.constant 0 : index
    %c0_3 = arith.constant 0 : index
    %c0_4 = arith.constant 0 : index
    %3 = vector.load %arg2[%c0_2, %c0_3, %c0_4] : memref<9x128x128xbf16, #tpu.memory_space<vmem>>, vector<1x128x128xbf16>
    %4 = vector.shape_cast %3 : vector<1x128x128xbf16> to vector<128x128xbf16>
    %cst_5 = arith.constant dense<0.000000e+00> : vector<22x128xf32>
    %5 = tpu.matmul %2, %4, %cst_5 {dimension_numbers = #tpu.dot_dimension_numbers<[1], [0], [0], [1], [0, 0, 1, 1], [], []>} : vector<22x128xbf16>, vector<128x128xbf16>, vector<22x128xf32> -> vector<22x128xf32>
    %6 = arith.addf %0, %5 : vector<22x128xf32>
    %c0_6 = arith.constant 0 : index
    %c1 = arith.constant 1 : index
    %c0_7 = arith.constant 0 : index
    %7 = vector.load %arg1[%c0_6, %c1, %c0_7] : memref<1x36x128xbf16, #tpu.memory_space<vmem>>, vector<1x22x128xbf16>
    %8 = vector.shape_cast %7 : vector<1x22x128xbf16> to vector<22x128xbf16>
    %c1_8 = arith.constant 1 : index
    %c0_9 = arith.constant 0 : index
    %c0_10 = arith.constant 0 : index
    %9 = vector.load %arg2[%c1_8, %c0_9, %c0_10] : memref<9x128x128xbf16, #tpu.memory_space<vmem>>, vector<1x128x128xbf16>
    %10 = vector.shape_cast %9 : vector<1x128x128xbf16> to vector<128x128xbf16>
    %cst_11 = arith.constant dense<0.000000e+00> : vector<22x128xf32>
    %11 = tpu.matmul %8, %10, %cst_11 {dimension_numbers = #tpu.dot_dimension_numbers<[1], [0], [0], [1], [0, 0, 1, 1], [], []>} : vector<22x128xbf16>, vector<128x128xbf16>, vector<22x128xf32> -> vector<22x128xf32>
    %12 = arith.addf %6, %11 : vector<22x128xf32>
    %c0_12 = arith.constant 0 : index
    %c2 = arith.constant 2 : index
    %c0_13 = arith.constant 0 : index
    %13 = vector.load %arg1[%c0_12, %c2, %c0_13] : memref<1x36x128xbf16, #tpu.memory_space<vmem>>, vector<1x22x128xbf16>
    %14 = vector.shape_cast %13 : vector<1x22x128xbf16> to vector<22x128xbf16>
    %c2_14 = arith.constant 2 : index
    %c0_15 = arith.constant 0 : index
    %c0_16 = arith.constant 0 : index
    %15 = vector.load %arg2[%c2_14, %c0_15, %c0_16] : memref<9x128x128xbf16, #tpu.memory_space<vmem>>, vector<1x128x128xbf16>
    %16 = vector.shape_cast %15 : vector<1x128x128xbf16> to vector<128x128xbf16>
    %cst_17 = arith.constant dense<0.000000e+00> : vector<22x128xf32>
    %17 = tpu.matmul %14, %16, %cst_17 {dimension_numbers = #tpu.dot_dimension_numbers<[1], [0], [0], [1], [0, 0, 1, 1], [], []>} : vector<22x128xbf16>, vector<128x128xbf16>, vector<22x128xf32> -> vector<22x128xf32>
    %18 = arith.addf %12, %17 : vector<22x128xf32>
    %c0_18 = arith.constant 0 : index
    %c6 = arith.constant 6 : index
    %c0_19 = arith.constant 0 : index
    %19 = vector.load %arg1[%c0_18, %c6, %c0_19] : memref<1x36x128xbf16, #tpu.memory_space<vmem>>, vector<1x22x128xbf16>
    %20 = vector.shape_cast %19 : vector<1x22x128xbf16> to vector<22x128xbf16>
    %c3 = arith.constant 3 : index
    %c0_20 = arith.constant 0 : index
    %c0_21 = arith.constant 0 : index
    %21 = vector.load %arg2[%c3, %c0_20, %c0_21] : memref<9x128x128xbf16, #tpu.memory_space<vmem>>, vector<1x128x128xbf16>
    %22 = vector.shape_cast %21 : vector<1x128x128xbf16> to vector<128x128xbf16>
    %cst_22 = arith.constant dense<0.000000e+00> : vector<22x128xf32>
    %23 = tpu.matmul %20, %22, %cst_22 {dimension_numbers = #tpu.dot_dimension_numbers<[1], [0], [0], [1], [0, 0, 1, 1], [], []>} : vector<22x128xbf16>, vector<128x128xbf16>, vector<22x128xf32> -> vector<22x128xf32>
    %24 = arith.addf %18, %23 : vector<22x128xf32>
    %c0_23 = arith.constant 0 : index
    %c7 = arith.constant 7 : index
    %c0_24 = arith.constant 0 : index
    %25 = vector.load %arg1[%c0_23, %c7, %c0_24] : memref<1x36x128xbf16, #tpu.memory_space<vmem>>, vector<1x22x128xbf16>
    %26 = vector.shape_cast %25 : vector<1x22x128xbf16> to vector<22x128xbf16>
    %c4 = arith.constant 4 : index
    %c0_25 = arith.constant 0 : index
    %c0_26 = arith.constant 0 : index
    %27 = vector.load %arg2[%c4, %c0_25, %c0_26] : memref<9x128x128xbf16, #tpu.memory_space<vmem>>, vector<1x128x128xbf16>
    %28 = vector.shape_cast %27 : vector<1x128x128xbf16> to vector<128x128xbf16>
    %cst_27 = arith.constant dense<0.000000e+00> : vector<22x128xf32>
    %29 = tpu.matmul %26, %28, %cst_27 {dimension_numbers = #tpu.dot_dimension_numbers<[1], [0], [0], [1], [0, 0, 1, 1], [], []>} : vector<22x128xbf16>, vector<128x128xbf16>, vector<22x128xf32> -> vector<22x128xf32>
    %30 = arith.addf %24, %29 : vector<22x128xf32>
    %c0_28 = arith.constant 0 : index
    %c8 = arith.constant 8 : index
    %c0_29 = arith.constant 0 : index
    %31 = vector.load %arg1[%c0_28, %c8, %c0_29] : memref<1x36x128xbf16, #tpu.memory_space<vmem>>, vector<1x22x128xbf16>
    %32 = vector.shape_cast %31 : vector<1x22x128xbf16> to vector<22x128xbf16>
    %c5 = arith.constant 5 : index
    %c0_30 = arith.constant 0 : index
    %c0_31 = arith.constant 0 : index
    %33 = vector.load %arg2[%c5, %c0_30, %c0_31] : memref<9x128x128xbf16, #tpu.memory_space<vmem>>, vector<1x128x128xbf16>
    %34 = vector.shape_cast %33 : vector<1x128x128xbf16> to vector<128x128xbf16>
    %cst_32 = arith.constant dense<0.000000e+00> : vector<22x128xf32>
    %35 = tpu.matmul %32, %34, %cst_32 {dimension_numbers = #tpu.dot_dimension_numbers<[1], [0], [0], [1], [0, 0, 1, 1], [], []>} : vector<22x128xbf16>, vector<128x128xbf16>, vector<22x128xf32> -> vector<22x128xf32>
    %36 = arith.addf %30, %35 : vector<22x128xf32>
    %c0_33 = arith.constant 0 : index
    %c12 = arith.constant 12 : index
    %c0_34 = arith.constant 0 : index
    %37 = vector.load %arg1[%c0_33, %c12, %c0_34] : memref<1x36x128xbf16, #tpu.memory_space<vmem>>, vector<1x22x128xbf16>
    %38 = vector.shape_cast %37 : vector<1x22x128xbf16> to vector<22x128xbf16>
    %c6_35 = arith.constant 6 : index
    %c0_36 = arith.constant 0 : index
    %c0_37 = arith.constant 0 : index
    %39 = vector.load %arg2[%c6_35, %c0_36, %c0_37] : memref<9x128x128xbf16, #tpu.memory_space<vmem>>, vector<1x128x128xbf16>
    %40 = vector.shape_cast %39 : vector<1x128x128xbf16> to vector<128x128xbf16>
    %cst_38 = arith.constant dense<0.000000e+00> : vector<22x128xf32>
    %41 = tpu.matmul %38, %40, %cst_38 {dimension_numbers = #tpu.dot_dimension_numbers<[1], [0], [0], [1], [0, 0, 1, 1], [], []>} : vector<22x128xbf16>, vector<128x128xbf16>, vector<22x128xf32> -> vector<22x128xf32>
    %42 = arith.addf %36, %41 : vector<22x128xf32>
    %c0_39 = arith.constant 0 : index
    %c13 = arith.constant 13 : index
    %c0_40 = arith.constant 0 : index
    %43 = vector.load %arg1[%c0_39, %c13, %c0_40] : memref<1x36x128xbf16, #tpu.memory_space<vmem>>, vector<1x22x128xbf16>
    %44 = vector.shape_cast %43 : vector<1x22x128xbf16> to vector<22x128xbf16>
    %c7_41 = arith.constant 7 : index
    %c0_42 = arith.constant 0 : index
    %c0_43 = arith.constant 0 : index
    %45 = vector.load %arg2[%c7_41, %c0_42, %c0_43] : memref<9x128x128xbf16, #tpu.memory_space<vmem>>, vector<1x128x128xbf16>
    %46 = vector.shape_cast %45 : vector<1x128x128xbf16> to vector<128x128xbf16>
    %cst_44 = arith.constant dense<0.000000e+00> : vector<22x128xf32>
    %47 = tpu.matmul %44, %46, %cst_44 {dimension_numbers = #tpu.dot_dimension_numbers<[1], [0], [0], [1], [0, 0, 1, 1], [], []>} : vector<22x128xbf16>, vector<128x128xbf16>, vector<22x128xf32> -> vector<22x128xf32>
    %48 = arith.addf %42, %47 : vector<22x128xf32>
    %c0_45 = arith.constant 0 : index
    %c14 = arith.constant 14 : index
    %c0_46 = arith.constant 0 : index
    %49 = vector.load %arg1[%c0_45, %c14, %c0_46] : memref<1x36x128xbf16, #tpu.memory_space<vmem>>, vector<1x22x128xbf16>
    %50 = vector.shape_cast %49 : vector<1x22x128xbf16> to vector<22x128xbf16>
    %c8_47 = arith.constant 8 : index
    %c0_48 = arith.constant 0 : index
    %c0_49 = arith.constant 0 : index
    %51 = vector.load %arg2[%c8_47, %c0_48, %c0_49] : memref<9x128x128xbf16, #tpu.memory_space<vmem>>, vector<1x128x128xbf16>
    %52 = vector.shape_cast %51 : vector<1x128x128xbf16> to vector<128x128xbf16>
    %cst_50 = arith.constant dense<0.000000e+00> : vector<22x128xf32>
    %53 = tpu.matmul %50, %52, %cst_50 {dimension_numbers = #tpu.dot_dimension_numbers<[1], [0], [0], [1], [0, 0, 1, 1], [], []>} : vector<22x128xbf16>, vector<128x128xbf16>, vector<22x128xf32> -> vector<22x128xf32>
    %54 = arith.addf %48, %53 : vector<22x128xf32>
    %c0_51 = arith.constant 0 : index
    %c0_52 = arith.constant 0 : index
    %55 = vector.load %arg3[%c0_51, %c0_52] : memref<1x128xf32, #tpu.memory_space<vmem>>, vector<1x128xf32>
    %56 = vector.broadcast %55 : vector<1x128xf32> to vector<22x128xf32>
    %57 = arith.addf %54, %56 : vector<22x128xf32>
    %58 = vector.extract_strided_slice %57 {offsets = [0, 0], sizes = [4, 128], strides = [1, 1]} : vector<22x128xf32> to vector<4x128xf32>
    %59 = arith.truncf %58 : vector<4x128xf32> to vector<4x128xbf16>
    %c0_53 = arith.constant 0 : index
    %c0_54 = arith.constant 0 : index
    %c0_55 = arith.constant 0 : index
    %c0_56 = arith.constant 0 : index
    %60 = vector.load %arg4[%c0_53, %c0_54, %c0_55, %c0_56] : memref<1x4x4x128xbf16, #tpu.memory_space<vmem>>, vector<1x1x4x128xbf16>
    %61 = vector.shape_cast %60 : vector<1x1x4x128xbf16> to vector<4x128xbf16>
    %62 = vector.shape_cast %59 : vector<4x128xbf16> to vector<1x1x4x128xbf16>
    tpu.vector_store %arg4[%c0_53, %c0_54, %c0_55, %c0_56], %62 {strides = array<i32>} : memref<1x4x4x128xbf16, #tpu.memory_space<vmem>>, vector<1x1x4x128xbf16>,
    %63 = vector.extract_strided_slice %57 {offsets = [6, 0], sizes = [4, 128], strides = [1, 1]} : vector<22x128xf32> to vector<4x128xf32>
    %64 = arith.truncf %63 : vector<4x128xf32> to vector<4x128xbf16>
    %c0_57 = arith.constant 0 : index
    %c1_58 = arith.constant 1 : index
    %c0_59 = arith.constant 0 : index
    %c0_60 = arith.constant 0 : index
    %65 = vector.load %arg4[%c0_57, %c1_58, %c0_59, %c0_60] : memref<1x4x4x128xbf16, #tpu.memory_space<vmem>>, vector<1x1x4x128xbf16>
    %66 = vector.shape_cast %65 : vector<1x1x4x128xbf16> to vector<4x128xbf16>
    %67 = vector.shape_cast %64 : vector<4x128xbf16> to vector<1x1x4x128xbf16>
    tpu.vector_store %arg4[%c0_57, %c1_58, %c0_59, %c0_60], %67 {strides = array<i32>} : memref<1x4x4x128xbf16, #tpu.memory_space<vmem>>, vector<1x1x4x128xbf16>,
    %68 = vector.extract_strided_slice %57 {offsets = [12, 0], sizes = [4, 128], strides = [1, 1]} : vector<22x128xf32> to vector<4x128xf32>
    %69 = arith.truncf %68 : vector<4x128xf32> to vector<4x128xbf16>
    %c0_61 = arith.constant 0 : index
    %c2_62 = arith.constant 2 : index
    %c0_63 = arith.constant 0 : index
    %c0_64 = arith.constant 0 : index
    %70 = vector.load %arg4[%c0_61, %c2_62, %c0_63, %c0_64] : memref<1x4x4x128xbf16, #tpu.memory_space<vmem>>, vector<1x1x4x128xbf16>
    %71 = vector.shape_cast %70 : vector<1x1x4x128xbf16> to vector<4x128xbf16>
    %72 = vector.shape_cast %69 : vector<4x128xbf16> to vector<1x1x4x128xbf16>
    tpu.vector_store %arg4[%c0_61, %c2_62, %c0_63, %c0_64], %72 {strides = array<i32>} : memref<1x4x4x128xbf16, #tpu.memory_space<vmem>>, vector<1x1x4x128xbf16>,
    %73 = vector.extract_strided_slice %57 {offsets = [18, 0], sizes = [4, 128], strides = [1, 1]} : vector<22x128xf32> to vector<4x128xf32>
    %74 = arith.truncf %73 : vector<4x128xf32> to vector<4x128xbf16>
    %c0_65 = arith.constant 0 : index
    %c3_66 = arith.constant 3 : index
    %c0_67 = arith.constant 0 : index
    %c0_68 = arith.constant 0 : index
    %75 = vector.load %arg4[%c0_65, %c3_66, %c0_67, %c0_68] : memref<1x4x4x128xbf16, #tpu.memory_space<vmem>>, vector<1x1x4x128xbf16>
    %76 = vector.shape_cast %75 : vector<1x1x4x128xbf16> to vector<4x128xbf16>
    %77 = vector.shape_cast %74 : vector<4x128xbf16> to vector<1x1x4x128xbf16>
    tpu.vector_store %arg4[%c0_65, %c3_66, %c0_67, %c0_68], %77 {strides = array<i32>} : memref<1x4x4x128xbf16, #tpu.memory_space<vmem>>, vector<1x1x4x128xbf16>,
    return
  }
  func.func @transform_0(%arg0: i32) -> (i32, i32, i32) {
    %c0_i32 = arith.constant 0 : i32
    %c0_i32_0 = arith.constant 0 : i32
    %c0_i32_1 = arith.constant 0 : i32
    return %arg0, %c0_i32, %c0_i32_0 : i32, i32, i32
  }
  func.func @transform_1(%arg0: i32) -> (i32, i32, i32) {
    %c0_i32 = arith.constant 0 : i32
    %c0_i32_0 = arith.constant 0 : i32
    %c0_i32_1 = arith.constant 0 : i32
    %c0_i32_2 = arith.constant 0 : i32
    return %c0_i32, %c0_i32_0, %c0_i32_1 : i32, i32, i32
  }
  func.func @transform_2(%arg0: i32) -> (i32, i32) {
    %c0_i32 = arith.constant 0 : i32
    %c0_i32_0 = arith.constant 0 : i32
    %c0_i32_1 = arith.constant 0 : i32
    return %c0_i32, %c0_i32_0 : i32, i32
  }
  func.func @transform_3(%arg0: i32) -> (i32, i32, i32, i32) {
    %c0_i32 = arith.constant 0 : i32
    %c0_i32_0 = arith.constant 0 : i32
    %c0_i32_1 = arith.constant 0 : i32
    %c0_i32_2 = arith.constant 0 : i32
    return %arg0, %c0_i32, %c0_i32_0, %c0_i32_1 : i32, i32, i32, i32
  }
}

module attributes {stable_mosaic.version = 11 : i64} {
  func.func @_conv3x3_kernel(%arg0: i32, %arg1: memref<1x36x128xbf16, #tpu.memory_space<vmem>>, %arg2: memref<9x128x128xbf16, #tpu.memory_space<vmem>>, %arg3: memref<1x128xf32, #tpu.memory_space<vmem>>, %arg4: memref<1x4x4x128xbf16, #tpu.memory_space<vmem>>, %arg5: memref<1x4x4x128xbf16, #tpu.memory_space<vmem>>) attributes {dimension_semantics = [#tpu.dimension_semantics<parallel>], iteration_bounds = array<i64: 2>, scalar_prefetch = 0 : i64, scratch_operands = 0 : i64, tpu.core_type = #tpu.core_type<tc>, window_params = [{transform_indices = @transform_0, window_bounds = array<i64: 1, 36, 128>}, {pipeline_mode = #tpu.pipeline_mode<synchronous>, transform_indices = @transform_1, window_bounds = array<i64: 9, 128, 128>}, {pipeline_mode = #tpu.pipeline_mode<synchronous>, transform_indices = @transform_2, window_bounds = array<i64: 1, 128>}, {transform_indices = @transform_3, window_bounds = array<i64: 1, 4, 4, 128>}, {transform_indices = @transform_4, window_bounds = array<i64: 1, 4, 4, 128>}]} {
    %cst = arith.constant 0.000000e+00 : f32
    %0 = vector.broadcast %cst : f32 to vector<22x128xf32>
    %c0 = arith.constant 0 : index
    %c0_0 = arith.constant 0 : index
    %c0_1 = arith.constant 0 : index
    %1 = vector.load %arg1[%c0, %c0_0, %c0_1] : memref<1x36x128xbf16, #tpu.memory_space<vmem>>, vector<1x22x128xbf16>
    %2 = vector.shape_cast %1 : vector<1x22x128xbf16> to vector<22x128xbf16>
    %c0_2 = arith.constant 0 : index
    %c0_3 = arith.constant 0 : index
    %c0_4 = arith.constant 0 : index
    %3 = vector.load %arg2[%c0_2, %c0_3, %c0_4] : memref<9x128x128xbf16, #tpu.memory_space<vmem>>, vector<1x128x128xbf16>
    %4 = vector.shape_cast %3 : vector<1x128x128xbf16> to vector<128x128xbf16>
    %cst_5 = arith.constant dense<0.000000e+00> : vector<22x128xf32>
    %5 = tpu.matmul %2, %4, %cst_5 {dimension_numbers = #tpu.dot_dimension_numbers<[1], [0], [0], [1], [0, 0, 1, 1], [], []>} : vector<22x128xbf16>, vector<128x128xbf16>, vector<22x128xf32> -> vector<22x128xf32>
    %6 = arith.addf %0, %5 : vector<22x128xf32>
    %c0_6 = arith.constant 0 : index
    %c1 = arith.constant 1 : index
    %c0_7 = arith.constant 0 : index
    %7 = vector.load %arg1[%c0_6, %c1, %c0_7] : memref<1x36x128xbf16, #tpu.memory_space<vmem>>, vector<1x22x128xbf16>
    %8 = vector.shape_cast %7 : vector<1x22x128xbf16> to vector<22x128xbf16>
    %c1_8 = arith.constant 1 : index
    %c0_9 = arith.constant 0 : index
    %c0_10 = arith.constant 0 : index
    %9 = vector.load %arg2[%c1_8, %c0_9, %c0_10] : memref<9x128x128xbf16, #tpu.memory_space<vmem>>, vector<1x128x128xbf16>
    %10 = vector.shape_cast %9 : vector<1x128x128xbf16> to vector<128x128xbf16>
    %cst_11 = arith.constant dense<0.000000e+00> : vector<22x128xf32>
    %11 = tpu.matmul %8, %10, %cst_11 {dimension_numbers = #tpu.dot_dimension_numbers<[1], [0], [0], [1], [0, 0, 1, 1], [], []>} : vector<22x128xbf16>, vector<128x128xbf16>, vector<22x128xf32> -> vector<22x128xf32>
    %12 = arith.addf %6, %11 : vector<22x128xf32>
    %c0_12 = arith.constant 0 : index
    %c2 = arith.constant 2 : index
    %c0_13 = arith.constant 0 : index
    %13 = vector.load %arg1[%c0_12, %c2, %c0_13] : memref<1x36x128xbf16, #tpu.memory_space<vmem>>, vector<1x22x128xbf16>
    %14 = vector.shape_cast %13 : vector<1x22x128xbf16> to vector<22x128xbf16>
    %c2_14 = arith.constant 2 : index
    %c0_15 = arith.constant 0 : index
    %c0_16 = arith.constant 0 : index
    %15 = vector.load %arg2[%c2_14, %c0_15, %c0_16] : memref<9x128x128xbf16, #tpu.memory_space<vmem>>, vector<1x128x128xbf16>
    %16 = vector.shape_cast %15 : vector<1x128x128xbf16> to vector<128x128xbf16>
    %cst_17 = arith.constant dense<0.000000e+00> : vector<22x128xf32>
    %17 = tpu.matmul %14, %16, %cst_17 {dimension_numbers = #tpu.dot_dimension_numbers<[1], [0], [0], [1], [0, 0, 1, 1], [], []>} : vector<22x128xbf16>, vector<128x128xbf16>, vector<22x128xf32> -> vector<22x128xf32>
    %18 = arith.addf %12, %17 : vector<22x128xf32>
    %c0_18 = arith.constant 0 : index
    %c6 = arith.constant 6 : index
    %c0_19 = arith.constant 0 : index
    %19 = vector.load %arg1[%c0_18, %c6, %c0_19] : memref<1x36x128xbf16, #tpu.memory_space<vmem>>, vector<1x22x128xbf16>
    %20 = vector.shape_cast %19 : vector<1x22x128xbf16> to vector<22x128xbf16>
    %c3 = arith.constant 3 : index
    %c0_20 = arith.constant 0 : index
    %c0_21 = arith.constant 0 : index
    %21 = vector.load %arg2[%c3, %c0_20, %c0_21] : memref<9x128x128xbf16, #tpu.memory_space<vmem>>, vector<1x128x128xbf16>
    %22 = vector.shape_cast %21 : vector<1x128x128xbf16> to vector<128x128xbf16>
    %cst_22 = arith.constant dense<0.000000e+00> : vector<22x128xf32>
    %23 = tpu.matmul %20, %22, %cst_22 {dimension_numbers = #tpu.dot_dimension_numbers<[1], [0], [0], [1], [0, 0, 1, 1], [], []>} : vector<22x128xbf16>, vector<128x128xbf16>, vector<22x128xf32> -> vector<22x128xf32>
    %24 = arith.addf %18, %23 : vector<22x128xf32>
    %c0_23 = arith.constant 0 : index
    %c7 = arith.constant 7 : index
    %c0_24 = arith.constant 0 : index
    %25 = vector.load %arg1[%c0_23, %c7, %c0_24] : memref<1x36x128xbf16, #tpu.memory_space<vmem>>, vector<1x22x128xbf16>
    %26 = vector.shape_cast %25 : vector<1x22x128xbf16> to vector<22x128xbf16>
    %c4 = arith.constant 4 : index
    %c0_25 = arith.constant 0 : index
    %c0_26 = arith.constant 0 : index
    %27 = vector.load %arg2[%c4, %c0_25, %c0_26] : memref<9x128x128xbf16, #tpu.memory_space<vmem>>, vector<1x128x128xbf16>
    %28 = vector.shape_cast %27 : vector<1x128x128xbf16> to vector<128x128xbf16>
    %cst_27 = arith.constant dense<0.000000e+00> : vector<22x128xf32>
    %29 = tpu.matmul %26, %28, %cst_27 {dimension_numbers = #tpu.dot_dimension_numbers<[1], [0], [0], [1], [0, 0, 1, 1], [], []>} : vector<22x128xbf16>, vector<128x128xbf16>, vector<22x128xf32> -> vector<22x128xf32>
    %30 = arith.addf %24, %29 : vector<22x128xf32>
    %c0_28 = arith.constant 0 : index
    %c8 = arith.constant 8 : index
    %c0_29 = arith.constant 0 : index
    %31 = vector.load %arg1[%c0_28, %c8, %c0_29] : memref<1x36x128xbf16, #tpu.memory_space<vmem>>, vector<1x22x128xbf16>
    %32 = vector.shape_cast %31 : vector<1x22x128xbf16> to vector<22x128xbf16>
    %c5 = arith.constant 5 : index
    %c0_30 = arith.constant 0 : index
    %c0_31 = arith.constant 0 : index
    %33 = vector.load %arg2[%c5, %c0_30, %c0_31] : memref<9x128x128xbf16, #tpu.memory_space<vmem>>, vector<1x128x128xbf16>
    %34 = vector.shape_cast %33 : vector<1x128x128xbf16> to vector<128x128xbf16>
    %cst_32 = arith.constant dense<0.000000e+00> : vector<22x128xf32>
    %35 = tpu.matmul %32, %34, %cst_32 {dimension_numbers = #tpu.dot_dimension_numbers<[1], [0], [0], [1], [0, 0, 1, 1], [], []>} : vector<22x128xbf16>, vector<128x128xbf16>, vector<22x128xf32> -> vector<22x128xf32>
    %36 = arith.addf %30, %35 : vector<22x128xf32>
    %c0_33 = arith.constant 0 : index
    %c12 = arith.constant 12 : index
    %c0_34 = arith.constant 0 : index
    %37 = vector.load %arg1[%c0_33, %c12, %c0_34] : memref<1x36x128xbf16, #tpu.memory_space<vmem>>, vector<1x22x128xbf16>
    %38 = vector.shape_cast %37 : vector<1x22x128xbf16> to vector<22x128xbf16>
    %c6_35 = arith.constant 6 : index
    %c0_36 = arith.constant 0 : index
    %c0_37 = arith.constant 0 : index
    %39 = vector.load %arg2[%c6_35, %c0_36, %c0_37] : memref<9x128x128xbf16, #tpu.memory_space<vmem>>, vector<1x128x128xbf16>
    %40 = vector.shape_cast %39 : vector<1x128x128xbf16> to vector<128x128xbf16>
    %cst_38 = arith.constant dense<0.000000e+00> : vector<22x128xf32>
    %41 = tpu.matmul %38, %40, %cst_38 {dimension_numbers = #tpu.dot_dimension_numbers<[1], [0], [0], [1], [0, 0, 1, 1], [], []>} : vector<22x128xbf16>, vector<128x128xbf16>, vector<22x128xf32> -> vector<22x128xf32>
    %42 = arith.addf %36, %41 : vector<22x128xf32>
    %c0_39 = arith.constant 0 : index
    %c13 = arith.constant 13 : index
    %c0_40 = arith.constant 0 : index
    %43 = vector.load %arg1[%c0_39, %c13, %c0_40] : memref<1x36x128xbf16, #tpu.memory_space<vmem>>, vector<1x22x128xbf16>
    %44 = vector.shape_cast %43 : vector<1x22x128xbf16> to vector<22x128xbf16>
    %c7_41 = arith.constant 7 : index
    %c0_42 = arith.constant 0 : index
    %c0_43 = arith.constant 0 : index
    %45 = vector.load %arg2[%c7_41, %c0_42, %c0_43] : memref<9x128x128xbf16, #tpu.memory_space<vmem>>, vector<1x128x128xbf16>
    %46 = vector.shape_cast %45 : vector<1x128x128xbf16> to vector<128x128xbf16>
    %cst_44 = arith.constant dense<0.000000e+00> : vector<22x128xf32>
    %47 = tpu.matmul %44, %46, %cst_44 {dimension_numbers = #tpu.dot_dimension_numbers<[1], [0], [0], [1], [0, 0, 1, 1], [], []>} : vector<22x128xbf16>, vector<128x128xbf16>, vector<22x128xf32> -> vector<22x128xf32>
    %48 = arith.addf %42, %47 : vector<22x128xf32>
    %c0_45 = arith.constant 0 : index
    %c14 = arith.constant 14 : index
    %c0_46 = arith.constant 0 : index
    %49 = vector.load %arg1[%c0_45, %c14, %c0_46] : memref<1x36x128xbf16, #tpu.memory_space<vmem>>, vector<1x22x128xbf16>
    %50 = vector.shape_cast %49 : vector<1x22x128xbf16> to vector<22x128xbf16>
    %c8_47 = arith.constant 8 : index
    %c0_48 = arith.constant 0 : index
    %c0_49 = arith.constant 0 : index
    %51 = vector.load %arg2[%c8_47, %c0_48, %c0_49] : memref<9x128x128xbf16, #tpu.memory_space<vmem>>, vector<1x128x128xbf16>
    %52 = vector.shape_cast %51 : vector<1x128x128xbf16> to vector<128x128xbf16>
    %cst_50 = arith.constant dense<0.000000e+00> : vector<22x128xf32>
    %53 = tpu.matmul %50, %52, %cst_50 {dimension_numbers = #tpu.dot_dimension_numbers<[1], [0], [0], [1], [0, 0, 1, 1], [], []>} : vector<22x128xbf16>, vector<128x128xbf16>, vector<22x128xf32> -> vector<22x128xf32>
    %54 = arith.addf %48, %53 : vector<22x128xf32>
    %c0_51 = arith.constant 0 : index
    %c0_52 = arith.constant 0 : index
    %55 = vector.load %arg3[%c0_51, %c0_52] : memref<1x128xf32, #tpu.memory_space<vmem>>, vector<1x128xf32>
    %56 = vector.broadcast %55 : vector<1x128xf32> to vector<22x128xf32>
    %57 = arith.addf %54, %56 : vector<22x128xf32>
    %58 = vector.extract_strided_slice %57 {offsets = [0, 0], sizes = [4, 128], strides = [1, 1]} : vector<22x128xf32> to vector<4x128xf32>
    %c0_53 = arith.constant 0 : index
    %c0_54 = arith.constant 0 : index
    %c0_55 = arith.constant 0 : index
    %c0_56 = arith.constant 0 : index
    %59 = vector.load %arg4[%c0_53, %c0_54, %c0_55, %c0_56] : memref<1x4x4x128xbf16, #tpu.memory_space<vmem>>, vector<1x1x4x128xbf16>
    %60 = vector.shape_cast %59 : vector<1x1x4x128xbf16> to vector<4x128xbf16>
    %61 = arith.extf %60 : vector<4x128xbf16> to vector<4x128xf32>
    %62 = arith.addf %58, %61 : vector<4x128xf32>
    %63 = arith.truncf %62 : vector<4x128xf32> to vector<4x128xbf16>
    %c0_57 = arith.constant 0 : index
    %c0_58 = arith.constant 0 : index
    %c0_59 = arith.constant 0 : index
    %c0_60 = arith.constant 0 : index
    %64 = vector.load %arg5[%c0_57, %c0_58, %c0_59, %c0_60] : memref<1x4x4x128xbf16, #tpu.memory_space<vmem>>, vector<1x1x4x128xbf16>
    %65 = vector.shape_cast %64 : vector<1x1x4x128xbf16> to vector<4x128xbf16>
    %66 = vector.shape_cast %63 : vector<4x128xbf16> to vector<1x1x4x128xbf16>
    tpu.vector_store %arg5[%c0_57, %c0_58, %c0_59, %c0_60], %66 {strides = array<i32>} : memref<1x4x4x128xbf16, #tpu.memory_space<vmem>>, vector<1x1x4x128xbf16>,
    %67 = vector.extract_strided_slice %57 {offsets = [6, 0], sizes = [4, 128], strides = [1, 1]} : vector<22x128xf32> to vector<4x128xf32>
    %c0_61 = arith.constant 0 : index
    %c1_62 = arith.constant 1 : index
    %c0_63 = arith.constant 0 : index
    %c0_64 = arith.constant 0 : index
    %68 = vector.load %arg4[%c0_61, %c1_62, %c0_63, %c0_64] : memref<1x4x4x128xbf16, #tpu.memory_space<vmem>>, vector<1x1x4x128xbf16>
    %69 = vector.shape_cast %68 : vector<1x1x4x128xbf16> to vector<4x128xbf16>
    %70 = arith.extf %69 : vector<4x128xbf16> to vector<4x128xf32>
    %71 = arith.addf %67, %70 : vector<4x128xf32>
    %72 = arith.truncf %71 : vector<4x128xf32> to vector<4x128xbf16>
    %c0_65 = arith.constant 0 : index
    %c1_66 = arith.constant 1 : index
    %c0_67 = arith.constant 0 : index
    %c0_68 = arith.constant 0 : index
    %73 = vector.load %arg5[%c0_65, %c1_66, %c0_67, %c0_68] : memref<1x4x4x128xbf16, #tpu.memory_space<vmem>>, vector<1x1x4x128xbf16>
    %74 = vector.shape_cast %73 : vector<1x1x4x128xbf16> to vector<4x128xbf16>
    %75 = vector.shape_cast %72 : vector<4x128xbf16> to vector<1x1x4x128xbf16>
    tpu.vector_store %arg5[%c0_65, %c1_66, %c0_67, %c0_68], %75 {strides = array<i32>} : memref<1x4x4x128xbf16, #tpu.memory_space<vmem>>, vector<1x1x4x128xbf16>,
    %76 = vector.extract_strided_slice %57 {offsets = [12, 0], sizes = [4, 128], strides = [1, 1]} : vector<22x128xf32> to vector<4x128xf32>
    %c0_69 = arith.constant 0 : index
    %c2_70 = arith.constant 2 : index
    %c0_71 = arith.constant 0 : index
    %c0_72 = arith.constant 0 : index
    %77 = vector.load %arg4[%c0_69, %c2_70, %c0_71, %c0_72] : memref<1x4x4x128xbf16, #tpu.memory_space<vmem>>, vector<1x1x4x128xbf16>
    %78 = vector.shape_cast %77 : vector<1x1x4x128xbf16> to vector<4x128xbf16>
    %79 = arith.extf %78 : vector<4x128xbf16> to vector<4x128xf32>
    %80 = arith.addf %76, %79 : vector<4x128xf32>
    %81 = arith.truncf %80 : vector<4x128xf32> to vector<4x128xbf16>
    %c0_73 = arith.constant 0 : index
    %c2_74 = arith.constant 2 : index
    %c0_75 = arith.constant 0 : index
    %c0_76 = arith.constant 0 : index
    %82 = vector.load %arg5[%c0_73, %c2_74, %c0_75, %c0_76] : memref<1x4x4x128xbf16, #tpu.memory_space<vmem>>, vector<1x1x4x128xbf16>
    %83 = vector.shape_cast %82 : vector<1x1x4x128xbf16> to vector<4x128xbf16>
    %84 = vector.shape_cast %81 : vector<4x128xbf16> to vector<1x1x4x128xbf16>
    tpu.vector_store %arg5[%c0_73, %c2_74, %c0_75, %c0_76], %84 {strides = array<i32>} : memref<1x4x4x128xbf16, #tpu.memory_space<vmem>>, vector<1x1x4x128xbf16>,
    %85 = vector.extract_strided_slice %57 {offsets = [18, 0], sizes = [4, 128], strides = [1, 1]} : vector<22x128xf32> to vector<4x128xf32>
    %c0_77 = arith.constant 0 : index
    %c3_78 = arith.constant 3 : index
    %c0_79 = arith.constant 0 : index
    %c0_80 = arith.constant 0 : index
    %86 = vector.load %arg4[%c0_77, %c3_78, %c0_79, %c0_80] : memref<1x4x4x128xbf16, #tpu.memory_space<vmem>>, vector<1x1x4x128xbf16>
    %87 = vector.shape_cast %86 : vector<1x1x4x128xbf16> to vector<4x128xbf16>
    %88 = arith.extf %87 : vector<4x128xbf16> to vector<4x128xf32>
    %89 = arith.addf %85, %88 : vector<4x128xf32>
    %90 = arith.truncf %89 : vector<4x128xf32> to vector<4x128xbf16>
    %c0_81 = arith.constant 0 : index
    %c3_82 = arith.constant 3 : index
    %c0_83 = arith.constant 0 : index
    %c0_84 = arith.constant 0 : index
    %91 = vector.load %arg5[%c0_81, %c3_82, %c0_83, %c0_84] : memref<1x4x4x128xbf16, #tpu.memory_space<vmem>>, vector<1x1x4x128xbf16>
    %92 = vector.shape_cast %91 : vector<1x1x4x128xbf16> to vector<4x128xbf16>
    %93 = vector.shape_cast %90 : vector<4x128xbf16> to vector<1x1x4x128xbf16>
    tpu.vector_store %arg5[%c0_81, %c3_82, %c0_83, %c0_84], %93 {strides = array<i32>} : memref<1x4x4x128xbf16, #tpu.memory_space<vmem>>, vector<1x1x4x128xbf16>,
    return
  }
  func.func @transform_0(%arg0: i32) -> (i32, i32, i32) {
    %c0_i32 = arith.constant 0 : i32
    %c0_i32_0 = arith.constant 0 : i32
    %c0_i32_1 = arith.constant 0 : i32
    return %arg0, %c0_i32, %c0_i32_0 : i32, i32, i32
  }
  func.func @transform_1(%arg0: i32) -> (i32, i32, i32) {
    %c0_i32 = arith.constant 0 : i32
    %c0_i32_0 = arith.constant 0 : i32
    %c0_i32_1 = arith.constant 0 : i32
    %c0_i32_2 = arith.constant 0 : i32
    return %c0_i32, %c0_i32_0, %c0_i32_1 : i32, i32, i32
  }
  func.func @transform_2(%arg0: i32) -> (i32, i32) {
    %c0_i32 = arith.constant 0 : i32
    %c0_i32_0 = arith.constant 0 : i32
    %c0_i32_1 = arith.constant 0 : i32
    return %c0_i32, %c0_i32_0 : i32, i32
  }
  func.func @transform_3(%arg0: i32) -> (i32, i32, i32, i32) {
    %c0_i32 = arith.constant 0 : i32
    %c0_i32_0 = arith.constant 0 : i32
    %c0_i32_1 = arith.constant 0 : i32
    %c0_i32_2 = arith.constant 0 : i32
    return %arg0, %c0_i32, %c0_i32_0, %c0_i32_1 : i32, i32, i32, i32
  }
  func.func @transform_4(%arg0: i32) -> (i32, i32, i32, i32) {
    %c0_i32 = arith.constant 0 : i32
    %c0_i32_0 = arith.constant 0 : i32
    %c0_i32_1 = arith.constant 0 : i32
    %c0_i32_2 = arith.constant 0 : i32
    return %arg0, %c0_i32, %c0_i32_0, %c0_i32_1 : i32, i32, i32, i32
  }
}

module attributes {stable_mosaic.version = 11 : i64} {
  func.func @_conv3x3_kernel(%arg0: i32, %arg1: memref<1x36x128xbf16, #tpu.memory_space<vmem>>, %arg2: memref<9x128x128xbf16, #tpu.memory_space<vmem>>, %arg3: memref<1x128xf32, #tpu.memory_space<vmem>>, %arg4: memref<1x1x128xf32, #tpu.memory_space<vmem>>, %arg5: memref<1x4x4x128xbf16, #tpu.memory_space<vmem>>) attributes {dimension_semantics = [#tpu.dimension_semantics<parallel>], iteration_bounds = array<i64: 2>, scalar_prefetch = 0 : i64, scratch_operands = 0 : i64, tpu.core_type = #tpu.core_type<tc>, window_params = [{transform_indices = @transform_0, window_bounds = array<i64: 1, 36, 128>}, {pipeline_mode = #tpu.pipeline_mode<synchronous>, transform_indices = @transform_1, window_bounds = array<i64: 9, 128, 128>}, {pipeline_mode = #tpu.pipeline_mode<synchronous>, transform_indices = @transform_2, window_bounds = array<i64: 1, 128>}, {transform_indices = @transform_3, window_bounds = array<i64: 1, 1, 128>}, {transform_indices = @transform_4, window_bounds = array<i64: 1, 4, 4, 128>}]} {
    %cst = arith.constant 0.000000e+00 : f32
    %0 = vector.broadcast %cst : f32 to vector<22x128xf32>
    %c0 = arith.constant 0 : index
    %c0_0 = arith.constant 0 : index
    %c0_1 = arith.constant 0 : index
    %1 = vector.load %arg1[%c0, %c0_0, %c0_1] : memref<1x36x128xbf16, #tpu.memory_space<vmem>>, vector<1x22x128xbf16>
    %2 = vector.shape_cast %1 : vector<1x22x128xbf16> to vector<22x128xbf16>
    %c0_2 = arith.constant 0 : index
    %c0_3 = arith.constant 0 : index
    %c0_4 = arith.constant 0 : index
    %3 = vector.load %arg2[%c0_2, %c0_3, %c0_4] : memref<9x128x128xbf16, #tpu.memory_space<vmem>>, vector<1x128x128xbf16>
    %4 = vector.shape_cast %3 : vector<1x128x128xbf16> to vector<128x128xbf16>
    %cst_5 = arith.constant dense<0.000000e+00> : vector<22x128xf32>
    %5 = tpu.matmul %2, %4, %cst_5 {dimension_numbers = #tpu.dot_dimension_numbers<[1], [0], [0], [1], [0, 0, 1, 1], [], []>} : vector<22x128xbf16>, vector<128x128xbf16>, vector<22x128xf32> -> vector<22x128xf32>
    %6 = arith.addf %0, %5 : vector<22x128xf32>
    %c0_6 = arith.constant 0 : index
    %c1 = arith.constant 1 : index
    %c0_7 = arith.constant 0 : index
    %7 = vector.load %arg1[%c0_6, %c1, %c0_7] : memref<1x36x128xbf16, #tpu.memory_space<vmem>>, vector<1x22x128xbf16>
    %8 = vector.shape_cast %7 : vector<1x22x128xbf16> to vector<22x128xbf16>
    %c1_8 = arith.constant 1 : index
    %c0_9 = arith.constant 0 : index
    %c0_10 = arith.constant 0 : index
    %9 = vector.load %arg2[%c1_8, %c0_9, %c0_10] : memref<9x128x128xbf16, #tpu.memory_space<vmem>>, vector<1x128x128xbf16>
    %10 = vector.shape_cast %9 : vector<1x128x128xbf16> to vector<128x128xbf16>
    %cst_11 = arith.constant dense<0.000000e+00> : vector<22x128xf32>
    %11 = tpu.matmul %8, %10, %cst_11 {dimension_numbers = #tpu.dot_dimension_numbers<[1], [0], [0], [1], [0, 0, 1, 1], [], []>} : vector<22x128xbf16>, vector<128x128xbf16>, vector<22x128xf32> -> vector<22x128xf32>
    %12 = arith.addf %6, %11 : vector<22x128xf32>
    %c0_12 = arith.constant 0 : index
    %c2 = arith.constant 2 : index
    %c0_13 = arith.constant 0 : index
    %13 = vector.load %arg1[%c0_12, %c2, %c0_13] : memref<1x36x128xbf16, #tpu.memory_space<vmem>>, vector<1x22x128xbf16>
    %14 = vector.shape_cast %13 : vector<1x22x128xbf16> to vector<22x128xbf16>
    %c2_14 = arith.constant 2 : index
    %c0_15 = arith.constant 0 : index
    %c0_16 = arith.constant 0 : index
    %15 = vector.load %arg2[%c2_14, %c0_15, %c0_16] : memref<9x128x128xbf16, #tpu.memory_space<vmem>>, vector<1x128x128xbf16>
    %16 = vector.shape_cast %15 : vector<1x128x128xbf16> to vector<128x128xbf16>
    %cst_17 = arith.constant dense<0.000000e+00> : vector<22x128xf32>
    %17 = tpu.matmul %14, %16, %cst_17 {dimension_numbers = #tpu.dot_dimension_numbers<[1], [0], [0], [1], [0, 0, 1, 1], [], []>} : vector<22x128xbf16>, vector<128x128xbf16>, vector<22x128xf32> -> vector<22x128xf32>
    %18 = arith.addf %12, %17 : vector<22x128xf32>
    %c0_18 = arith.constant 0 : index
    %c6 = arith.constant 6 : index
    %c0_19 = arith.constant 0 : index
    %19 = vector.load %arg1[%c0_18, %c6, %c0_19] : memref<1x36x128xbf16, #tpu.memory_space<vmem>>, vector<1x22x128xbf16>
    %20 = vector.shape_cast %19 : vector<1x22x128xbf16> to vector<22x128xbf16>
    %c3 = arith.constant 3 : index
    %c0_20 = arith.constant 0 : index
    %c0_21 = arith.constant 0 : index
    %21 = vector.load %arg2[%c3, %c0_20, %c0_21] : memref<9x128x128xbf16, #tpu.memory_space<vmem>>, vector<1x128x128xbf16>
    %22 = vector.shape_cast %21 : vector<1x128x128xbf16> to vector<128x128xbf16>
    %cst_22 = arith.constant dense<0.000000e+00> : vector<22x128xf32>
    %23 = tpu.matmul %20, %22, %cst_22 {dimension_numbers = #tpu.dot_dimension_numbers<[1], [0], [0], [1], [0, 0, 1, 1], [], []>} : vector<22x128xbf16>, vector<128x128xbf16>, vector<22x128xf32> -> vector<22x128xf32>
    %24 = arith.addf %18, %23 : vector<22x128xf32>
    %c0_23 = arith.constant 0 : index
    %c7 = arith.constant 7 : index
    %c0_24 = arith.constant 0 : index
    %25 = vector.load %arg1[%c0_23, %c7, %c0_24] : memref<1x36x128xbf16, #tpu.memory_space<vmem>>, vector<1x22x128xbf16>
    %26 = vector.shape_cast %25 : vector<1x22x128xbf16> to vector<22x128xbf16>
    %c4 = arith.constant 4 : index
    %c0_25 = arith.constant 0 : index
    %c0_26 = arith.constant 0 : index
    %27 = vector.load %arg2[%c4, %c0_25, %c0_26] : memref<9x128x128xbf16, #tpu.memory_space<vmem>>, vector<1x128x128xbf16>
    %28 = vector.shape_cast %27 : vector<1x128x128xbf16> to vector<128x128xbf16>
    %cst_27 = arith.constant dense<0.000000e+00> : vector<22x128xf32>
    %29 = tpu.matmul %26, %28, %cst_27 {dimension_numbers = #tpu.dot_dimension_numbers<[1], [0], [0], [1], [0, 0, 1, 1], [], []>} : vector<22x128xbf16>, vector<128x128xbf16>, vector<22x128xf32> -> vector<22x128xf32>
    %30 = arith.addf %24, %29 : vector<22x128xf32>
    %c0_28 = arith.constant 0 : index
    %c8 = arith.constant 8 : index
    %c0_29 = arith.constant 0 : index
    %31 = vector.load %arg1[%c0_28, %c8, %c0_29] : memref<1x36x128xbf16, #tpu.memory_space<vmem>>, vector<1x22x128xbf16>
    %32 = vector.shape_cast %31 : vector<1x22x128xbf16> to vector<22x128xbf16>
    %c5 = arith.constant 5 : index
    %c0_30 = arith.constant 0 : index
    %c0_31 = arith.constant 0 : index
    %33 = vector.load %arg2[%c5, %c0_30, %c0_31] : memref<9x128x128xbf16, #tpu.memory_space<vmem>>, vector<1x128x128xbf16>
    %34 = vector.shape_cast %33 : vector<1x128x128xbf16> to vector<128x128xbf16>
    %cst_32 = arith.constant dense<0.000000e+00> : vector<22x128xf32>
    %35 = tpu.matmul %32, %34, %cst_32 {dimension_numbers = #tpu.dot_dimension_numbers<[1], [0], [0], [1], [0, 0, 1, 1], [], []>} : vector<22x128xbf16>, vector<128x128xbf16>, vector<22x128xf32> -> vector<22x128xf32>
    %36 = arith.addf %30, %35 : vector<22x128xf32>
    %c0_33 = arith.constant 0 : index
    %c12 = arith.constant 12 : index
    %c0_34 = arith.constant 0 : index
    %37 = vector.load %arg1[%c0_33, %c12, %c0_34] : memref<1x36x128xbf16, #tpu.memory_space<vmem>>, vector<1x22x128xbf16>
    %38 = vector.shape_cast %37 : vector<1x22x128xbf16> to vector<22x128xbf16>
    %c6_35 = arith.constant 6 : index
    %c0_36 = arith.constant 0 : index
    %c0_37 = arith.constant 0 : index
    %39 = vector.load %arg2[%c6_35, %c0_36, %c0_37] : memref<9x128x128xbf16, #tpu.memory_space<vmem>>, vector<1x128x128xbf16>
    %40 = vector.shape_cast %39 : vector<1x128x128xbf16> to vector<128x128xbf16>
    %cst_38 = arith.constant dense<0.000000e+00> : vector<22x128xf32>
    %41 = tpu.matmul %38, %40, %cst_38 {dimension_numbers = #tpu.dot_dimension_numbers<[1], [0], [0], [1], [0, 0, 1, 1], [], []>} : vector<22x128xbf16>, vector<128x128xbf16>, vector<22x128xf32> -> vector<22x128xf32>
    %42 = arith.addf %36, %41 : vector<22x128xf32>
    %c0_39 = arith.constant 0 : index
    %c13 = arith.constant 13 : index
    %c0_40 = arith.constant 0 : index
    %43 = vector.load %arg1[%c0_39, %c13, %c0_40] : memref<1x36x128xbf16, #tpu.memory_space<vmem>>, vector<1x22x128xbf16>
    %44 = vector.shape_cast %43 : vector<1x22x128xbf16> to vector<22x128xbf16>
    %c7_41 = arith.constant 7 : index
    %c0_42 = arith.constant 0 : index
    %c0_43 = arith.constant 0 : index
    %45 = vector.load %arg2[%c7_41, %c0_42, %c0_43] : memref<9x128x128xbf16, #tpu.memory_space<vmem>>, vector<1x128x128xbf16>
    %46 = vector.shape_cast %45 : vector<1x128x128xbf16> to vector<128x128xbf16>
    %cst_44 = arith.constant dense<0.000000e+00> : vector<22x128xf32>
    %47 = tpu.matmul %44, %46, %cst_44 {dimension_numbers = #tpu.dot_dimension_numbers<[1], [0], [0], [1], [0, 0, 1, 1], [], []>} : vector<22x128xbf16>, vector<128x128xbf16>, vector<22x128xf32> -> vector<22x128xf32>
    %48 = arith.addf %42, %47 : vector<22x128xf32>
    %c0_45 = arith.constant 0 : index
    %c14 = arith.constant 14 : index
    %c0_46 = arith.constant 0 : index
    %49 = vector.load %arg1[%c0_45, %c14, %c0_46] : memref<1x36x128xbf16, #tpu.memory_space<vmem>>, vector<1x22x128xbf16>
    %50 = vector.shape_cast %49 : vector<1x22x128xbf16> to vector<22x128xbf16>
    %c8_47 = arith.constant 8 : index
    %c0_48 = arith.constant 0 : index
    %c0_49 = arith.constant 0 : index
    %51 = vector.load %arg2[%c8_47, %c0_48, %c0_49] : memref<9x128x128xbf16, #tpu.memory_space<vmem>>, vector<1x128x128xbf16>
    %52 = vector.shape_cast %51 : vector<1x128x128xbf16> to vector<128x128xbf16>
    %cst_50 = arith.constant dense<0.000000e+00> : vector<22x128xf32>
    %53 = tpu.matmul %50, %52, %cst_50 {dimension_numbers = #tpu.dot_dimension_numbers<[1], [0], [0], [1], [0, 0, 1, 1], [], []>} : vector<22x128xbf16>, vector<128x128xbf16>, vector<22x128xf32> -> vector<22x128xf32>
    %54 = arith.addf %48, %53 : vector<22x128xf32>
    %c0_51 = arith.constant 0 : index
    %c0_52 = arith.constant 0 : index
    %55 = vector.load %arg3[%c0_51, %c0_52] : memref<1x128xf32, #tpu.memory_space<vmem>>, vector<1x128xf32>
    %56 = vector.broadcast %55 : vector<1x128xf32> to vector<22x128xf32>
    %57 = arith.addf %54, %56 : vector<22x128xf32>
    %58 = arith.negf %57 : vector<22x128xf32>
    %59 = math.exp %58 : vector<22x128xf32>
    %cst_53 = arith.constant 1.000000e+00 : f32
    %60 = vector.broadcast %cst_53 : f32 to vector<22x128xf32>
    %61 = arith.addf %60, %59 : vector<22x128xf32>
    %62 = arith.divf %60, %61 : vector<22x128xf32>
    %63 = arith.mulf %57, %62 : vector<22x128xf32>
    %c0_54 = arith.constant 0 : index
    %c0_55 = arith.constant 0 : index
    %c0_56 = arith.constant 0 : index
    %64 = vector.load %arg4[%c0_54, %c0_55, %c0_56] : memref<1x1x128xf32, #tpu.memory_space<vmem>>, vector<1x1x128xf32>
    %65 = vector.shape_cast %64 : vector<1x1x128xf32> to vector<1x128xf32>
    %66 = vector.broadcast %65 : vector<1x128xf32> to vector<22x128xf32>
    %67 = arith.addf %63, %66 : vector<22x128xf32>
    %68 = vector.extract_strided_slice %67 {offsets = [0, 0], sizes = [4, 128], strides = [1, 1]} : vector<22x128xf32> to vector<4x128xf32>
    %69 = arith.truncf %68 : vector<4x128xf32> to vector<4x128xbf16>
    %c0_57 = arith.constant 0 : index
    %c0_58 = arith.constant 0 : index
    %c0_59 = arith.constant 0 : index
    %c0_60 = arith.constant 0 : index
    %70 = vector.load %arg5[%c0_57, %c0_58, %c0_59, %c0_60] : memref<1x4x4x128xbf16, #tpu.memory_space<vmem>>, vector<1x1x4x128xbf16>
    %71 = vector.shape_cast %70 : vector<1x1x4x128xbf16> to vector<4x128xbf16>
    %72 = vector.shape_cast %69 : vector<4x128xbf16> to vector<1x1x4x128xbf16>
    tpu.vector_store %arg5[%c0_57, %c0_58, %c0_59, %c0_60], %72 {strides = array<i32>} : memref<1x4x4x128xbf16, #tpu.memory_space<vmem>>, vector<1x1x4x128xbf16>,
    %73 = vector.extract_strided_slice %67 {offsets = [6, 0], sizes = [4, 128], strides = [1, 1]} : vector<22x128xf32> to vector<4x128xf32>
    %74 = arith.truncf %73 : vector<4x128xf32> to vector<4x128xbf16>
    %c0_61 = arith.constant 0 : index
    %c1_62 = arith.constant 1 : index
    %c0_63 = arith.constant 0 : index
    %c0_64 = arith.constant 0 : index
    %75 = vector.load %arg5[%c0_61, %c1_62, %c0_63, %c0_64] : memref<1x4x4x128xbf16, #tpu.memory_space<vmem>>, vector<1x1x4x128xbf16>
    %76 = vector.shape_cast %75 : vector<1x1x4x128xbf16> to vector<4x128xbf16>
    %77 = vector.shape_cast %74 : vector<4x128xbf16> to vector<1x1x4x128xbf16>
    tpu.vector_store %arg5[%c0_61, %c1_62, %c0_63, %c0_64], %77 {strides = array<i32>} : memref<1x4x4x128xbf16, #tpu.memory_space<vmem>>, vector<1x1x4x128xbf16>,
    %78 = vector.extract_strided_slice %67 {offsets = [12, 0], sizes = [4, 128], strides = [1, 1]} : vector<22x128xf32> to vector<4x128xf32>
    %79 = arith.truncf %78 : vector<4x128xf32> to vector<4x128xbf16>
    %c0_65 = arith.constant 0 : index
    %c2_66 = arith.constant 2 : index
    %c0_67 = arith.constant 0 : index
    %c0_68 = arith.constant 0 : index
    %80 = vector.load %arg5[%c0_65, %c2_66, %c0_67, %c0_68] : memref<1x4x4x128xbf16, #tpu.memory_space<vmem>>, vector<1x1x4x128xbf16>
    %81 = vector.shape_cast %80 : vector<1x1x4x128xbf16> to vector<4x128xbf16>
    %82 = vector.shape_cast %79 : vector<4x128xbf16> to vector<1x1x4x128xbf16>
    tpu.vector_store %arg5[%c0_65, %c2_66, %c0_67, %c0_68], %82 {strides = array<i32>} : memref<1x4x4x128xbf16, #tpu.memory_space<vmem>>, vector<1x1x4x128xbf16>,
    %83 = vector.extract_strided_slice %67 {offsets = [18, 0], sizes = [4, 128], strides = [1, 1]} : vector<22x128xf32> to vector<4x128xf32>
    %84 = arith.truncf %83 : vector<4x128xf32> to vector<4x128xbf16>
    %c0_69 = arith.constant 0 : index
    %c3_70 = arith.constant 3 : index
    %c0_71 = arith.constant 0 : index
    %c0_72 = arith.constant 0 : index
    %85 = vector.load %arg5[%c0_69, %c3_70, %c0_71, %c0_72] : memref<1x4x4x128xbf16, #tpu.memory_space<vmem>>, vector<1x1x4x128xbf16>
    %86 = vector.shape_cast %85 : vector<1x1x4x128xbf16> to vector<4x128xbf16>
    %87 = vector.shape_cast %84 : vector<4x128xbf16> to vector<1x1x4x128xbf16>
    tpu.vector_store %arg5[%c0_69, %c3_70, %c0_71, %c0_72], %87 {strides = array<i32>} : memref<1x4x4x128xbf16, #tpu.memory_space<vmem>>, vector<1x1x4x128xbf16>,
    return
  }
  func.func @transform_0(%arg0: i32) -> (i32, i32, i32) {
    %c0_i32 = arith.constant 0 : i32
    %c0_i32_0 = arith.constant 0 : i32
    %c0_i32_1 = arith.constant 0 : i32
    return %arg0, %c0_i32, %c0_i32_0 : i32, i32, i32
  }
  func.func @transform_1(%arg0: i32) -> (i32, i32, i32) {
    %c0_i32 = arith.constant 0 : i32
    %c0_i32_0 = arith.constant 0 : i32
    %c0_i32_1 = arith.constant 0 : i32
    %c0_i32_2 = arith.constant 0 : i32
    return %c0_i32, %c0_i32_0, %c0_i32_1 : i32, i32, i32
  }
  func.func @transform_2(%arg0: i32) -> (i32, i32) {
    %c0_i32 = arith.constant 0 : i32
    %c0_i32_0 = arith.constant 0 : i32
    %c0_i32_1 = arith.constant 0 : i32
    return %c0_i32, %c0_i32_0 : i32, i32
  }
  func.func @transform_3(%arg0: i32) -> (i32, i32, i32) {
    %c0_i32 = arith.constant 0 : i32
    %c0_i32_0 = arith.constant 0 : i32
    %c0_i32_1 = arith.constant 0 : i32
    return %arg0, %c0_i32, %c0_i32_0 : i32, i32, i32
  }
  func.func @transform_4(%arg0: i32) -> (i32, i32, i32, i32) {
    %c0_i32 = arith.constant 0 : i32
    %c0_i32_0 = arith.constant 0 : i32
    %c0_i32_1 = arith.constant 0 : i32
    %c0_i32_2 = arith.constant 0 : i32
    return %arg0, %c0_i32, %c0_i32_0, %c0_i32_1 : i32, i32, i32, i32
  }
}

module attributes {stable_mosaic.version = 11 : i64} {
  func.func @_attn_kernel(%arg0: i32, %arg1: memref<1x16x128xbf16, #tpu.memory_space<vmem>>, %arg2: memref<128x128xbf16, #tpu.memory_space<vmem>>, %arg3: memref<1x128xf32, #tpu.memory_space<vmem>>, %arg4: memref<1x8x128xbf16, #tpu.memory_space<vmem>>, %arg5: memref<128x256xbf16, #tpu.memory_space<vmem>>, %arg6: memref<1x256xf32, #tpu.memory_space<vmem>>, %arg7: memref<128x128xbf16, #tpu.memory_space<vmem>>, %arg8: memref<1x16x128xbf16, #tpu.memory_space<vmem>>) attributes {dimension_semantics = [#tpu.dimension_semantics<parallel>], iteration_bounds = array<i64: 2>, scalar_prefetch = 0 : i64, scratch_operands = 0 : i64, tpu.core_type = #tpu.core_type<tc>, window_params = [{transform_indices = @transform_0, window_bounds = array<i64: 1, 16, 128>}, {pipeline_mode = #tpu.pipeline_mode<synchronous>, transform_indices = @transform_1, window_bounds = array<i64: 128, 128>}, {pipeline_mode = #tpu.pipeline_mode<synchronous>, transform_indices = @transform_2, window_bounds = array<i64: 1, 128>}, {transform_indices = @transform_3, window_bounds = array<i64: 1, 8, 128>}, {pipeline_mode = #tpu.pipeline_mode<synchronous>, transform_indices = @transform_4, window_bounds = array<i64: 128, 256>}, {pipeline_mode = #tpu.pipeline_mode<synchronous>, transform_indices = @transform_5, window_bounds = array<i64: 1, 256>}, {pipeline_mode = #tpu.pipeline_mode<synchronous>, transform_indices = @transform_6, window_bounds = array<i64: 128, 128>}, {transform_indices = @transform_7, window_bounds = array<i64: 1, 16, 128>}]} {
    %c0 = arith.constant 0 : index
    %c0_0 = arith.constant 0 : index
    %c0_1 = arith.constant 0 : index
    %0 = vector.load %arg1[%c0, %c0_0, %c0_1] : memref<1x16x128xbf16, #tpu.memory_space<vmem>>, vector<1x16x128xbf16>
    %1 = vector.shape_cast %0 : vector<1x16x128xbf16> to vector<16x128xbf16>
    %c0_2 = arith.constant 0 : index
    %c0_3 = arith.constant 0 : index
    %2 = vector.load %arg2[%c0_2, %c0_3] : memref<128x128xbf16, #tpu.memory_space<vmem>>, vector<128x128xbf16>
    %cst = arith.constant dense<0.000000e+00> : vector<16x128xf32>
    %3 = tpu.matmul %1, %2, %cst {dimension_numbers = #tpu.dot_dimension_numbers<[1], [0], [0], [1], [0, 0, 1, 1], [], []>} : vector<16x128xbf16>, vector<128x128xbf16>, vector<16x128xf32> -> vector<16x128xf32>
    %c0_4 = arith.constant 0 : index
    %c0_5 = arith.constant 0 : index
    %4 = vector.load %arg3[%c0_4, %c0_5] : memref<1x128xf32, #tpu.memory_space<vmem>>, vector<1x128xf32>
    %5 = vector.broadcast %4 : vector<1x128xf32> to vector<16x128xf32>
    %6 = arith.addf %3, %5 : vector<16x128xf32>
    %c0_6 = arith.constant 0 : index
    %c0_7 = arith.constant 0 : index
    %c0_8 = arith.constant 0 : index
    %7 = vector.load %arg4[%c0_6, %c0_7, %c0_8] : memref<1x8x128xbf16, #tpu.memory_space<vmem>>, vector<1x8x128xbf16>
    %8 = vector.shape_cast %7 : vector<1x8x128xbf16> to vector<8x128xbf16>
    %c0_9 = arith.constant 0 : index
    %c0_10 = arith.constant 0 : index
    %9 = vector.load %arg5[%c0_9, %c0_10] : memref<128x256xbf16, #tpu.memory_space<vmem>>, vector<128x128xbf16>
    %cst_11 = arith.constant dense<0.000000e+00> : vector<8x128xf32>
    %10 = tpu.matmul %8, %9, %cst_11 {dimension_numbers = #tpu.dot_dimension_numbers<[1], [0], [0], [1], [0, 0, 1, 1], [], []>} : vector<8x128xbf16>, vector<128x128xbf16>, vector<8x128xf32> -> vector<8x128xf32>
    %c0_12 = arith.constant 0 : index
    %c0_13 = arith.constant 0 : index
    %11 = vector.load %arg6[%c0_12, %c0_13] : memref<1x256xf32, #tpu.memory_space<vmem>>, vector<1x128xf32>
    %12 = vector.broadcast %11 : vector<1x128xf32> to vector<8x128xf32>
    %13 = arith.addf %10, %12 : vector<8x128xf32>
    %c0_14 = arith.constant 0 : index
    %c128 = arith.constant 128 : index
    %14 = vector.load %arg5[%c0_14, %c128] : memref<128x256xbf16, #tpu.memory_space<vmem>>, vector<128x128xbf16>
    %cst_15 = arith.constant dense<0.000000e+00> : vector<8x128xf32>
    %15 = tpu.matmul %8, %14, %cst_15 {dimension_numbers = #tpu.dot_dimension_numbers<[1], [0], [0], [1], [0, 0, 1, 1], [], []>} : vector<8x128xbf16>, vector<128x128xbf16>, vector<8x128xf32> -> vector<8x128xf32>
    %c0_16 = arith.constant 0 : index
    %c128_17 = arith.constant 128 : index
    %16 = vector.load %arg6[%c0_16, %c128_17] : memref<1x256xf32, #tpu.memory_space<vmem>>, vector<1x128xf32>
    %17 = vector.broadcast %16 : vector<1x128xf32> to vector<8x128xf32>
    %18 = arith.addf %15, %17 : vector<8x128xf32>
    %19 = arith.truncf %6 : vector<16x128xf32> to vector<16x128xbf16>
    %20 = arith.truncf %13 : vector<8x128xf32> to vector<8x128xbf16>
    %cst_18 = arith.constant dense<0.000000e+00> : vector<16x8xf32>
    %21 = tpu.matmul %19, %20, %cst_18 {dimension_numbers = #tpu.dot_dimension_numbers<[1], [1], [0], [0], [0, 0, 1, 0], [], []>} : vector<16x128xbf16>, vector<8x128xbf16>, vector<16x8xf32> -> vector<16x8xf32>
    %cst_19 = arith.constant 0.176776692 : f32
    %22 = vector.broadcast %cst_19 : f32 to vector<16x8xf32>
    %23 = arith.mulf %21, %22 : vector<16x8xf32>
    %cst_20 = arith.constant dense<0xFF800000> : vector<16xf32>
    %24 = vector.multi_reduction <maximumf>, %23, %cst_20 [1] : vector<16x8xf32> to vector<16xf32>
    %25 = vector.shape_cast %24 : vector<16xf32> to vector<16x1xf32>
    %26 = vector.broadcast %25 : vector<16x1xf32> to vector<16x8xf32>
    %27 = arith.subf %23, %26 : vector<16x8xf32>
    %28 = math.exp %27 : vector<16x8xf32>
    %cst_21 = arith.constant dense<0.000000e+00> : vector<16xf32>
    %29 = vector.multi_reduction <add>, %28, %cst_21 [1] : vector<16x8xf32> to vector<16xf32>
    %30 = vector.shape_cast %29 : vector<16xf32> to vector<16x1xf32>
    %31 = tpu.reciprocal %30 {approx = true} : vector<16x1xf32> -> vector<16x1xf32>
    %32 = vector.broadcast %31 : vector<16x1xf32> to vector<16x8xf32>
    %33 = arith.mulf %28, %32 : vector<16x8xf32>
    %34 = arith.truncf %33 : vector<16x8xf32> to vector<16x8xbf16>
    %35 = arith.truncf %18 : vector<8x128xf32> to vector<8x128xbf16>
    %cst_22 = arith.constant dense<0.000000e+00> : vector<16x128xf32>
    %36 = tpu.matmul %34, %35, %cst_22 {dimension_numbers = #tpu.dot_dimension_numbers<[1], [0], [0], [1], [0, 0, 1, 1], [], []>} : vector<16x8xbf16>, vector<8x128xbf16>, vector<16x128xf32> -> vector<16x128xf32>
    %37 = arith.truncf %36 : vector<16x128xf32> to vector<16x128xbf16>
    %c0_23 = arith.constant 0 : index
    %c0_24 = arith.constant 0 : index
    %38 = vector.load %arg7[%c0_23, %c0_24] : memref<128x128xbf16, #tpu.memory_space<vmem>>, vector<128x128xbf16>
    %cst_25 = arith.constant dense<0.000000e+00> : vector<16x128xf32>
    %39 = tpu.matmul %37, %38, %cst_25 {dimension_numbers = #tpu.dot_dimension_numbers<[1], [0], [0], [1], [0, 0, 1, 1], [], []>} : vector<16x128xbf16>, vector<128x128xbf16>, vector<16x128xf32> -> vector<16x128xf32>
    %40 = arith.extf %1 : vector<16x128xbf16> to vector<16x128xf32>
    %41 = arith.addf %39, %40 : vector<16x128xf32>
    %42 = arith.truncf %41 : vector<16x128xf32> to vector<16x128xbf16>
    %c0_26 = arith.constant 0 : index
    %c0_27 = arith.constant 0 : index
    %c0_28 = arith.constant 0 : index
    %43 = vector.load %arg8[%c0_26, %c0_27, %c0_28] : memref<1x16x128xbf16, #tpu.memory_space<vmem>>, vector<1x16x128xbf16>
    %44 = vector.shape_cast %43 : vector<1x16x128xbf16> to vector<16x128xbf16>
    %45 = vector.shape_cast %42 : vector<16x128xbf16> to vector<1x16x128xbf16>
    tpu.vector_store %arg8[%c0_26, %c0_27, %c0_28], %45 {strides = array<i32>} : memref<1x16x128xbf16, #tpu.memory_space<vmem>>, vector<1x16x128xbf16>,
    return
  }
  func.func @transform_0(%arg0: i32) -> (i32, i32, i32) {
    %c0_i32 = arith.constant 0 : i32
    %c0_i32_0 = arith.constant 0 : i32
    %c0_i32_1 = arith.constant 0 : i32
    return %arg0, %c0_i32, %c0_i32_0 : i32, i32, i32
  }
  func.func @transform_1(%arg0: i32) -> (i32, i32) {
    %c0_i32 = arith.constant 0 : i32
    %c0_i32_0 = arith.constant 0 : i32
    %c0_i32_1 = arith.constant 0 : i32
    return %c0_i32, %c0_i32_0 : i32, i32
  }
  func.func @transform_2(%arg0: i32) -> (i32, i32) {
    %c0_i32 = arith.constant 0 : i32
    %c0_i32_0 = arith.constant 0 : i32
    %c0_i32_1 = arith.constant 0 : i32
    return %c0_i32, %c0_i32_0 : i32, i32
  }
  func.func @transform_3(%arg0: i32) -> (i32, i32, i32) {
    %c0_i32 = arith.constant 0 : i32
    %c0_i32_0 = arith.constant 0 : i32
    %c0_i32_1 = arith.constant 0 : i32
    return %arg0, %c0_i32, %c0_i32_0 : i32, i32, i32
  }
  func.func @transform_4(%arg0: i32) -> (i32, i32) {
    %c0_i32 = arith.constant 0 : i32
    %c0_i32_0 = arith.constant 0 : i32
    %c0_i32_1 = arith.constant 0 : i32
    return %c0_i32, %c0_i32_0 : i32, i32
  }
  func.func @transform_5(%arg0: i32) -> (i32, i32) {
    %c0_i32 = arith.constant 0 : i32
    %c0_i32_0 = arith.constant 0 : i32
    %c0_i32_1 = arith.constant 0 : i32
    return %c0_i32, %c0_i32_0 : i32, i32
  }
  func.func @transform_6(%arg0: i32) -> (i32, i32) {
    %c0_i32 = arith.constant 0 : i32
    %c0_i32_0 = arith.constant 0 : i32
    %c0_i32_1 = arith.constant 0 : i32
    return %c0_i32, %c0_i32_0 : i32, i32
  }
  func.func @transform_7(%arg0: i32) -> (i32, i32, i32) {
    %c0_i32 = arith.constant 0 : i32
    %c0_i32_0 = arith.constant 0 : i32
    %c0_i32_1 = arith.constant 0 : i32
    return %arg0, %c0_i32, %c0_i32_0 : i32, i32, i32
  }
}

module attributes {stable_mosaic.version = 11 : i64} {
  func.func @_mse_kernel(%arg0: i32, %arg1: memref<32x128xbf16, #tpu.memory_space<vmem>>, %arg2: memref<32x128xf32, #tpu.memory_space<vmem>>, %arg3: memref<1x1xf32, #tpu.memory_space<smem>>, %arg4: memref<1x1xf32, #tpu.memory_space<smem>>) attributes {dimension_semantics = [#tpu.dimension_semantics<arbitrary>], iteration_bounds = array<i64: 1>, scalar_prefetch = 0 : i64, scratch_operands = 1 : i64, tpu.core_type = #tpu.core_type<tc>, window_params = [{transform_indices = @transform_0, window_bounds = array<i64: 32, 128>}, {transform_indices = @transform_1, window_bounds = array<i64: 32, 128>}, {transform_indices = @transform_2, window_bounds = array<i64: 1, 1>}]} {
    %c0_i32 = arith.constant 0 : i32
    %0 = arith.cmpi eq, %arg0, %c0_i32 : i32
    %1 = arith.extui %0 : i1 to i32
    %c0_i32_0 = arith.constant 0 : i32
    %2 = arith.cmpi ne, %1, %c0_i32_0 : i32
    scf.if %2 {
      %cst_10 = arith.constant 0.000000e+00 : f32
      %c0_11 = arith.constant 0 : index
      %c0_12 = arith.constant 0 : index
      %18 = memref.load %arg4[%c0_11, %c0_12] : memref<1x1xf32, #tpu.memory_space<smem>>
      memref.store %cst_10, %arg4[%c0_11, %c0_12] : memref<1x1xf32, #tpu.memory_space<smem>>
    } else {
    }
    %c0 = arith.constant 0 : index
    %c0_1 = arith.constant 0 : index
    %3 = vector.load %arg1[%c0, %c0_1] : memref<32x128xbf16, #tpu.memory_space<vmem>>, vector<32x128xbf16>
    %4 = arith.extf %3 : vector<32x128xbf16> to vector<32x128xf32>
    %c0_2 = arith.constant 0 : index
    %c0_3 = arith.constant 0 : index
    %5 = vector.load %arg2[%c0_2, %c0_3] : memref<32x128xf32, #tpu.memory_space<vmem>>, vector<32x128xf32>
    %6 = arith.subf %4, %5 : vector<32x128xf32>
    %c0_4 = arith.constant 0 : index
    %c0_5 = arith.constant 0 : index
    %7 = memref.load %arg4[%c0_4, %c0_5] : memref<1x1xf32, #tpu.memory_space<smem>>
    %8 = arith.mulf %6, %6 : vector<32x128xf32>
    %9 = vector.shape_cast %8 : vector<32x128xf32> to vector<1x32x128xf32>
    %cst = arith.constant dense<0.000000e+00> : vector<1xf32>
    %10 = vector.multi_reduction <add>, %9, %cst [1, 2] : vector<1x32x128xf32> to vector<1xf32>
    %11 = vector.shape_cast %10 : vector<1xf32> to vector<1x1x1xf32>
    %12 = vector.extract %11[0, 0, 0] : f32 from vector<1x1x1xf32>
    %13 = arith.addf %7, %12 : f32
    %c0_6 = arith.constant 0 : index
    %c0_7 = arith.constant 0 : index
    %14 = memref.load %arg4[%c0_6, %c0_7] : memref<1x1xf32, #tpu.memory_space<smem>>
    memref.store %13, %arg4[%c0_6, %c0_7] : memref<1x1xf32, #tpu.memory_space<smem>>
    %c0_i32_8 = arith.constant 0 : i32
    %15 = arith.cmpi eq, %arg0, %c0_i32_8 : i32
    %16 = arith.extui %15 : i1 to i32
    %c0_i32_9 = arith.constant 0 : i32
    %17 = arith.cmpi ne, %16, %c0_i32_9 : i32
    scf.if %17 {
      %c0_10 = arith.constant 0 : index
      %c0_11 = arith.constant 0 : index
      %18 = memref.load %arg4[%c0_10, %c0_11] : memref<1x1xf32, #tpu.memory_space<smem>>
      %c0_12 = arith.constant 0 : index
      %c0_13 = arith.constant 0 : index
      %19 = memref.load %arg3[%c0_12, %c0_13] : memref<1x1xf32, #tpu.memory_space<smem>>
      memref.store %18, %arg3[%c0_12, %c0_13] : memref<1x1xf32, #tpu.memory_space<smem>>
    } else {
    }
    return
  }
  func.func @transform_0(%arg0: i32) -> (i32, i32) {
    %c0_i32 = arith.constant 0 : i32
    %c0_i32_0 = arith.constant 0 : i32
    return %arg0, %c0_i32 : i32, i32
  }
  func.func @transform_1(%arg0: i32) -> (i32, i32) {
    %c0_i32 = arith.constant 0 : i32
    %c0_i32_0 = arith.constant 0 : i32
    return %arg0, %c0_i32 : i32, i32
  }
  func.func @transform_2(%arg0: i32) -> (i32, i32) {
    %c0_i32 = arith.constant 0 : i32
    %c0_i32_0 = arith.constant 0 : i32
    %c0_i32_1 = arith.constant 0 : i32
    return %c0_i32, %c0_i32_0 : i32, i32
  }
}

</mosaic_0001>

<bundles_post_ra>
// kernel: sdxl_forward.34
= control target key start
LH: loop header
LB: loop body
LE: loop exit
PB: predicated region body
PF: predicated region fallthrough
CT: control target
= control target key end

     0   :  { %s734_s12 = smov 0   ;;  %s736_s13 = smov 0   ;;  %s825_s0 = inlined_call_operand.vmem [shape: bf16[32,256], index: 0, kind: input, shape index: {}]   ;;  %s826_s1 = inlined_call_operand.vmem [shape: bf16[256,128], index: 1, kind: input, shape index: {}]   ;;  %s827_s2 = inlined_call_operand.vmem [shape: f32[1,128], index: 2, kind: input, shape index: {}]   ;;  %s828_s3 = inlined_call_operand.vmem [shape: f32[32,128], index: 3, kind: output, shape index: {}]  }
   0x1   :  { %s738_s14 = smov 0  }
   0x2 LB: > { %s32_s15 = sadd.s32 1, %s708_s13  ;;  %p597_p0 = scmp.ge.s32.totalorder %s712_s14, 1  ;;  %s712_s14 = sphi %s738_s14, %s13_s14   ;;  %s708_s13 = sphi %s736_s13, %s830_s13   ;;  %s704_s12 = sphi %s734_s12, %s829_s12  }
   0x3   : > { %p34_p1 = scmp.ge.s32.totalorder %s32_s15, 2  ;;  %p191_p2 = scmp.lt.s32.totalorder %s712_s14, 3 }
   0x5   : > { %s832_s15 = smov (%p34_p1, %s32_s15), 0  ;;  %p192_p3 = pnand %p597_p0, %p191_p2 }
   0x6   : > { %v671_v0 = vld [vmem:[%s826_s1 + $0x40] sm:$0xff] (!%p192_p3)   ;;  %s598_s18 = sshll.u32 (!%p192_p3), %s704_s12, 1  ;;  %v673_v2 = vld [vmem:[%s826_s1 + $0x48] sm:$0xff] (!%p192_p3)   ;;  %v675_v4 = vld [vmem:[%s826_s1 + $0x50] sm:$0xff] (!%p192_p3)  }
   0x7   : > { %195 = sbr.rel (%p192_p3) target bundleno = 259 (0x103), region = 32  ;;  %v672_v1 = vld [vmem:[%s826_s1] sm:$0xff] (!%p192_p3)   ;;  %625 = vmatprep.subr.bf16.mxu0 (!%p192_p3), %v671_v0  ;;  %v674_v3 = vld [vmem:[%s826_s1 + $0x8] sm:$0xff] (!%p192_p3)   ;;  %p236_p4 = scmp.lt.s32.totalorder (!%p192_p3), %s598_s18, 3  ;;  %v676_v5 = vld [vmem:[%s826_s1 + $0x10] sm:$0xff] (!%p192_p3)  }
   0x8   : > { %626 = vmatpush3.bf16.msra.mxu0 (!%p192_p3), %v672_v1  ;;  %v677_v6 = vld [vmem:[%s826_s1 + $0x58] sm:$0xff] (!%p192_p3)   ;;  %v679_v8 = vld [vmem:[%s826_s1 + $0x60] sm:$0xff] (!%p192_p3)   ;;  %v681_v10 = vld [vmem:[%s826_s1 + $0x68] sm:$0xff] (!%p192_p3)  }
   0x9   : > { %627 = vmatprep.subr.bf16.mxu0 (!%p192_p3), %v673_v2  ;;  %v678_v7 = vld [vmem:[%s826_s1 + $0x18] sm:$0xff] (!%p192_p3)   ;;  %v680_v9 = vld [vmem:[%s826_s1 + $0x20] sm:$0xff] (!%p192_p3)   ;;  %v682_v12 = vld [vmem:[%s826_s1 + $0x28] sm:$0xff] (!%p192_p3)  }
   0xa   : > { %v683_v13 = vld [vmem:[%s826_s1 + $0x70] sm:$0xff] (!%p192_p3)   ;;  %v685_v15 = vld [vmem:[%s826_s1 + $0x78] sm:$0xff] (!%p192_p3)   ;;  %v621_v20 = vld [vmem:[%s827_s2] ss:$0 sm:$0xff] (!%p192_p3) }
   0xb   : > { %v684_v14 = vld [vmem:[%s826_s1 + $0x30] sm:$0xff] (!%p192_p3)   ;;  %v686_v16 = vld [vmem:[%s826_s1 + $0x38] sm:$0xff] (!%p192_p3)  }
   0xc   : > { %628 = vmatpush3.bf16.msra.mxu0 (!%p192_p3), %v674_v3 }
   0xd   : > { %629 = vmatprep.subr.bf16.mxu0 (!%p192_p3), %v675_v4 }
   0xe   : > { %s834_s18 = smov (!%p236_p4, %s598_s18), 3 }
   0xf   : > { %s624_s6 = sshll.u32 %s834_s18, 3 }
  0x10   : > { %630 = vmatpush3.bf16.msra.mxu0 %v676_v5  ;;  %s243_s11 = scalar_lea.vmem %s825_s0, %s624_s6  ;;  %s265_s8 = scalar_lea.vmem %s828_s3, %s624_s6 }
  0x11   : > { %631 = vmatprep.subr.bf16.mxu0 %v677_v6  ;;  %v689_v11 = vld [vmem:[%s243_s11 + $0x4] ss:$8 sps:$4 sm:$0xff]   ;;  %v687_v17 = vld [vmem:[%s243_s11] ss:$8 sps:$4 sm:$0xff]  }
  0x12   : > { %448 = vmatprep.mubr.bf16.mxu0 %v689_v11 }
  0x14   : > { %632 = vmatpush3.bf16.msra.mxu0 %v678_v7 }
  0x15   : > { %633 = vmatprep.subr.bf16.mxu0 %v679_v8 }
  0x18   : > { %634 = vmatpush3.bf16.msra.mxu0 %v680_v9 }
  0x19   : > { %635 = vmatprep.subr.bf16.mxu0 %v681_v10 }
  0x1c   : > { %636 = vmatpush3.bf16.msra.mxu0 %v682_v12 }
  0x1d   : > { %637 = vmatprep.subr.bf16.mxu0 %v683_v13 }
  0x20   : > { %638 = vmatpush3.bf16.msra.mxu0 %v684_v14 }
  0x21   : > { %639 = vmatprep.subr.bf16.mxu0 %v685_v15 }
  0x24   : > { %640 = vmatpush3.bf16.msra.mxu0 %v686_v16 }
  0x27   : > { %449 = vmatmul.mubr.bf16.vlgmr.msra.gmra.mrb[0].mxu0 %v687_v17 }
  0xfa   : > { %v641_v18 = vpop.f32.mrb[0].mxu0 }
  0xfb   : > { %v642_v19 = vpop.f32.mrb[1].mxu0 }
  0xfc   : > { %v643_v21 = vadd.f32 %v642_v19, %v641_v18  ;;  %v644_v22 = vpop.f32.mrb[2].mxu0 }
  0xfd   : > { %v645_v23 = vpop.f32.mrb[3].mxu0 }
  0xfe   : > { %v473_v24 = vadd.f32 %v643_v21, %v621_v20  ;;  %v646_v25 = vadd.f32 %v645_v23, %v644_v22 }
 0x100   : > { %475 = vst [vmem:[%s265_s8] sm:$0xff] %v473_v24  ;;  %v474_v26 = vadd.f32 %v646_v25, %v621_v20 }
 0x102   : > { %476 = vst [vmem:[%s265_s8 + $0x8] sm:$0xff] %v474_v26 }
 0x103 PF: > { %s13_s14 = sadd.s32 1, %s712_s14   ;;  %s829_s12 = smov %s708_s13 }
 0x104   : > { %p10_p5 = scmp.ge.s32.totalorder %s13_s14, 4   ;;  %s830_s13 = smov %s832_s15 }
 0x106   :  { %12 = sbr.rel (!%p10_p5) target bundleno = 2 (0x2), region = 76 }

// kernel: sdxl_forward.35
= control target key start
LH: loop header
LB: loop body
LE: loop exit
PB: predicated region body
PF: predicated region fallthrough
CT: control target
= control target key end

     0   :  { %8 = vsyncpa [#allocation3], 0  ;;  %s404_s12 = smov 0   ;;  %s442_s0 = inlined_call_operand.vmem [shape: f32[2,2], index: 0, kind: input, shape index: {}]   ;;  %s443_s1 = inlined_call_operand.vmem [shape: f32[2,4,4,128], index: 1, kind: input, shape index: {}]   ;;  %s444_s2 = inlined_call_operand.vmem [shape: f32[2,4,4,128], index: 2, kind: input, shape index: {}]   ;;  %s445_s3 = inlined_call_operand.vmem [shape: bf16[2,4,4,128], index: 3, kind: output, shape index: {}]  }
   0x1 LB: > { %s318_s13 = sadd.s32 4294967295, %s381_s12   ;;  %p320_p0 = scmp.ge.s32.totalorder %s381_s12, 1  ;;  %s381_s12 = sphi %s404_s12, %s14_s12  }
   0x2   : > { %p118_p1 = scmp.lt.s32.totalorder %s381_s12, 3  ;;  %s131_s16 = sshll.u32 %s442_s0, 4  ;;  %s132_s16 = int_to_ptr.vmem [resolvable:$true] %s131_s16 }
   0x3   : > { %p345_p3 = scmp.eq.s32.totalorder %s318_s13, 0  ;;  %s356_s18 = scalar_lea.vmem %s132_s16, 32 }
   0x4   : > { %p415_p2 = pnand %p320_p0, %p118_p1  ;;  %p357_p6 = scmp.ne.s32.totalorder %s132_s16, %s356_s18 }
   0x5   : > { %p364_p10 = scmp.lt.s32.totalorder %s132_s16, %s132_s16  ;;  %p365_p11 = scmp.lt.s32.totalorder %s356_s18, %s356_s18 }
   0x6   : > { %p341_p4 = pneg %p415_p2 }
   0x7   : > { %p366_p12 = por %p365_p11, %p364_p10 }
   0x8   : > { %p342_p5 = pnand %p345_p3, %p341_p4 }
   0xa   : > { %p358_p7 = pneg %p342_p5 }
   0xc   : > { %p359_p8 = pnand %p358_p7, %p357_p6 }
   0xe   : > { %p360_p9 = pneg %p359_p8 }
  0x10   : > { %p367_p13 = pnand %p366_p12, %p360_p9 }
  0x12   : > { %370 = shalt.err (!%p367_p13)
}
  0x13   : > { %s383_s19 = smov [#allocation2]   ;;  %160 = sbr.rel (%p415_p2) target bundleno = 46 (0x2e), region = 32 }
  0x14   : > { %344 = dma.vmem_to_smem (!%p342_p5), %s132_s16, 32, %s383_s19, [#allocation3]  }
  0x1a   : > { %376 = dma.done.wait (%p345_p3), [#allocation3], 32  }
  0x1b   : > { %378 = vsyncadd (%p345_p3), [#allocation3], 4294967264 }
  0x1c   : > { %166 = sfence }
  0x1d   : > { %p190_p0 = scmp.lt.s32.totalorder %s318_s13, 1  ;;  %s331_s20 = sshll.u32 %s318_s13, 7 }
  0x1e   : > { %s206_s21 = sld [smem:[#allocation2 + %s331_s20]]  ;;  %s207_s22 = sadd.s32 1, %s331_s20 }
  0x1f   : > { %s448_s13 = smov (!%p190_p0, %s318_s13), 1  ;;  %s208_s23 = sld [smem:[#allocation2 + %s207_s22]] }
  0x20   : > { %s334_s24 = sshll.u32 %s448_s13, 4  ;;  %s336_s4 = sshll.u32 %s448_s13, 3 }
  0x21   : > { %s194_s27 = scalar_lea.vmem %s443_s1, %s334_s24  ;;  %s199_s30 = scalar_lea.vmem %s444_s2, %s334_s24 }
  0x22   : > { %v209_v0 = vld [vmem:[%s194_s27] sm:$0xf]  ;;  %v210_v2 = vld [vmem:[%s194_s27 + $0x4] sm:$0xf]  ;;  %v211_v5 = vld [vmem:[%s194_s27 + $0x8] sm:$0xf]  ;;  %s204_s7 = scalar_lea.vmem %s445_s3, %s336_s4 }
  0x23   : > { %v218_v1 = vld [vmem:[%s199_s30] sm:$0xf]  ;;  %v219_v4 = vld [vmem:[%s199_s30 + $0x4] sm:$0xf]  ;;  %v220_v6 = vld [vmem:[%s199_s30 + $0x8] sm:$0xf] }
  0x24   : > { %v213_v3 = vstv %s206_s21  ;;  %v212_v10 = vld [vmem:[%s194_s27 + $0xc] sm:$0xf] }
  0x25   : > { %v214_v7 = vmul.f32 %v213_v3, %v209_v0  ;;  %v215_v8 = vmul.f32 %v213_v3, %v210_v2  ;;  %v216_v9 = vmul.f32 %v213_v3, %v211_v5  ;;  %v221_v11 = vld [vmem:[%s199_s30 + $0xc] sm:$0xf]  ;;  %v222_v12 = vstv %s208_s23 }
  0x26   : > { %v217_v13 = vmul.f32 %v213_v3, %v212_v10  ;;  %v223_v14 = vmul.f32 %v222_v12, %v218_v1  ;;  %v224_v15 = vmul.f32 %v222_v12, %v219_v4  ;;  %v225_v16 = vmul.f32 %v222_v12, %v220_v6 }
  0x27   : > { %v226_v17 = vmul.f32 %v222_v12, %v221_v11 }
  0x28   : > { %v227_v18 = vadd.f32 %v223_v14, %v214_v7  ;;  %v228_v19 = vadd.f32 %v224_v15, %v215_v8  ;;  %v229_v20 = vadd.f32 %v225_v16, %v216_v9 }
  0x29   : > { %v230_v21 = vadd.f32 %v226_v17, %v217_v13 }
  0x2a   : > { %v231_v22 = vpack.c.bf16 %v227_v18, %v227_v18  ;;  %v232_v23 = vpack.c.bf16 %v228_v19, %v228_v19  ;;  %v233_v24 = vpack.c.bf16 %v229_v20, %v229_v20 }
  0x2b   : > { %v234_v25 = vpack.c.bf16 %v230_v21, %v230_v21 }
  0x2c   : > { %235 = vst [vmem:[%s204_s7] sm:$0x3] %v231_v22  ;;  %236 = vst [vmem:[%s204_s7 + $0x2] sm:$0x3] %v232_v23 }
  0x2d   : > { %237 = vst [vmem:[%s204_s7 + $0x4] sm:$0x3] %v233_v24  ;;  %238 = vst [vmem:[%s204_s7 + $0x6] sm:$0x3] %v234_v25 }
  0x2e PF: > { %s14_s12 = sadd.s32 1, %s381_s12  }
  0x2f   : > { %p11_p1 = scmp.ge.s32.totalorder %s14_s12, 4  }
  0x31   :  { %13 = sbr.rel (!%p11_p1) target bundleno = 1 (0x1), region = 70 }
  0x38   :  { %260 = vsyncpa [#allocation3], 1 }
  0x39   :  { %262 = vsyncpa [#allocation3 + $0x1], 1 }

// kernel: tile.6
= control target key start
LH: loop header
LB: loop body
LE: loop exit
PB: predicated region body
PF: predicated region fallthrough
CT: control target
= control target key end

     0   :  { %s22_s0 = inlined_call_operand.vmem [shape: f32[6], index: 0, kind: input, shape index: {}]   ;;  %s23_s1 = inlined_call_operand.vmem [shape: f32[2,1,1,6], index: 1, kind: output, shape index: {}]  }
   0x1   :  { %v4_v0 = vld [vmem:[%s22_s0] ss:$0 sm:$0xff] }
   0x2   :  { %5 = vst [vmem:[%s23_s1] sm:$0x3] %v4_v0 }

// kernel: mul.100
= control target key start
LH: loop header
LB: loop body
LE: loop exit
PB: predicated region body
PF: predicated region fallthrough
CT: control target
= control target key end

     0   :  { %vm7_vm0 = vcmask 48128   ;;  %vm13_vm1 = vcmask 97328   ;;  %s39_s0 = inlined_call_operand.vmem [shape: f32[2,1,1,6], index: 0, kind: input, shape index: {}]   ;;  %s40_s1 = inlined_call_operand.vmem [shape: f32[12], index: 1, kind: output, shape index: {}]  }
   0x1   :  { %v4_v0 = vld [vmem:[%s39_s0] sm:$0x3]  ;;  %s22_s0 = smov 6  }
   0x2   :  { %5 = vst [vmem:[#allocation1] sm:$0x3] %v4_v0 }
   0x9   :  { %v10_v1 = vld [vmem:[#allocation1 + $0x1] sm:$0x1]   ;;  %v6_v2 = vld [vmem:[#allocation1] sm:$0x1]  }
   0xa   :  { %11 = vrot.lane.b32.xlu0 %v10_v1, %s22_s0  ;;  %8 = vst.msk [vmem:[#allocation0] sm:$0x1] %vm7_vm0, %v6_v2  }
  0x7c   :  { %v12_v3 = vpop.permute.xlu0 %11  }
  0x7d   :  { %14 = vst.msk [vmem:[#allocation0] sm:$0x1] %vm13_vm1, %v12_v3  }
  0x84   :  { %v18_v4 = vld [vmem:[#allocation0] sm:$0x1] }
  0x85   :  { %20 = vst [vmem:[%s40_s1] sm:$0x1] %v18_v4 }

// kernel: sdxl_forward.36
= control target key start
LH: loop header
LB: loop body
LE: loop exit
PB: predicated region body
PF: predicated region fallthrough
CT: control target
= control target key end

     0   :  { %s2109_s12 = smov 0   ;;  %s2409_s0 = inlined_call_operand.vmem [shape: bf16[2,36,128], index: 0, kind: input, shape index: {}]   ;;  %s2410_s1 = inlined_call_operand.vmem [shape: bf16[9,128,128], index: 1, kind: input, shape index: {}]   ;;  %s2411_s2 = inlined_call_operand.vmem [shape: f32[1,128], index: 2, kind: input, shape index: {}]   ;;  %s2412_s3 = inlined_call_operand.vmem [shape: bf16[2,4,4,128], index: 3, kind: output, shape index: {}]  }
   0x1 LB: > { %s1484_s13 = sadd.s32 4294967295, %s2086_s12   ;;  %p1488_p0 = scmp.ge.s32.totalorder %s2086_s12, 1  ;;  %s2086_s12 = sphi %s2109_s12, %s13_s12  }
   0x2   : > { %p137_p1 = scmp.lt.s32.totalorder %s2086_s12, 3 }
   0x4   : > { %p138_p2 = pnand %p1488_p0, %p137_p1 }
   0x5   : > { %v1995_v0 = vld [vmem:[%s2410_s1 + $0x40] sm:$0xff] (!%p138_p2)   ;;  %p161_p3 = scmp.lt.s32.totalorder (!%p138_p2), %s1484_s13, 1  ;;  %v1997_v2 = vld [vmem:[%s2410_s1 + $0x48] sm:$0xff] (!%p138_p2)   ;;  %v1999_v4 = vld [vmem:[%s2410_s1 + $0x50] sm:$0xff] (!%p138_p2)   ;;  %vm217_vm0 = vsmask.f32 (!%p138_p2), 7424 }
   0x6   : > { %141 = sbr.rel (%p138_p2) target bundleno = 395 (0x18b), region = 32  ;;  %v1996_v1 = vld [vmem:[%s2410_s1] sm:$0xff] (!%p138_p2)   ;;  %1805 = vmatprep.subr.bf16.mxu0 (!%p138_p2), %v1995_v0  ;;  %v1998_v3 = vld [vmem:[%s2410_s1 + $0x8] sm:$0xff] (!%p138_p2)   ;;  %v2000_v5 = vld [vmem:[%s2410_s1 + $0x10] sm:$0xff] (!%p138_p2)   ;;  %vm453_vm1 = vcmask (!%p138_p2), 1046528   ;;  %vm589_vm2 = vcmask (!%p138_p2), 1044480  }
   0x7   : > { %1825 = vmatprep.subr.bf16.mxu1 (!%p138_p2), %v1996_v1  ;;  %1806 = vmatpush3.bf16.msra.mxu0 (!%p138_p2), %v1995_v0  ;;  %v2001_v6 = vld [vmem:[%s2410_s1 + $0x58] sm:$0xff] (!%p138_p2)   ;;  %v2003_v8 = vld [vmem:[%s2410_s1 + $0x60] sm:$0xff] (!%p138_p2)   ;;  %v2005_v10 = vld [vmem:[%s2410_s1 + $0x68] sm:$0xff] (!%p138_p2)   ;;  %vm715_vm3 = vsmask.f32 (!%p138_p2), 4352  ;;  %vm985_vm4 = vcmask (!%p138_p2), 1045504  }
   0x8   : > { %1826 = vmatpush3.bf16.msra.mxu1 (!%p138_p2), %v1996_v1  ;;  %1807 = vmatprep.subr.bf16.mxu0 (!%p138_p2), %v1997_v2  ;;  %v2002_v7 = vld [vmem:[%s2410_s1 + $0x18] sm:$0xff] (!%p138_p2)   ;;  %v2004_v9 = vld [vmem:[%s2410_s1 + $0x20] sm:$0xff] (!%p138_p2)   ;;  %v2006_v13 = vld [vmem:[%s2410_s1 + $0x28] sm:$0xff] (!%p138_p2)   ;;  %vm1111_vm5 = vsmask.f32 (!%p138_p2), 5376  ;;  %vm1385_vm6 = vcmask (!%p138_p2), 1040384  }
   0x9   : > { %1827 = vmatprep.subr.bf16.mxu1 (!%p138_p2), %v1998_v3  ;;  %v2007_v16 = vld [vmem:[%s2410_s1 + $0x70] sm:$0xff] (!%p138_p2)   ;;  %v2009_v24 = vld [vmem:[%s2410_s1 + $0x78] sm:$0xff] (!%p138_p2)   ;;  %v2014_v28 = vld [vmem:[%s2410_s1 + $0x80] sm:$0xff] (!%p138_p2)   ;;  %vm1386_vm7 = vcmask (!%p138_p2), 1042434   ;;  %vm1388_vm9 = vcmask (!%p138_p2), 1044484   ;;  %vm1390_vm11 = vcmask (!%p138_p2), 1046534  }
   0xa   : > { %v2008_v20 = vld [vmem:[%s2410_s1 + $0x30] sm:$0xff] (!%p138_p2)   ;;  %v2010_v25 = vld [vmem:[%s2410_s1 + $0x38] sm:$0xff] (!%p138_p2)   ;;  %v2015_v30 = vld [vmem:[%s2410_s1 + $0xc0] sm:$0xff] (!%p138_p2)  }
   0xb   : > { %1808 = vmatpush3.bf16.msra.mxu0 (!%p138_p2), %v1997_v2  ;;  %v2016_v32 = vld [vmem:[%s2410_s1 + $0x88] sm:$0xff] (!%p138_p2)   ;;  %v2018_v34 = vld [vmem:[%s2410_s1 + $0x90] sm:$0xff] (!%p138_p2)   ;;  %v2020_v46 = vld [vmem:[%s2410_s1 + $0x98] sm:$0xff] (!%p138_p2)  }
   0xc   : > { %1828 = vmatpush3.bf16.msra.mxu1 (!%p138_p2), %v1998_v3  ;;  %1809 = vmatprep.subr.bf16.mxu0 (!%p138_p2), %v1999_v4  ;;  %v2017_v33 = vld [vmem:[%s2410_s1 + $0xc8] sm:$0xff] (!%p138_p2)   ;;  %v2019_v36 = vld [vmem:[%s2410_s1 + $0xd0] sm:$0xff] (!%p138_p2)   ;;  %v2021_v50 = vld [vmem:[%s2410_s1 + $0xd8] sm:$0xff] (!%p138_p2)  }
   0xd   : > { %s2414_s13 = smov (!%p161_p3, %s1484_s13), 1  ;;  %1829 = vmatprep.subr.bf16.mxu1 %v2000_v5  ;;  %v2022_v52 = vld [vmem:[%s2410_s1 + $0xa0] sm:$0xff]   ;;  %v2024_v54 = vld [vmem:[%s2410_s1 + $0xa8] sm:$0xff]   ;;  %v2026_v56 = vld [vmem:[%s2410_s1 + $0xb0] sm:$0xff]  }
   0xe   : > { %s1985_s30 = smul.u32 20, %s2414_s13  ;;  %v2023_v53 = vld [vmem:[%s2410_s1 + $0xe0] sm:$0xff]   ;;  %v2025_v55 = vld [vmem:[%s2410_s1 + $0xe8] sm:$0xff]   ;;  %v2027_v57 = vld [vmem:[%s2410_s1 + $0xf0] sm:$0xff]  }
   0xf   : > { %1810 = vmatpush3.bf16.msra.mxu0 %v1999_v4  ;;  %v2028_v62 = vld [vmem:[%s2410_s1 + $0xb8] sm:$0xff]   ;;  %vm1387_vm8 = vmor %vm1385_vm6, %vm1386_vm7 }
  0x10   : > { %1830 = vmatpush3.bf16.msra.mxu1 %v2000_v5  ;;  %1811 = vmatprep.subr.bf16.mxu0 %v2001_v6  ;;  %s2153_s10 = scalar_lea.vmem %s2409_s0, %s1985_s30  ;;  %v2029_v63 = vld [vmem:[%s2410_s1 + $0xf8] sm:$0xff]   ;;  %vm1389_vm10 = vmor %vm1387_vm8, %vm1388_vm9 }
  0x11   : > { %1831 = vmatprep.subr.bf16.mxu1 %v2002_v7  ;;  %v172_v11 = vld [vmem:[%s2153_s10] sm:$0xf]  ;;  %v173_v12 = vld [vmem:[%s2153_s10 + $0x4] sm:$0xf]  ;;  %v2164_v15 = vld [vmem:[%s2153_s10 + $0x8] ss:$0 sps:$4 sm:$0xff]  }
  0x12   : > { %v1508_v14 = vcombine.low %v172_v11, %v173_v12  ;;  %v226_v19 = vshll.u32 %v2164_v15, 16  ;;  %v230_v27 = vshrl.u32 %v2164_v15, 16  ;;  %v2013_v29 = vld [vmem:[%s2153_s10 + $0x8] ss:$0 sps:$4 sm:$0x77]   ;;  %v455_v38 = vrot.slane %v2164_v15, 1  ;;  %vm1391_vm12 = vmor %vm1389_vm10, %vm1390_vm11 }
  0x13   : > { %1812 = vmatpush3.bf16.msra.mxu0 %v2001_v6  ;;  %v432_v35 = vld [vmem:[%s2153_s10] sm:$0xe]  ;;  %v2203_v40 = vld [vmem:[%s2153_s10 + $0x4] sm:$0xf]  ;;  %v2206_v41 = vld [vmem:[%s2153_s10 + $0x8] sm:$0xf] }
  0x14   : > { %1832 = vmatpush3.bf16.msra.mxu1 %v2002_v7  ;;  %1813 = vmatprep.subr.bf16.mxu0 %v2003_v8  ;;  %v219_v17 = vshrl.u32 %v1508_v14, 16  ;;  %v221_v18 = vshll.u32 %v1508_v14, 16  ;;  %v228_v22 = vrot.slane %v226_v19, 1  ;;  %v1543_v37 = vcombine.low %v432_v35, %v173_v12  ;;  %v558_v39 = vld [vmem:[%s2153_s10] sm:$0x8]  ;;  %v2036_v11 = vld [vmem:[%s2410_s1 + $0x148] sm:$0xff]  }
  0x15   : > { %1833 = vmatprep.subr.bf16.mxu1 %v2004_v9  ;;  %1841 = vmatprep.mubr.bf16.mxu1 %v1508_v14  ;;  %v561_v42 = vld [vmem:[%s2153_s10 + $0xc] sm:$0x3]  ;;  %v1568_v44 = vcombine.low %v558_v39, %v2203_v40  ;;  %v2031_v6 = vld [vmem:[%s2410_s1 + $0x100] sm:$0xff]   ;;  %v2037_v14 = vld [vmem:[%s2410_s1 + $0x110] sm:$0xff]  }
  0x16   : > { %v223_v21 = vrot.slane %v221_v18, 1  ;;  %v232_v31 = vor.u32 %v230_v27, %v228_v22  ;;  %v454_v43 = vrot.slane %v1543_v37, 1  ;;  %v1569_v45 = vcombine.low %v2206_v41, %v561_v42  ;;  %v2240_v58 = vld [vmem:[%s2153_s10 + $0xc] sm:$0x7]  ;;  %v2034_v7 = vld [vmem:[%s2410_s1 + $0x140] sm:$0xff]   ;;  %v2038_v15 = vld [vmem:[%s2410_s1 + $0x150] sm:$0xff]  }
  0x17   : > { %1814 = vmatpush3.bf16.msra.mxu0 %v2003_v8  ;;  %v590_v48 = vrot.slane %v1568_v44, 3  ;;  %v717_v59 = vshrl.u32 %v1568_v44, 16  ;;  %v720_v60 = vshll.u32 %v1568_v44, 16  ;;  %v1594_v61 = vcombine.low %v2206_v41, %v2240_v58  ;;  %v2041_v18 = vld [vmem:[%s2410_s1 + $0x120] sm:$0xff]   ;;  %v956_v19 = vld [vmem:[%s2153_s10 + $0xc] sm:$0xf] }
  0x18   : > { %1834 = vmatpush3.bf16.msra.mxu1 %v2004_v9  ;;  %1815 = vmatprep.subr.bf16.mxu0 %v2005_v10  ;;  %v224_v23 = vor.u32 %v223_v21, %v219_v17  ;;  %v456_v47 = vsel %vm453_vm1, %v454_v43, %v455_v38  ;;  %v591_v49 = vrot.slane %v1569_v45, 3  ;;  %v2040_v17 = vld [vmem:[%s2410_s1 + $0x158] sm:$0xff]   ;;  %v2042_v21 = vld [vmem:[%s2410_s1 + $0x160] sm:$0xff]   ;;  %v2044_v27 = vld [vmem:[%s2410_s1 + $0x168] sm:$0xff]  }
  0x19   : > { %1835 = vmatprep.subr.bf16.mxu1 %v2006_v13  ;;  %v725_v0 = vshrl.u32 %v1594_v61, 16  ;;  %v728_v1 = vshll.u32 %v1594_v61, 16  ;;  %v719_v2 = vrot.slane %v717_v59, 3  ;;  %v722_v3 = vrot.slane %v720_v60, 4  ;;  %v957_v35 = vld [vmem:[%s2153_s10 + $0x10] sm:$0x1] }
  0x1a   : > { %v229_v26 = vsel %vm217_vm0, %v224_v23, %v228_v22  ;;  %v592_v51 = vsel %vm589_vm2, %v590_v48, %v591_v49  ;;  %v2043_v22 = vld [vmem:[%s2410_s1 + $0x128] sm:$0xff]   ;;  %v954_v23 = vld [vmem:[%s2153_s10 + $0x4] sm:$0xc]  ;;  %v1646_v42 = vcombine.low %v956_v19, %v957_v35  ;;  %v2057_v59 = vld [vmem:[%s2410_s1 + $0x1d0] sm:$0xff]  }
  0x1b   : > { %1816 = vmatpush3.bf16.msra.mxu0 %v2005_v10  ;;  %1821 = vmatprep.mubr.bf16.mxu0 %v229_v26  ;;  %v727_v4 = vrot.slane %v725_v0, 3  ;;  %v730_v5 = vrot.slane %v728_v1, 4  ;;  %v723_v8 = vor.u32 %v722_v3, %v719_v2  ;;  %v2035_v10 = vld [vmem:[%s2410_s1 + $0x108] sm:$0xff]   ;;  %v1230_v26 = vld [vmem:[%s2153_s10 + $0x4] sm:$0x8]  ;;  %v2058_v60 = vld [vmem:[%s2410_s1 + $0x198] sm:$0xff]  }
  0x1c   : > { %1836 = vmatpush3.bf16.msra.mxu1 %v2006_v13  ;;  %1817 = vmatprep.subr.bf16.mxu0 %v2007_v16  ;;  %v1619_v13 = vcombine.low %v2203_v40, %v2206_v41  ;;  %v2047_v40 = vld [vmem:[%s2410_s1 + $0x138] sm:$0xff]   ;;  %v2053_v48 = vld [vmem:[%s2410_s1 + $0x1c0] sm:$0xff]   ;;  %v2062_v0 = vld [vmem:[%s2410_s1 + $0x1a8] sm:$0xff]  }
  0x1d   : > { %1837 = vmatprep.subr.bf16.mxu1 %v2008_v20  ;;  %v2256_v9 = vor.u32 %v730_v5, %v727_v4  ;;  %v2048_v41 = vld [vmem:[%s2410_s1 + $0x178] sm:$0xff]   ;;  %v2063_v1 = vld [vmem:[%s2410_s1 + $0x1e8] sm:$0xff]   ;;  %v2064_v2 = vld [vmem:[%s2410_s1 + $0x1b0] sm:$0xff]  }
  0x1e   : > { %v2059_v61 = vld [vmem:[%s2410_s1 + $0x1d8] sm:$0xff]   ;;  %v2065_v3 = vld [vmem:[%s2410_s1 + $0x1f0] sm:$0xff]  }
  0x1f   : > { %1818 = vmatpush3.bf16.msra.mxu0 %v2007_v16  ;;  %v732_v12 = vsel %vm715_vm3, %v723_v8, %v2256_v9  ;;  %v2039_v16 = vld [vmem:[%s2410_s1 + $0x118] sm:$0xff]   ;;  %v2073_v8 = vld [vmem:[%s2410_s1 + $0x210] sm:$0xff]  }
  0x20   : > { %1838 = vmatpush3.bf16.msra.mxu1 %v2008_v20  ;;  %1819 = vmatprep.subr.bf16.mxu0 %v2009_v24  ;;  %v1090_v20 = vld [vmem:[%s2153_s10 + $0x10] sm:$0x3]  ;;  %v2066_v4 = vld [vmem:[%s2410_s1 + $0x1b8] sm:$0xff]  }
  0x21   : > { %1839 = vmatprep.subr.bf16.mxu1 %v2010_v25  ;;  %v2067_v5 = vld [vmem:[%s2410_s1 + $0x1f8] sm:$0xff]  }
  0x23   : > { %1820 = vmatpush3.bf16.msra.mxu0 %v2009_v24  ;;  %v2293_v24 = vcombine.low %v956_v19, %v1090_v20 }
  0x24   : > { %1840 = vmatpush3.bf16.msra.mxu1 %v2010_v25  ;;  %1845 = vmatprep.subr.bf16.mxu0 %v2014_v28  ;;  %v955_v25 = vld [vmem:[%s2153_s10 + $0x8] sm:$0xf]  ;;  %s1714_s10 = sshll.u32 %s2414_s13, 3 }
  0x25   : > { %1865 = vmatprep.subr.bf16.mxu1 %v2015_v30  ;;  %v1124_v39 = vshll.u32 %v2293_v24, 16  ;;  %s170_s19 = scalar_lea.vmem %s2412_s3, %s1714_s10 }
  0x26   : > { %1822 = vmatmul.mubr.bf16.vlgmr.msra.gmra.mrb[0].mxu0 %v232_v31 }
  0x27   : > { %1842 = vmatmul.mubr.bf16.vlgmr.msra.gmra.mrb[0].mxu1 %v2013_v29  ;;  %1846 = vmatpush3.bf16.msra.mxu0 %v2014_v28  ;;  %v1696_v28 = vcombine.low %v1230_v26, %v955_v25  ;;  %v1252_v29 = vrot.slane %v2293_v24, 3 }
  0x28   : > { %1866 = vmatpush3.bf16.msra.mxu1 %v2015_v30  ;;  %1847 = vmatprep.subr.bf16.mxu0 %v2016_v32  ;;  %v1645_v30 = vcombine.low %v954_v23, %v955_v25 }
  0x29   : > { %1867 = vmatprep.subr.bf16.mxu1 %v2017_v33  ;;  %1861 = vmatprep.mubr.bf16.mxu0 %v456_v47  ;;  %v1251_v31 = vrot.slane %v1696_v28, 3  ;;  %v2050_v47 = vld [vmem:[%s2410_s1 + $0x180] sm:$0xff]  }
  0x2a   : > { %1881 = vmatprep.mubr.bf16.mxu1 %v592_v51  ;;  %v1116_v37 = vshll.u32 %v1645_v30, 16  ;;  %v1620_v51 = vcombine.low %v2240_v58, %v2240_v58  ;;  %v2056_v58 = vld [vmem:[%s2410_s1 + $0x190] sm:$0xff]  }
  0x2b   : > { %1848 = vmatpush3.bf16.msra.mxu0 %v2016_v32  ;;  %v2045_v32 = vld [vmem:[%s2410_s1 + $0x130] sm:$0xff]  }
  0x2c   : > { %1868 = vmatpush3.bf16.msra.mxu1 %v2017_v33  ;;  %1849 = vmatprep.subr.bf16.mxu0 %v2018_v34  ;;  %v2046_v33 = vld [vmem:[%s2410_s1 + $0x170] sm:$0xff]   ;;  %v1118_v44 = vrot.slane %v1116_v37, 3 }
  0x2d   : > { %1869 = vmatprep.subr.bf16.mxu1 %v2019_v36 }
  0x2f   : > { %1850 = vmatpush3.bf16.msra.mxu0 %v2018_v34  ;;  %v2310_v34 = vsel %vm589_vm2, %v1251_v31, %v1252_v29 }
  0x30   : > { %1870 = vmatpush3.bf16.msra.mxu1 %v2019_v36  ;;  %1851 = vmatprep.subr.bf16.mxu0 %v2020_v46  ;;  %v1113_v36 = vshrl.u32 %v1645_v30, 16 }
  0x31   : > { %1871 = vmatprep.subr.bf16.mxu1 %v2021_v50 }
  0x32   : > { %v1115_v43 = vrot.slane %v1113_v36, 2 }
  0x33   : > { %1852 = vmatpush3.bf16.msra.mxu0 %v2020_v46  ;;  %v1126_v46 = vrot.slane %v1124_v39, 3 }
  0x34   : > { %1872 = vmatpush3.bf16.msra.mxu1 %v2021_v50  ;;  %1853 = vmatprep.subr.bf16.mxu0 %v2022_v52  ;;  %v987_v50 = vrot.slane %v1646_v42, 2 }
  0x35   : > { %1873 = vmatprep.subr.bf16.mxu1 %v2023_v53 }
  0x37   : > { %1854 = vmatpush3.bf16.msra.mxu0 %v2022_v52  ;;  %v1119_v52 = vor.u32 %v1118_v44, %v1115_v43 }
  0x38   : > { %1874 = vmatpush3.bf16.msra.mxu1 %v2023_v53  ;;  %1855 = vmatprep.subr.bf16.mxu0 %v2024_v54 }
  0x39   : > { %1875 = vmatprep.subr.bf16.mxu1 %v2025_v55 }
  0x3b   : > { %1856 = vmatpush3.bf16.msra.mxu0 %v2024_v54  ;;  %v2054_v54 = vld [vmem:[%s2410_s1 + $0x188] sm:$0xff]  }
  0x3c   : > { %1876 = vmatpush3.bf16.msra.mxu1 %v2025_v55  ;;  %1857 = vmatprep.subr.bf16.mxu0 %v2026_v56  ;;  %v2055_v55 = vld [vmem:[%s2410_s1 + $0x1c8] sm:$0xff]  }
  0x3d   : > { %1877 = vmatprep.subr.bf16.mxu1 %v2027_v57 }
  0x3f   : > { %1858 = vmatpush3.bf16.msra.mxu0 %v2026_v56 }
  0x40   : > { %1878 = vmatpush3.bf16.msra.mxu1 %v2027_v57  ;;  %1859 = vmatprep.subr.bf16.mxu0 %v2028_v62 }
  0x41   : > { %1879 = vmatprep.subr.bf16.mxu1 %v2029_v63 }
  0x43   : > { %1860 = vmatpush3.bf16.msra.mxu0 %v2028_v62  ;;  %v2060_v62 = vld [vmem:[%s2410_s1 + $0x1a0] sm:$0xff]  }
  0x44   : > { %1880 = vmatpush3.bf16.msra.mxu1 %v2029_v63  ;;  %1885 = vmatprep.subr.bf16.mxu0 %v2031_v6  ;;  %v2061_v63 = vld [vmem:[%s2410_s1 + $0x1e0] sm:$0xff]  }
  0x45   : > { %1905 = vmatprep.subr.bf16.mxu1 %v2034_v7 }
  0x46   : > { %1862 = vmatmul.mubr.bf16.vlgmr.msra.gmra.mrb[4].mxu0 %v455_v38  ;;  %v1121_v38 = vshrl.u32 %v2293_v24, 16 }
  0x47   : > { %1886 = vmatpush3.bf16.msra.mxu0 %v2031_v6  ;;  %1882 = vmatmul.mubr.bf16.vlgmr.msra.gmra.mrb[4].mxu1 %v591_v49  ;;  %v986_v49 = vrot.slane %v1645_v30, 2  ;;  %v2071_v6 = vld [vmem:[%s2410_s1 + $0x200] sm:$0xff]  }
  0x48   : > { %1906 = vmatpush3.bf16.msra.mxu1 %v2034_v7  ;;  %1887 = vmatprep.subr.bf16.mxu0 %v2035_v10  ;;  %v1123_v45 = vrot.slane %v1121_v38, 2  ;;  %v2072_v7 = vld [vmem:[%s2410_s1 + $0x208] sm:$0xff]  }
  0x49   : > { %1907 = vmatprep.subr.bf16.mxu1 %v2036_v11  ;;  %1901 = vmatprep.mubr.bf16.mxu0 %v732_v12  ;;  %v988_v56 = vsel %vm985_vm4, %v986_v49, %v987_v50  ;;  %v2077_v12 = vld [vmem:[%s2410_s1 + $0x230] sm:$0xff]  }
  0x4a   : > { %1921 = vmatprep.mubr.bf16.mxu1 %v1619_v13  ;;  %v1127_v53 = vor.u32 %v1126_v46, %v1123_v45  ;;  %v2078_v13 = vld [vmem:[%s2410_s1 + $0x238] sm:$0xff]  }
  0x4b   : > { %1888 = vmatpush3.bf16.msra.mxu0 %v2035_v10  ;;  %v2075_v10 = vld [vmem:[%s2410_s1 + $0x220] sm:$0xff]  }
  0x4c   : > { %1908 = vmatpush3.bf16.msra.mxu1 %v2036_v11  ;;  %1889 = vmatprep.subr.bf16.mxu0 %v2037_v14  ;;  %v1128_v57 = vsel %vm1111_vm5, %v1119_v52, %v1127_v53  ;;  %v2076_v11 = vld [vmem:[%s2410_s1 + $0x228] sm:$0xff]  }
  0x4d   : > { %1909 = vmatprep.subr.bf16.mxu1 %v2038_v15 }
  0x4f   : > { %1890 = vmatpush3.bf16.msra.mxu0 %v2037_v14 }
  0x50   : > { %1910 = vmatpush3.bf16.msra.mxu1 %v2038_v15  ;;  %1891 = vmatprep.subr.bf16.mxu0 %v2039_v16 }
  0x51   : > { %1911 = vmatprep.subr.bf16.mxu1 %v2040_v17 }
  0x53   : > { %1892 = vmatpush3.bf16.msra.mxu0 %v2039_v16 }
  0x54   : > { %1912 = vmatpush3.bf16.msra.mxu1 %v2040_v17  ;;  %1893 = vmatprep.subr.bf16.mxu0 %v2041_v18 }
  0x55   : > { %1913 = vmatprep.subr.bf16.mxu1 %v2042_v21 }
  0x57   : > { %1894 = vmatpush3.bf16.msra.mxu0 %v2041_v18 }
  0x58   : > { %1914 = vmatpush3.bf16.msra.mxu1 %v2042_v21  ;;  %1895 = vmatprep.subr.bf16.mxu0 %v2043_v22 }
  0x59   : > { %1915 = vmatprep.subr.bf16.mxu1 %v2044_v27 }
  0x5b   : > { %1896 = vmatpush3.bf16.msra.mxu0 %v2043_v22 }
  0x5c   : > { %1916 = vmatpush3.bf16.msra.mxu1 %v2044_v27  ;;  %1897 = vmatprep.subr.bf16.mxu0 %v2045_v32 }
  0x5d   : > { %1917 = vmatprep.subr.bf16.mxu1 %v2046_v33 }
  0x5f   : > { %1898 = vmatpush3.bf16.msra.mxu0 %v2045_v32 }
  0x60   : > { %1918 = vmatpush3.bf16.msra.mxu1 %v2046_v33  ;;  %1899 = vmatprep.subr.bf16.mxu0 %v2047_v40 }
  0x61   : > { %1919 = vmatprep.subr.bf16.mxu1 %v2048_v41 }
  0x63   : > { %1900 = vmatpush3.bf16.msra.mxu0 %v2047_v40 }
  0x64   : > { %1920 = vmatpush3.bf16.msra.mxu1 %v2048_v41  ;;  %1925 = vmatprep.subr.bf16.mxu0 %v2050_v47 }
  0x65   : > { %1945 = vmatprep.subr.bf16.mxu1 %v2053_v48 }
  0x66   : > { %1902 = vmatmul.mubr.bf16.vlgmr.msra.gmra.mrb[8].mxu0 %v2256_v9  ;;  %v2074_v9 = vld [vmem:[%s2410_s1 + $0x218] sm:$0xff]  }
  0x67   : > { %1926 = vmatpush3.bf16.msra.mxu0 %v2050_v47  ;;  %1922 = vmatmul.mubr.bf16.vlgmr.msra.gmra.mrb[8].mxu1 %v1620_v51 }
  0x68   : > { %1946 = vmatpush3.bf16.msra.mxu1 %v2053_v48  ;;  %1927 = vmatprep.subr.bf16.mxu0 %v2054_v54 }
  0x69   : > { %1947 = vmatprep.subr.bf16.mxu1 %v2055_v55  ;;  %1941 = vmatprep.mubr.bf16.mxu0 %v988_v56 }
  0x6a   : > { %1961 = vmatprep.mubr.bf16.mxu1 %v1128_v57 }
  0x6b   : > { %1928 = vmatpush3.bf16.msra.mxu0 %v2054_v54 }
  0x6c   : > { %1948 = vmatpush3.bf16.msra.mxu1 %v2055_v55  ;;  %1929 = vmatprep.subr.bf16.mxu0 %v2056_v58 }
  0x6d   : > { %1949 = vmatprep.subr.bf16.mxu1 %v2057_v59 }
  0x6f   : > { %1930 = vmatpush3.bf16.msra.mxu0 %v2056_v58 }
  0x70   : > { %1950 = vmatpush3.bf16.msra.mxu1 %v2057_v59  ;;  %1931 = vmatprep.subr.bf16.mxu0 %v2058_v60 }
  0x71   : > { %1951 = vmatprep.subr.bf16.mxu1 %v2059_v61 }
  0x73   : > { %1932 = vmatpush3.bf16.msra.mxu0 %v2058_v60 }
  0x74   : > { %1952 = vmatpush3.bf16.msra.mxu1 %v2059_v61  ;;  %1933 = vmatprep.subr.bf16.mxu0 %v2060_v62 }
  0x75   : > { %1953 = vmatprep.subr.bf16.mxu1 %v2061_v63 }
  0x77   : > { %1934 = vmatpush3.bf16.msra.mxu0 %v2060_v62 }
  0x78   : > { %1954 = vmatpush3.bf16.msra.mxu1 %v2061_v63  ;;  %1935 = vmatprep.subr.bf16.mxu0 %v2062_v0 }
  0x79   : > { %1955 = vmatprep.subr.bf16.mxu1 %v2063_v1 }
  0x7b   : > { %1936 = vmatpush3.bf16.msra.mxu0 %v2062_v0 }
  0x7c   : > { %1956 = vmatpush3.bf16.msra.mxu1 %v2063_v1  ;;  %1937 = vmatprep.subr.bf16.mxu0 %v2064_v2 }
  0x7d   : > { %1957 = vmatprep.subr.bf16.mxu1 %v2065_v3 }
  0x7f   : > { %1938 = vmatpush3.bf16.msra.mxu0 %v2064_v2 }
  0x80   : > { %1958 = vmatpush3.bf16.msra.mxu1 %v2065_v3  ;;  %1939 = vmatprep.subr.bf16.mxu0 %v2066_v4  ;;  %v2088_v3 = vmov 1983009808  }
  0x81   : > { %1959 = vmatprep.subr.bf16.mxu1 %v2067_v5 }
  0x83   : > { %1940 = vmatpush3.bf16.msra.mxu0 %v2066_v4  ;;  %v1371_v4 = vunpack.c.l.s4 %v2088_v3 }
  0x84   : > { %1960 = vmatpush3.bf16.msra.mxu1 %v2067_v5  ;;  %1965 = vmatprep.subr.bf16.mxu0 %v2071_v6  ;;  %v1373_v5 = vlaneseq }
  0x86   : > { %1942 = vmatmul.mubr.bf16.vlgmr.msra.gmra.mrb[12].mxu0 %v987_v50 }
  0x87   : > { %1966 = vmatpush3.bf16.msra.mxu0 %v2071_v6  ;;  %1962 = vmatmul.mubr.bf16.vlgmr.msra.gmra.mrb[12].mxu1 %v1127_v53  ;;  %v1372_v6 = vunpack.c.0.s8 %v1371_v4 }
  0x88   : > { %1967 = vmatprep.subr.bf16.mxu0 %v2072_v7  ;;  %1981 = vmatprep.mubr.bf16.mxu0 %v2310_v34 }
  0x8b   : > { %1968 = vmatpush3.bf16.msra.mxu0 %v2072_v7  ;;  %v1374_v7 = vshrl.u32 %v1373_v5, 7 }
  0x8c   : > { %1969 = vmatprep.subr.bf16.mxu0 %v2073_v8 }
  0x8f   : > { %1970 = vmatpush3.bf16.msra.mxu0 %v2073_v8 }
  0x90   : > { %1971 = vmatprep.subr.bf16.mxu0 %v2074_v9 }
  0x93   : > { %1972 = vmatpush3.bf16.msra.mxu0 %v2074_v9  ;;  %v1705_v9 = vld [vmem:[%s2411_s2] ss:$0 sm:$0xff] }
  0x94   : > { %1973 = vmatprep.subr.bf16.mxu0 %v2075_v10 }
  0x97   : > { %1974 = vmatpush3.bf16.msra.mxu0 %v2075_v10 }
  0x98   : > { %1975 = vmatprep.subr.bf16.mxu0 %v2076_v11 }
  0x9b   : > { %1976 = vmatpush3.bf16.msra.mxu0 %v2076_v11 }
  0x9c   : > { %1977 = vmatprep.subr.bf16.mxu0 %v2077_v12 }
  0x9f   : > { %1978 = vmatpush3.bf16.msra.mxu0 %v2077_v12 }
  0xa0   : > { %1979 = vmatprep.subr.bf16.mxu0 %v2078_v13 }
  0xa3   : > { %1980 = vmatpush3.bf16.msra.mxu0 %v2078_v13 }
  0xa6   : > { %1982 = vmatmul.mubr.bf16.vlgmr.msra.gmra.mrb[16].mxu0 %v1252_v29 }
  0xf9   : > { %v1823_v14 = vpop.f32.mrb[0].mxu0 }
  0xfa   : > { %v1843_v15 = vpop.f32.mrb[0].mxu1  ;;  %v317_v16 = vpop.f32.mrb[1].mxu0 }
  0xfb   : > { %v427_v17 = vadd.f32 %v1843_v15, %v1823_v14  ;;  %v418_v18 = vpop.f32.mrb[1].mxu1  ;;  %v1824_v19 = vpop.f32.mrb[2].mxu0  ;;  %v1375_v15 = vsub.s32 %v1372_v6, %v1374_v7 }
  0xfc   : > { %v419_v20 = vadd.f32 %v418_v18, %v317_v16  ;;  %v1844_v21 = vpop.f32.mrb[2].mxu1  ;;  %v320_v22 = vpop.f32.mrb[3].mxu0 }
  0xfd   : > { %v421_v23 = vpop.f32.mrb[3].mxu1 }
  0xfe   : > { %v422_v25 = vadd.f32 %v421_v23, %v320_v22 }
 0x119   : > { %v1863_v26 = vpop.f32.mrb[4].mxu0 }
 0x11a   : > { %v557_v27 = vadd.f32 %v1863_v26, %v427_v17  ;;  %v541_v28 = vpop.f32.mrb[5].mxu0  ;;  %v1883_v30 = vpop.f32.mrb[4].mxu1 }
 0x11b   : > { %v555_v31 = vadd.f32 %v541_v28, %v419_v20  ;;  %v1864_v32 = vpop.f32.mrb[6].mxu0  ;;  %v677_v33 = vpop.f32.mrb[5].mxu1 }
 0x11c   : > { %v693_v24 = vadd.f32 %v1883_v30, %v557_v27  ;;  %v544_v29 = vpop.f32.mrb[7].mxu0  ;;  %v1884_v34 = vpop.f32.mrb[6].mxu1 }
 0x11d   : > { %v556_v35 = vadd.f32 %v544_v29, %v422_v25  ;;  %v691_v36 = vadd.f32 %v677_v33, %v555_v31  ;;  %v680_v37 = vpop.f32.mrb[7].mxu1 }
 0x11f   : > { %v692_v38 = vadd.f32 %v680_v37, %v556_v35 }
 0x139   : > { %v1903_v39 = vpop.f32.mrb[8].mxu0 }
 0x13a   : > { %v833_v40 = vadd.f32 %v1903_v39, %v693_v24  ;;  %v817_v41 = vpop.f32.mrb[9].mxu0  ;;  %v1923_v42 = vpop.f32.mrb[8].mxu1 }
 0x13b   : > { %v831_v43 = vadd.f32 %v817_v41, %v691_v36  ;;  %v1904_v44 = vpop.f32.mrb[10].mxu0  ;;  %v937_v45 = vpop.f32.mrb[9].mxu1 }
 0x13c   : > { %v953_v46 = vadd.f32 %v1923_v42, %v833_v40  ;;  %v820_v47 = vpop.f32.mrb[11].mxu0  ;;  %v1924_v48 = vpop.f32.mrb[10].mxu1 }
 0x13d   : > { %v832_v49 = vadd.f32 %v820_v47, %v692_v38  ;;  %v951_v50 = vadd.f32 %v937_v45, %v831_v43  ;;  %v940_v51 = vpop.f32.mrb[11].mxu1 }
 0x13f   : > { %v952_v52 = vadd.f32 %v940_v51, %v832_v49 }
 0x159   : > { %v1943_v53 = vpop.f32.mrb[12].mxu0 }
 0x15a   : > { %v1089_v54 = vadd.f32 %v1943_v53, %v953_v46  ;;  %v1073_v55 = vpop.f32.mrb[13].mxu0  ;;  %v1963_v56 = vpop.f32.mrb[12].mxu1 }
 0x15b   : > { %v1087_v57 = vadd.f32 %v1073_v55, %v951_v50  ;;  %v1944_v58 = vpop.f32.mrb[14].mxu0  ;;  %v1213_v59 = vpop.f32.mrb[13].mxu1 }
 0x15c   : > { %v1229_v60 = vadd.f32 %v1963_v56, %v1089_v54  ;;  %v1076_v61 = vpop.f32.mrb[15].mxu0  ;;  %v1964_v62 = vpop.f32.mrb[14].mxu1 }
 0x15d   : > { %v1088_v63 = vadd.f32 %v1076_v61, %v952_v52  ;;  %v1227_v0 = vadd.f32 %v1213_v59, %v1087_v57  ;;  %v1216_v1 = vpop.f32.mrb[15].mxu1 }
 0x15f   : > { %v1228_v2 = vadd.f32 %v1216_v1, %v1088_v63 }
 0x179   : > { %v1983_v8 = vpop.f32.mrb[16].mxu0 }
 0x17a   : > { %v1354_v10 = vadd.f32 %v1983_v8, %v1229_v60  ;;  %v1338_v11 = vpop.f32.mrb[17].mxu0 }
 0x17b   : > { %v1352_v12 = vadd.f32 %v1338_v11, %v1227_v0  ;;  %v1984_v13 = vpop.f32.mrb[18].mxu0 }
 0x17c   : > { %v1364_v14 = vadd.f32 %v1705_v9, %v1354_v10  ;;  %v1341_v16 = vpop.f32.mrb[19].mxu0 }
 0x17d   : > { %v1362_v17 = vadd.f32 %v1705_v9, %v1352_v12  ;;  %v1353_v18 = vadd.f32 %v1341_v16, %v1228_v2 }
 0x17e   : > { %v1412_v19 = vpack.c.bf16 %v1364_v14, %v1364_v14 }
 0x17f   : > { %v1365_v20 = vpack.c.bf16 %v1362_v17, %v1362_v17  ;;  %v1363_v21 = vadd.f32 %v1705_v9, %v1353_v18 }
 0x180   : > { %v1420_v22 = vrot.slane %v1412_v19, %v1375_v15 }
 0x181   : > { %1366 = vst [vmem:[%s170_s19] sm:$0x3] %v1365_v20  ;;  %v1367_v23 = vpack.c.bf16 %v1363_v21, %v1362_v17  ;;  %v1706_v25 = vpack.c.bf16 %v1363_v21, %v1363_v21 }
 0x182   : > { %v1421_v26 = vcombine.high %v1420_v22, %v1420_v22  ;;  %v1710_v30 = vrot.slane %v1420_v22, 9 }
 0x183   : > { %v1376_v27 = vrot.slane %v1367_v23, %v1375_v15  ;;  %v1383_v28 = vrot.slane %v1706_v25, %v1375_v15 }
 0x184   : > { %v1424_v31 = vrot.slane %v1421_v26, 7 }
 0x185   : > { %v1384_v32 = vcombine.high %v1376_v27, %v1376_v27  ;;  %v1408_v33 = vcombine.high %v1383_v28, %v1383_v28  ;;  %v1394_v34 = vrot.slane %v1383_v28, 7 }
 0x186   : > { %v1425_v24 = vsel %vm1391_vm12, %v1710_v30, %v1424_v31 }
 0x187   : > { %1711 = vst [vmem:[%s170_s19 + $0x6] sm:$0x3] %v1425_v24  ;;  %v1707_v29 = vrot.slane %v1384_v32, 9  ;;  %1709 = vst [vmem:[%s170_s19 + $0x4] sm:$0x3] %v1408_v33 }
 0x189   : > { %v1395_v35 = vsel %vm1391_vm12, %v1707_v29, %v1394_v34 }
 0x18a   : > { %1708 = vst [vmem:[%s170_s19 + $0x2] sm:$0x3] %v1395_v35 }
 0x18b PF: > { %s13_s12 = sadd.s32 1, %s2086_s12  }
 0x18c   : > { %p10_p4 = scmp.ge.s32.totalorder %s13_s12, 4  }
 0x18e   :  { %12 = sbr.rel (!%p10_p4) target bundleno = 1 (0x1), region = 73 }

// kernel: sdxl_forward.38
= control target key start
LH: loop header
LB: loop body
LE: loop exit
PB: predicated region body
PF: predicated region fallthrough
CT: control target
= control target key end

     0   :  { %s2204_s15 = smov 0   ;;  %s2511_s0 = inlined_call_operand.vmem [shape: bf16[2,36,128], index: 0, kind: input, shape index: {}]   ;;  %s2512_s1 = inlined_call_operand.vmem [shape: bf16[9,128,128], index: 1, kind: input, shape index: {}]   ;;  %s2513_s2 = inlined_call_operand.vmem [shape: f32[1,128], index: 2, kind: input, shape index: {}]   ;;  %s2514_s3 = inlined_call_operand.vmem [shape: bf16[2,4,4,128], index: 3, kind: input, shape index: {}]   ;;  %s2515_s4 = inlined_call_operand.vmem [shape: bf16[2,4,4,128], index: 4, kind: output, shape index: {}]  }
   0x1 LB: > { %s1568_s16 = sadd.s32 4294967295, %s2176_s15   ;;  %p1572_p0 = scmp.ge.s32.totalorder %s2176_s15, 1  ;;  %s2176_s15 = sphi %s2204_s15, %s14_s15  }
   0x2   : > { %p172_p1 = scmp.lt.s32.totalorder %s2176_s15, 3 }
   0x4   : > { %p173_p2 = pnand %p1572_p0, %p172_p1 }
   0x5   : > { %v2085_v0 = vld [vmem:[%s2512_s1 + $0x40] sm:$0xff] (!%p173_p2)   ;;  %p203_p3 = scmp.lt.s32.totalorder (!%p173_p2), %s1568_s16, 1  ;;  %v2087_v2 = vld [vmem:[%s2512_s1 + $0x48] sm:$0xff] (!%p173_p2)   ;;  %v2089_v4 = vld [vmem:[%s2512_s1 + $0x50] sm:$0xff] (!%p173_p2)   ;;  %vm264_vm0 = vsmask.f32 (!%p173_p2), 7424 }
   0x6   : > { %176 = sbr.rel (%p173_p2) target bundleno = 397 (0x18d), region = 36  ;;  %v2086_v1 = vld [vmem:[%s2512_s1] sm:$0xff] (!%p173_p2)   ;;  %1895 = vmatprep.subr.bf16.mxu0 (!%p173_p2), %v2085_v0  ;;  %v2088_v3 = vld [vmem:[%s2512_s1 + $0x8] sm:$0xff] (!%p173_p2)   ;;  %v2090_v5 = vld [vmem:[%s2512_s1 + $0x10] sm:$0xff] (!%p173_p2)   ;;  %vm500_vm1 = vcmask (!%p173_p2), 1046528   ;;  %vm636_vm2 = vcmask (!%p173_p2), 1044480  }
   0x7   : > { %1915 = vmatprep.subr.bf16.mxu1 (!%p173_p2), %v2086_v1  ;;  %1896 = vmatpush3.bf16.msra.mxu0 (!%p173_p2), %v2085_v0  ;;  %v2091_v6 = vld [vmem:[%s2512_s1 + $0x58] sm:$0xff] (!%p173_p2)   ;;  %v2093_v8 = vld [vmem:[%s2512_s1 + $0x60] sm:$0xff] (!%p173_p2)   ;;  %v2095_v10 = vld [vmem:[%s2512_s1 + $0x68] sm:$0xff] (!%p173_p2)   ;;  %vm762_vm3 = vsmask.f32 (!%p173_p2), 4352  ;;  %vm1032_vm4 = vcmask (!%p173_p2), 1045504  }
   0x8   : > { %1916 = vmatpush3.bf16.msra.mxu1 (!%p173_p2), %v2086_v1  ;;  %1897 = vmatprep.subr.bf16.mxu0 (!%p173_p2), %v2087_v2  ;;  %v2092_v7 = vld [vmem:[%s2512_s1 + $0x18] sm:$0xff] (!%p173_p2)   ;;  %v2094_v9 = vld [vmem:[%s2512_s1 + $0x20] sm:$0xff] (!%p173_p2)   ;;  %v2096_v13 = vld [vmem:[%s2512_s1 + $0x28] sm:$0xff] (!%p173_p2)   ;;  %vm1158_vm5 = vsmask.f32 (!%p173_p2), 5376  ;;  %vm1443_vm6 = vcmask (!%p173_p2), 1040384  }
   0x9   : > { %1917 = vmatprep.subr.bf16.mxu1 (!%p173_p2), %v2088_v3  ;;  %v2097_v16 = vld [vmem:[%s2512_s1 + $0x70] sm:$0xff] (!%p173_p2)   ;;  %v2099_v24 = vld [vmem:[%s2512_s1 + $0x78] sm:$0xff] (!%p173_p2)   ;;  %v2104_v28 = vld [vmem:[%s2512_s1 + $0x80] sm:$0xff] (!%p173_p2)   ;;  %vm1444_vm7 = vcmask (!%p173_p2), 1042434   ;;  %vm1446_vm9 = vcmask (!%p173_p2), 1044484   ;;  %vm1448_vm11 = vcmask (!%p173_p2), 1046534  }
   0xa   : > { %v2098_v20 = vld [vmem:[%s2512_s1 + $0x30] sm:$0xff] (!%p173_p2)   ;;  %v2100_v25 = vld [vmem:[%s2512_s1 + $0x38] sm:$0xff] (!%p173_p2)   ;;  %v2105_v30 = vld [vmem:[%s2512_s1 + $0xc0] sm:$0xff] (!%p173_p2)  }
   0xb   : > { %1898 = vmatpush3.bf16.msra.mxu0 (!%p173_p2), %v2087_v2  ;;  %v2106_v32 = vld [vmem:[%s2512_s1 + $0x88] sm:$0xff] (!%p173_p2)   ;;  %v2108_v34 = vld [vmem:[%s2512_s1 + $0x90] sm:$0xff] (!%p173_p2)   ;;  %v2110_v46 = vld [vmem:[%s2512_s1 + $0x98] sm:$0xff] (!%p173_p2)  }
   0xc   : > { %1918 = vmatpush3.bf16.msra.mxu1 (!%p173_p2), %v2088_v3  ;;  %1899 = vmatprep.subr.bf16.mxu0 (!%p173_p2), %v2089_v4  ;;  %v2107_v33 = vld [vmem:[%s2512_s1 + $0xc8] sm:$0xff] (!%p173_p2)   ;;  %v2109_v36 = vld [vmem:[%s2512_s1 + $0xd0] sm:$0xff] (!%p173_p2)   ;;  %v2111_v50 = vld [vmem:[%s2512_s1 + $0xd8] sm:$0xff] (!%p173_p2)  }
   0xd   : > { %s2517_s16 = smov (!%p203_p3, %s1568_s16), 1  ;;  %1919 = vmatprep.subr.bf16.mxu1 %v2090_v5  ;;  %v2112_v52 = vld [vmem:[%s2512_s1 + $0xa0] sm:$0xff]   ;;  %v2114_v54 = vld [vmem:[%s2512_s1 + $0xa8] sm:$0xff]   ;;  %v2116_v56 = vld [vmem:[%s2512_s1 + $0xb0] sm:$0xff]  }
   0xe   : > { %s2075_s7 = smul.u32 20, %s2517_s16  ;;  %v2113_v53 = vld [vmem:[%s2512_s1 + $0xe0] sm:$0xff]   ;;  %v2115_v55 = vld [vmem:[%s2512_s1 + $0xe8] sm:$0xff]   ;;  %v2117_v57 = vld [vmem:[%s2512_s1 + $0xf0] sm:$0xff]  }
   0xf   : > { %1900 = vmatpush3.bf16.msra.mxu0 %v2089_v4  ;;  %v2118_v62 = vld [vmem:[%s2512_s1 + $0xb8] sm:$0xff]   ;;  %vm1445_vm8 = vmor %vm1443_vm6, %vm1444_vm7 }
  0x10   : > { %1920 = vmatpush3.bf16.msra.mxu1 %v2090_v5  ;;  %1901 = vmatprep.subr.bf16.mxu0 %v2091_v6  ;;  %s2248_s14 = scalar_lea.vmem %s2511_s0, %s2075_s7  ;;  %v2119_v63 = vld [vmem:[%s2512_s1 + $0xf8] sm:$0xff]   ;;  %vm1447_vm10 = vmor %vm1445_vm8, %vm1446_vm9 }
  0x11   : > { %1921 = vmatprep.subr.bf16.mxu1 %v2092_v7  ;;  %v219_v11 = vld [vmem:[%s2248_s14] sm:$0xf]  ;;  %v220_v12 = vld [vmem:[%s2248_s14 + $0x4] sm:$0xf]  ;;  %v2259_v15 = vld [vmem:[%s2248_s14 + $0x8] ss:$0 sps:$4 sm:$0xff]  }
  0x12   : > { %v1594_v14 = vcombine.low %v219_v11, %v220_v12  ;;  %v273_v19 = vshll.u32 %v2259_v15, 16  ;;  %v277_v27 = vshrl.u32 %v2259_v15, 16  ;;  %v2103_v29 = vld [vmem:[%s2248_s14 + $0x8] ss:$0 sps:$4 sm:$0x77]   ;;  %v502_v38 = vrot.slane %v2259_v15, 1  ;;  %vm1449_vm12 = vmor %vm1447_vm10, %vm1448_vm11 }
  0x13   : > { %1902 = vmatpush3.bf16.msra.mxu0 %v2091_v6  ;;  %v479_v35 = vld [vmem:[%s2248_s14] sm:$0xe]  ;;  %v2298_v40 = vld [vmem:[%s2248_s14 + $0x4] sm:$0xf]  ;;  %v2301_v41 = vld [vmem:[%s2248_s14 + $0x8] sm:$0xf] }
  0x14   : > { %1922 = vmatpush3.bf16.msra.mxu1 %v2092_v7  ;;  %1903 = vmatprep.subr.bf16.mxu0 %v2093_v8  ;;  %v266_v17 = vshrl.u32 %v1594_v14, 16  ;;  %v268_v18 = vshll.u32 %v1594_v14, 16  ;;  %v275_v22 = vrot.slane %v273_v19, 1  ;;  %v1629_v37 = vcombine.low %v479_v35, %v220_v12  ;;  %v605_v39 = vld [vmem:[%s2248_s14] sm:$0x8]  ;;  %v2126_v11 = vld [vmem:[%s2512_s1 + $0x148] sm:$0xff]  }
  0x15   : > { %1923 = vmatprep.subr.bf16.mxu1 %v2094_v9  ;;  %1931 = vmatprep.mubr.bf16.mxu1 %v1594_v14  ;;  %v608_v42 = vld [vmem:[%s2248_s14 + $0xc] sm:$0x3]  ;;  %v1654_v44 = vcombine.low %v605_v39, %v2298_v40  ;;  %v2121_v6 = vld [vmem:[%s2512_s1 + $0x100] sm:$0xff]   ;;  %v2127_v14 = vld [vmem:[%s2512_s1 + $0x110] sm:$0xff]  }
  0x16   : > { %v270_v21 = vrot.slane %v268_v18, 1  ;;  %v279_v31 = vor.u32 %v277_v27, %v275_v22  ;;  %v501_v43 = vrot.slane %v1629_v37, 1  ;;  %v1655_v45 = vcombine.low %v2301_v41, %v608_v42  ;;  %v2335_v58 = vld [vmem:[%s2248_s14 + $0xc] sm:$0x7]  ;;  %v2124_v7 = vld [vmem:[%s2512_s1 + $0x140] sm:$0xff]   ;;  %v2128_v15 = vld [vmem:[%s2512_s1 + $0x150] sm:$0xff]  }
  0x17   : > { %1904 = vmatpush3.bf16.msra.mxu0 %v2093_v8  ;;  %v637_v48 = vrot.slane %v1654_v44, 3  ;;  %v764_v59 = vshrl.u32 %v1654_v44, 16  ;;  %v767_v60 = vshll.u32 %v1654_v44, 16  ;;  %v1680_v61 = vcombine.low %v2301_v41, %v2335_v58  ;;  %v2131_v18 = vld [vmem:[%s2512_s1 + $0x120] sm:$0xff]   ;;  %v1003_v19 = vld [vmem:[%s2248_s14 + $0xc] sm:$0xf] }
  0x18   : > { %1924 = vmatpush3.bf16.msra.mxu1 %v2094_v9  ;;  %1905 = vmatprep.subr.bf16.mxu0 %v2095_v10  ;;  %v271_v23 = vor.u32 %v270_v21, %v266_v17  ;;  %v503_v47 = vsel %vm500_vm1, %v501_v43, %v502_v38  ;;  %v638_v49 = vrot.slane %v1655_v45, 3  ;;  %v2130_v17 = vld [vmem:[%s2512_s1 + $0x158] sm:$0xff]   ;;  %v2132_v21 = vld [vmem:[%s2512_s1 + $0x160] sm:$0xff]   ;;  %v2134_v27 = vld [vmem:[%s2512_s1 + $0x168] sm:$0xff]  }
  0x19   : > { %1925 = vmatprep.subr.bf16.mxu1 %v2096_v13  ;;  %v772_v0 = vshrl.u32 %v1680_v61, 16  ;;  %v775_v1 = vshll.u32 %v1680_v61, 16  ;;  %v766_v2 = vrot.slane %v764_v59, 3  ;;  %v769_v3 = vrot.slane %v767_v60, 4  ;;  %v1004_v35 = vld [vmem:[%s2248_s14 + $0x10] sm:$0x1] }
  0x1a   : > { %v276_v26 = vsel %vm264_vm0, %v271_v23, %v275_v22  ;;  %v639_v51 = vsel %vm636_vm2, %v637_v48, %v638_v49  ;;  %v2133_v22 = vld [vmem:[%s2512_s1 + $0x128] sm:$0xff]   ;;  %v1001_v23 = vld [vmem:[%s2248_s14 + $0x4] sm:$0xc]  ;;  %v1732_v42 = vcombine.low %v1003_v19, %v1004_v35  ;;  %v2147_v59 = vld [vmem:[%s2512_s1 + $0x1d0] sm:$0xff]  }
  0x1b   : > { %1906 = vmatpush3.bf16.msra.mxu0 %v2095_v10  ;;  %1911 = vmatprep.mubr.bf16.mxu0 %v276_v26  ;;  %v774_v4 = vrot.slane %v772_v0, 3  ;;  %v777_v5 = vrot.slane %v775_v1, 4  ;;  %v770_v8 = vor.u32 %v769_v3, %v766_v2  ;;  %v2125_v10 = vld [vmem:[%s2512_s1 + $0x108] sm:$0xff]   ;;  %v1277_v26 = vld [vmem:[%s2248_s14 + $0x4] sm:$0x8]  ;;  %v2148_v60 = vld [vmem:[%s2512_s1 + $0x198] sm:$0xff]  }
  0x1c   : > { %1926 = vmatpush3.bf16.msra.mxu1 %v2096_v13  ;;  %1907 = vmatprep.subr.bf16.mxu0 %v2097_v16  ;;  %v1705_v13 = vcombine.low %v2298_v40, %v2301_v41  ;;  %v2137_v40 = vld [vmem:[%s2512_s1 + $0x138] sm:$0xff]   ;;  %v2143_v48 = vld [vmem:[%s2512_s1 + $0x1c0] sm:$0xff]   ;;  %v2152_v0 = vld [vmem:[%s2512_s1 + $0x1a8] sm:$0xff]  }
  0x1d   : > { %1927 = vmatprep.subr.bf16.mxu1 %v2098_v20  ;;  %v2351_v9 = vor.u32 %v777_v5, %v774_v4  ;;  %v2138_v41 = vld [vmem:[%s2512_s1 + $0x178] sm:$0xff]   ;;  %v2153_v1 = vld [vmem:[%s2512_s1 + $0x1e8] sm:$0xff]   ;;  %v2154_v2 = vld [vmem:[%s2512_s1 + $0x1b0] sm:$0xff]  }
  0x1e   : > { %v2149_v61 = vld [vmem:[%s2512_s1 + $0x1d8] sm:$0xff]   ;;  %v2155_v3 = vld [vmem:[%s2512_s1 + $0x1f0] sm:$0xff]  }
  0x1f   : > { %1908 = vmatpush3.bf16.msra.mxu0 %v2097_v16  ;;  %v779_v12 = vsel %vm762_vm3, %v770_v8, %v2351_v9  ;;  %v2129_v16 = vld [vmem:[%s2512_s1 + $0x118] sm:$0xff]   ;;  %v2163_v8 = vld [vmem:[%s2512_s1 + $0x210] sm:$0xff]  }
  0x20   : > { %1928 = vmatpush3.bf16.msra.mxu1 %v2098_v20  ;;  %1909 = vmatprep.subr.bf16.mxu0 %v2099_v24  ;;  %v1137_v20 = vld [vmem:[%s2248_s14 + $0x10] sm:$0x3]  ;;  %v2156_v4 = vld [vmem:[%s2512_s1 + $0x1b8] sm:$0xff]  }
  0x21   : > { %1929 = vmatprep.subr.bf16.mxu1 %v2100_v25  ;;  %v2157_v5 = vld [vmem:[%s2512_s1 + $0x1f8] sm:$0xff]  }
  0x23   : > { %1910 = vmatpush3.bf16.msra.mxu0 %v2099_v24  ;;  %v2388_v24 = vcombine.low %v1003_v19, %v1137_v20 }
  0x24   : > { %1930 = vmatpush3.bf16.msra.mxu1 %v2100_v25  ;;  %1935 = vmatprep.subr.bf16.mxu0 %v2104_v28  ;;  %v1002_v25 = vld [vmem:[%s2248_s14 + $0x8] sm:$0xf]  ;;  %s1803_s14 = sshll.u32 %s2517_s16, 3 }
  0x25   : > { %1955 = vmatprep.subr.bf16.mxu1 %v2105_v30  ;;  %v1171_v39 = vshll.u32 %v2388_v24, 16  ;;  %s212_s26 = scalar_lea.vmem %s2514_s3, %s1803_s14  ;;  %s217_s5 = scalar_lea.vmem %s2515_s4, %s1803_s14 }
  0x26   : > { %1912 = vmatmul.mubr.bf16.vlgmr.msra.gmra.mrb[0].mxu0 %v279_v31 }
  0x27   : > { %1932 = vmatmul.mubr.bf16.vlgmr.msra.gmra.mrb[0].mxu1 %v2103_v29  ;;  %1936 = vmatpush3.bf16.msra.mxu0 %v2104_v28  ;;  %v1782_v28 = vcombine.low %v1277_v26, %v1002_v25  ;;  %v1299_v29 = vrot.slane %v2388_v24, 3 }
  0x28   : > { %1956 = vmatpush3.bf16.msra.mxu1 %v2105_v30  ;;  %1937 = vmatprep.subr.bf16.mxu0 %v2106_v32  ;;  %v1731_v30 = vcombine.low %v1001_v23, %v1002_v25 }
  0x29   : > { %1957 = vmatprep.subr.bf16.mxu1 %v2107_v33  ;;  %1951 = vmatprep.mubr.bf16.mxu0 %v503_v47  ;;  %v1298_v31 = vrot.slane %v1782_v28, 3  ;;  %v2140_v47 = vld [vmem:[%s2512_s1 + $0x180] sm:$0xff]  }
  0x2a   : > { %1971 = vmatprep.mubr.bf16.mxu1 %v639_v51  ;;  %v1163_v37 = vshll.u32 %v1731_v30, 16  ;;  %v1706_v51 = vcombine.low %v2335_v58, %v2335_v58  ;;  %v2146_v58 = vld [vmem:[%s2512_s1 + $0x190] sm:$0xff]  }
  0x2b   : > { %1938 = vmatpush3.bf16.msra.mxu0 %v2106_v32  ;;  %v2135_v32 = vld [vmem:[%s2512_s1 + $0x130] sm:$0xff]  }
  0x2c   : > { %1958 = vmatpush3.bf16.msra.mxu1 %v2107_v33  ;;  %1939 = vmatprep.subr.bf16.mxu0 %v2108_v34  ;;  %v2136_v33 = vld [vmem:[%s2512_s1 + $0x170] sm:$0xff]   ;;  %v1165_v44 = vrot.slane %v1163_v37, 3 }
  0x2d   : > { %1959 = vmatprep.subr.bf16.mxu1 %v2109_v36 }
  0x2f   : > { %1940 = vmatpush3.bf16.msra.mxu0 %v2108_v34  ;;  %v2405_v34 = vsel %vm636_vm2, %v1298_v31, %v1299_v29 }
  0x30   : > { %1960 = vmatpush3.bf16.msra.mxu1 %v2109_v36  ;;  %1941 = vmatprep.subr.bf16.mxu0 %v2110_v46  ;;  %v1160_v36 = vshrl.u32 %v1731_v30, 16 }
  0x31   : > { %1961 = vmatprep.subr.bf16.mxu1 %v2111_v50 }
  0x32   : > { %v1162_v43 = vrot.slane %v1160_v36, 2 }
  0x33   : > { %1942 = vmatpush3.bf16.msra.mxu0 %v2110_v46  ;;  %v1173_v46 = vrot.slane %v1171_v39, 3 }
  0x34   : > { %1962 = vmatpush3.bf16.msra.mxu1 %v2111_v50  ;;  %1943 = vmatprep.subr.bf16.mxu0 %v2112_v52  ;;  %v1034_v50 = vrot.slane %v1732_v42, 2 }
  0x35   : > { %1963 = vmatprep.subr.bf16.mxu1 %v2113_v53 }
  0x37   : > { %1944 = vmatpush3.bf16.msra.mxu0 %v2112_v52  ;;  %v1166_v52 = vor.u32 %v1165_v44, %v1162_v43 }
  0x38   : > { %1964 = vmatpush3.bf16.msra.mxu1 %v2113_v53  ;;  %1945 = vmatprep.subr.bf16.mxu0 %v2114_v54 }
  0x39   : > { %1965 = vmatprep.subr.bf16.mxu1 %v2115_v55 }
  0x3b   : > { %1946 = vmatpush3.bf16.msra.mxu0 %v2114_v54  ;;  %v2144_v54 = vld [vmem:[%s2512_s1 + $0x188] sm:$0xff]  }
  0x3c   : > { %1966 = vmatpush3.bf16.msra.mxu1 %v2115_v55  ;;  %1947 = vmatprep.subr.bf16.mxu0 %v2116_v56  ;;  %v2145_v55 = vld [vmem:[%s2512_s1 + $0x1c8] sm:$0xff]  }
  0x3d   : > { %1967 = vmatprep.subr.bf16.mxu1 %v2117_v57 }
  0x3f   : > { %1948 = vmatpush3.bf16.msra.mxu0 %v2116_v56 }
  0x40   : > { %1968 = vmatpush3.bf16.msra.mxu1 %v2117_v57  ;;  %1949 = vmatprep.subr.bf16.mxu0 %v2118_v62 }
  0x41   : > { %1969 = vmatprep.subr.bf16.mxu1 %v2119_v63 }
  0x43   : > { %1950 = vmatpush3.bf16.msra.mxu0 %v2118_v62  ;;  %v2150_v62 = vld [vmem:[%s2512_s1 + $0x1a0] sm:$0xff]  }
  0x44   : > { %1970 = vmatpush3.bf16.msra.mxu1 %v2119_v63  ;;  %1975 = vmatprep.subr.bf16.mxu0 %v2121_v6  ;;  %v2151_v63 = vld [vmem:[%s2512_s1 + $0x1e0] sm:$0xff]  }
  0x45   : > { %1995 = vmatprep.subr.bf16.mxu1 %v2124_v7 }
  0x46   : > { %1952 = vmatmul.mubr.bf16.vlgmr.msra.gmra.mrb[4].mxu0 %v502_v38  ;;  %v1168_v38 = vshrl.u32 %v2388_v24, 16 }
  0x47   : > { %1976 = vmatpush3.bf16.msra.mxu0 %v2121_v6  ;;  %1972 = vmatmul.mubr.bf16.vlgmr.msra.gmra.mrb[4].mxu1 %v638_v49  ;;  %v1033_v49 = vrot.slane %v1731_v30, 2  ;;  %v2161_v6 = vld [vmem:[%s2512_s1 + $0x200] sm:$0xff]  }
  0x48   : > { %1996 = vmatpush3.bf16.msra.mxu1 %v2124_v7  ;;  %1977 = vmatprep.subr.bf16.mxu0 %v2125_v10  ;;  %v1170_v45 = vrot.slane %v1168_v38, 2  ;;  %v2162_v7 = vld [vmem:[%s2512_s1 + $0x208] sm:$0xff]  }
  0x49   : > { %1997 = vmatprep.subr.bf16.mxu1 %v2126_v11  ;;  %1991 = vmatprep.mubr.bf16.mxu0 %v779_v12  ;;  %v1035_v56 = vsel %vm1032_vm4, %v1033_v49, %v1034_v50  ;;  %v2167_v12 = vld [vmem:[%s2512_s1 + $0x230] sm:$0xff]  }
  0x4a   : > { %2011 = vmatprep.mubr.bf16.mxu1 %v1705_v13  ;;  %v1174_v53 = vor.u32 %v1173_v46, %v1170_v45  ;;  %v2168_v13 = vld [vmem:[%s2512_s1 + $0x238] sm:$0xff]  }
  0x4b   : > { %1978 = vmatpush3.bf16.msra.mxu0 %v2125_v10  ;;  %v2165_v10 = vld [vmem:[%s2512_s1 + $0x220] sm:$0xff]  }
  0x4c   : > { %1998 = vmatpush3.bf16.msra.mxu1 %v2126_v11  ;;  %1979 = vmatprep.subr.bf16.mxu0 %v2127_v14  ;;  %v1175_v57 = vsel %vm1158_vm5, %v1166_v52, %v1174_v53  ;;  %v2166_v11 = vld [vmem:[%s2512_s1 + $0x228] sm:$0xff]  }
  0x4d   : > { %1999 = vmatprep.subr.bf16.mxu1 %v2128_v15 }
  0x4f   : > { %1980 = vmatpush3.bf16.msra.mxu0 %v2127_v14 }
  0x50   : > { %2000 = vmatpush3.bf16.msra.mxu1 %v2128_v15  ;;  %1981 = vmatprep.subr.bf16.mxu0 %v2129_v16 }
  0x51   : > { %2001 = vmatprep.subr.bf16.mxu1 %v2130_v17 }
  0x53   : > { %1982 = vmatpush3.bf16.msra.mxu0 %v2129_v16 }
  0x54   : > { %2002 = vmatpush3.bf16.msra.mxu1 %v2130_v17  ;;  %1983 = vmatprep.subr.bf16.mxu0 %v2131_v18 }
  0x55   : > { %2003 = vmatprep.subr.bf16.mxu1 %v2132_v21 }
  0x57   : > { %1984 = vmatpush3.bf16.msra.mxu0 %v2131_v18 }
  0x58   : > { %2004 = vmatpush3.bf16.msra.mxu1 %v2132_v21  ;;  %1985 = vmatprep.subr.bf16.mxu0 %v2133_v22 }
  0x59   : > { %2005 = vmatprep.subr.bf16.mxu1 %v2134_v27 }
  0x5b   : > { %1986 = vmatpush3.bf16.msra.mxu0 %v2133_v22 }
  0x5c   : > { %2006 = vmatpush3.bf16.msra.mxu1 %v2134_v27  ;;  %1987 = vmatprep.subr.bf16.mxu0 %v2135_v32 }
  0x5d   : > { %2007 = vmatprep.subr.bf16.mxu1 %v2136_v33 }
  0x5f   : > { %1988 = vmatpush3.bf16.msra.mxu0 %v2135_v32 }
  0x60   : > { %2008 = vmatpush3.bf16.msra.mxu1 %v2136_v33  ;;  %1989 = vmatprep.subr.bf16.mxu0 %v2137_v40 }
  0x61   : > { %2009 = vmatprep.subr.bf16.mxu1 %v2138_v41 }
  0x63   : > { %1990 = vmatpush3.bf16.msra.mxu0 %v2137_v40 }
  0x64   : > { %2010 = vmatpush3.bf16.msra.mxu1 %v2138_v41  ;;  %2015 = vmatprep.subr.bf16.mxu0 %v2140_v47 }
  0x65   : > { %2035 = vmatprep.subr.bf16.mxu1 %v2143_v48 }
  0x66   : > { %1992 = vmatmul.mubr.bf16.vlgmr.msra.gmra.mrb[8].mxu0 %v2351_v9  ;;  %v2164_v9 = vld [vmem:[%s2512_s1 + $0x218] sm:$0xff]  }
  0x67   : > { %2016 = vmatpush3.bf16.msra.mxu0 %v2140_v47  ;;  %2012 = vmatmul.mubr.bf16.vlgmr.msra.gmra.mrb[8].mxu1 %v1706_v51 }
  0x68   : > { %2036 = vmatpush3.bf16.msra.mxu1 %v2143_v48  ;;  %2017 = vmatprep.subr.bf16.mxu0 %v2144_v54 }
  0x69   : > { %2037 = vmatprep.subr.bf16.mxu1 %v2145_v55  ;;  %2031 = vmatprep.mubr.bf16.mxu0 %v1035_v56 }
  0x6a   : > { %2051 = vmatprep.mubr.bf16.mxu1 %v1175_v57 }
  0x6b   : > { %2018 = vmatpush3.bf16.msra.mxu0 %v2144_v54 }
  0x6c   : > { %2038 = vmatpush3.bf16.msra.mxu1 %v2145_v55  ;;  %2019 = vmatprep.subr.bf16.mxu0 %v2146_v58 }
  0x6d   : > { %2039 = vmatprep.subr.bf16.mxu1 %v2147_v59 }
  0x6f   : > { %2020 = vmatpush3.bf16.msra.mxu0 %v2146_v58 }
  0x70   : > { %2040 = vmatpush3.bf16.msra.mxu1 %v2147_v59  ;;  %2021 = vmatprep.subr.bf16.mxu0 %v2148_v60 }
  0x71   : > { %2041 = vmatprep.subr.bf16.mxu1 %v2149_v61 }
  0x73   : > { %2022 = vmatpush3.bf16.msra.mxu0 %v2148_v60 }
  0x74   : > { %2042 = vmatpush3.bf16.msra.mxu1 %v2149_v61  ;;  %2023 = vmatprep.subr.bf16.mxu0 %v2150_v62 }
  0x75   : > { %2043 = vmatprep.subr.bf16.mxu1 %v2151_v63 }
  0x77   : > { %2024 = vmatpush3.bf16.msra.mxu0 %v2150_v62 }
  0x78   : > { %2044 = vmatpush3.bf16.msra.mxu1 %v2151_v63  ;;  %2025 = vmatprep.subr.bf16.mxu0 %v2152_v0 }
  0x79   : > { %2045 = vmatprep.subr.bf16.mxu1 %v2153_v1 }
  0x7b   : > { %2026 = vmatpush3.bf16.msra.mxu0 %v2152_v0 }
  0x7c   : > { %2046 = vmatpush3.bf16.msra.mxu1 %v2153_v1  ;;  %2027 = vmatprep.subr.bf16.mxu0 %v2154_v2 }
  0x7d   : > { %2047 = vmatprep.subr.bf16.mxu1 %v2155_v3 }
  0x7f   : > { %2028 = vmatpush3.bf16.msra.mxu0 %v2154_v2 }
  0x80   : > { %2048 = vmatpush3.bf16.msra.mxu1 %v2155_v3  ;;  %2029 = vmatprep.subr.bf16.mxu0 %v2156_v4  ;;  %v1798_v3 = vld [vmem:[%s212_s26 + $0x6] sm:$0x3] }
  0x81   : > { %2049 = vmatprep.subr.bf16.mxu1 %v2157_v5 }
  0x83   : > { %2030 = vmatpush3.bf16.msra.mxu0 %v2156_v4  ;;  %v2178_v4 = vmov 1983009808  }
  0x84   : > { %2050 = vmatpush3.bf16.msra.mxu1 %v2157_v5  ;;  %2055 = vmatprep.subr.bf16.mxu0 %v2161_v6  ;;  %v1429_v5 = vunpack.c.l.s4 %v2178_v4 }
  0x86   : > { %2032 = vmatmul.mubr.bf16.vlgmr.msra.gmra.mrb[12].mxu0 %v1034_v50 }
  0x87   : > { %2056 = vmatpush3.bf16.msra.mxu0 %v2161_v6  ;;  %2052 = vmatmul.mubr.bf16.vlgmr.msra.gmra.mrb[12].mxu1 %v1174_v53  ;;  %v1431_v6 = vlaneseq }
  0x88   : > { %2057 = vmatprep.subr.bf16.mxu0 %v2162_v7  ;;  %2071 = vmatprep.mubr.bf16.mxu0 %v2405_v34 }
  0x8b   : > { %2058 = vmatpush3.bf16.msra.mxu0 %v2162_v7  ;;  %v1479_v7 = vunpack.c.l.bf16 %v1798_v3 }
  0x8c   : > { %2059 = vmatprep.subr.bf16.mxu0 %v2163_v8 }
  0x8f   : > { %2060 = vmatpush3.bf16.msra.mxu0 %v2163_v8  ;;  %v1792_v8 = vld [vmem:[%s212_s26 + $0x2] sm:$0x3] }
  0x90   : > { %2061 = vmatprep.subr.bf16.mxu0 %v2164_v9 }
  0x93   : > { %2062 = vmatpush3.bf16.msra.mxu0 %v2164_v9  ;;  %v1796_v9 = vld [vmem:[%s212_s26 + $0x4] sm:$0x3] }
  0x94   : > { %2063 = vmatprep.subr.bf16.mxu0 %v2165_v10 }
  0x97   : > { %2064 = vmatpush3.bf16.msra.mxu0 %v2165_v10  ;;  %v1412_v10 = vld [vmem:[%s212_s26] sm:$0x3] }
  0x98   : > { %2065 = vmatprep.subr.bf16.mxu0 %v2166_v11 }
  0x9b   : > { %2066 = vmatpush3.bf16.msra.mxu0 %v2166_v11 }
  0x9c   : > { %2067 = vmatprep.subr.bf16.mxu0 %v2167_v12 }
  0x9f   : > { %2068 = vmatpush3.bf16.msra.mxu0 %v2167_v12  ;;  %v1791_v12 = vld [vmem:[%s2513_s2] ss:$0 sm:$0xff] }
  0xa0   : > { %2069 = vmatprep.subr.bf16.mxu0 %v2168_v13 }
  0xa3   : > { %2070 = vmatpush3.bf16.msra.mxu0 %v2168_v13  ;;  %v1419_v13 = vunpack.c.l.bf16 %v1792_v8 }
  0xa6   : > { %2072 = vmatmul.mubr.bf16.vlgmr.msra.gmra.mrb[16].mxu0 %v1299_v29 }
  0xf9   : > { %v1913_v14 = vpop.f32.mrb[0].mxu0 }
  0xfa   : > { %v1933_v15 = vpop.f32.mrb[0].mxu1  ;;  %v364_v16 = vpop.f32.mrb[1].mxu0 }
  0xfb   : > { %v474_v17 = vadd.f32 %v1933_v15, %v1913_v14  ;;  %v465_v18 = vpop.f32.mrb[1].mxu1  ;;  %v1914_v19 = vpop.f32.mrb[2].mxu0  ;;  %v1459_v14 = vunpack.c.l.bf16 %v1796_v9 }
  0xfc   : > { %v466_v20 = vadd.f32 %v465_v18, %v364_v16  ;;  %v1934_v21 = vpop.f32.mrb[2].mxu1  ;;  %v367_v22 = vpop.f32.mrb[3].mxu0  ;;  %v1430_v16 = vunpack.c.0.s8 %v1429_v5  ;;  %v1481_v18 = vrot.slane %v1479_v7, 6 }
  0xfd   : > { %v468_v23 = vpop.f32.mrb[3].mxu1  ;;  %v1413_v21 = vunpack.c.l.bf16 %v1412_v10 }
  0xfe   : > { %v469_v25 = vadd.f32 %v468_v23, %v367_v22 }
 0x119   : > { %v1953_v26 = vpop.f32.mrb[4].mxu0 }
 0x11a   : > { %v604_v27 = vadd.f32 %v1953_v26, %v474_v17  ;;  %v588_v28 = vpop.f32.mrb[5].mxu0  ;;  %v1973_v30 = vpop.f32.mrb[4].mxu1  ;;  %v1432_v17 = vshrl.u32 %v1431_v6, 7 }
 0x11b   : > { %v602_v31 = vadd.f32 %v588_v28, %v466_v20  ;;  %v1954_v32 = vpop.f32.mrb[6].mxu0  ;;  %v724_v33 = vpop.f32.mrb[5].mxu1 }
 0x11c   : > { %v740_v24 = vadd.f32 %v1973_v30, %v604_v27  ;;  %v591_v29 = vpop.f32.mrb[7].mxu0  ;;  %v1974_v34 = vpop.f32.mrb[6].mxu1  ;;  %v1421_v27 = vrot.slane %v1419_v13, 2  ;;  %v1461_v30 = vcombine.low %v1459_v14, %v1459_v14 }
 0x11d   : > { %v603_v35 = vadd.f32 %v591_v29, %v469_v25  ;;  %v738_v36 = vadd.f32 %v724_v33, %v602_v31  ;;  %v727_v37 = vpop.f32.mrb[7].mxu1  ;;  %v1433_v31 = vsub.s32 %v1430_v16, %v1432_v17 }
 0x11f   : > { %v739_v38 = vadd.f32 %v727_v37, %v603_v35 }
 0x139   : > { %v1993_v39 = vpop.f32.mrb[8].mxu0 }
 0x13a   : > { %v880_v40 = vadd.f32 %v1993_v39, %v740_v24  ;;  %v864_v41 = vpop.f32.mrb[9].mxu0  ;;  %v2013_v42 = vpop.f32.mrb[8].mxu1 }
 0x13b   : > { %v878_v43 = vadd.f32 %v864_v41, %v738_v36  ;;  %v1994_v44 = vpop.f32.mrb[10].mxu0  ;;  %v984_v45 = vpop.f32.mrb[9].mxu1 }
 0x13c   : > { %v1000_v46 = vadd.f32 %v2013_v42, %v880_v40  ;;  %v867_v47 = vpop.f32.mrb[11].mxu0  ;;  %v2014_v48 = vpop.f32.mrb[10].mxu1 }
 0x13d   : > { %v879_v49 = vadd.f32 %v867_v47, %v739_v38  ;;  %v998_v50 = vadd.f32 %v984_v45, %v878_v43  ;;  %v987_v51 = vpop.f32.mrb[11].mxu1 }
 0x13f   : > { %v999_v52 = vadd.f32 %v987_v51, %v879_v49 }
 0x159   : > { %v2033_v53 = vpop.f32.mrb[12].mxu0 }
 0x15a   : > { %v1136_v54 = vadd.f32 %v2033_v53, %v1000_v46  ;;  %v1120_v55 = vpop.f32.mrb[13].mxu0  ;;  %v2053_v56 = vpop.f32.mrb[12].mxu1 }
 0x15b   : > { %v1134_v57 = vadd.f32 %v1120_v55, %v998_v50  ;;  %v2034_v58 = vpop.f32.mrb[14].mxu0  ;;  %v1260_v59 = vpop.f32.mrb[13].mxu1 }
 0x15c   : > { %v1276_v60 = vadd.f32 %v2053_v56, %v1136_v54  ;;  %v1123_v61 = vpop.f32.mrb[15].mxu0  ;;  %v2054_v62 = vpop.f32.mrb[14].mxu1 }
 0x15d   : > { %v1135_v63 = vadd.f32 %v1123_v61, %v999_v52  ;;  %v1274_v0 = vadd.f32 %v1260_v59, %v1134_v57  ;;  %v1263_v1 = vpop.f32.mrb[15].mxu1 }
 0x15f   : > { %v1275_v2 = vadd.f32 %v1263_v1, %v1135_v63 }
 0x179   : > { %v2073_v11 = vpop.f32.mrb[16].mxu0 }
 0x17a   : > { %v1401_v15 = vadd.f32 %v2073_v11, %v1276_v60  ;;  %v1385_v19 = vpop.f32.mrb[17].mxu0 }
 0x17b   : > { %v1399_v20 = vadd.f32 %v1385_v19, %v1274_v0  ;;  %v2074_v22 = vpop.f32.mrb[18].mxu0 }
 0x17c   : > { %v1411_v23 = vadd.f32 %v1791_v12, %v1401_v15  ;;  %v1388_v25 = vpop.f32.mrb[19].mxu0 }
 0x17d   : > { %v1409_v26 = vadd.f32 %v1791_v12, %v1399_v20  ;;  %v1400_v28 = vadd.f32 %v1388_v25, %v1275_v2 }
 0x17e   : > { %v1483_v32 = vadd.f32 %v1481_v18, %v1411_v23 }
 0x17f   : > { %v1414_v33 = vadd.f32 %v1413_v21, %v1409_v26  ;;  %v1410_v24 = vadd.f32 %v1791_v12, %v1400_v28  ;;  %v1423_v35 = vadd.f32 %v1421_v27, %v1409_v26 }
 0x180   : > { %v1484_v29 = vpack.c.bf16 %v1483_v32, %v1483_v32 }
 0x181   : > { %v1415_v34 = vpack.c.bf16 %v1414_v33, %v1414_v33  ;;  %v1424_v36 = vadd.f32 %v1421_v27, %v1410_v24  ;;  %v1463_v37 = vadd.f32 %v1461_v30, %v1410_v24 }
 0x182   : > { %v1492_v38 = vrot.slane %v1484_v29, %v1433_v31 }
 0x183   : > { %1416 = vst [vmem:[%s217_s5] sm:$0x3] %v1415_v34  ;;  %v1425_v39 = vpack.c.bf16 %v1424_v36, %v1423_v35  ;;  %v1793_v40 = vpack.c.bf16 %v1424_v36, %v1424_v36  ;;  %v1464_v41 = vpack.c.bf16 %v1463_v37, %v1463_v37 }
 0x184   : > { %v1493_v42 = vcombine.high %v1492_v38, %v1492_v38  ;;  %v1799_v46 = vrot.slane %v1492_v38, 9 }
 0x185   : > { %v1434_v43 = vrot.slane %v1425_v39, %v1433_v31  ;;  %v1441_v44 = vrot.slane %v1793_v40, %v1433_v31  ;;  %v1472_v45 = vrot.slane %v1464_v41, %v1433_v31 }
 0x186   : > { %v1496_v47 = vrot.slane %v1493_v42, 7 }
 0x187   : > { %v1442_v48 = vcombine.high %v1434_v43, %v1434_v43  ;;  %v1473_v49 = vcombine.high %v1472_v45, %v1472_v45  ;;  %v1452_v52 = vrot.slane %v1441_v44, 7 }
 0x188   : > { %v1497_v50 = vsel %vm1449_vm12, %v1799_v46, %v1496_v47 }
 0x189   : > { %1800 = vst [vmem:[%s217_s5 + $0x6] sm:$0x3] %v1497_v50  ;;  %v1794_v51 = vrot.slane %v1442_v48, 9  ;;  %1797 = vst [vmem:[%s217_s5 + $0x4] sm:$0x3] %v1473_v49 }
 0x18b   : > { %v1453_v53 = vsel %vm1449_vm12, %v1794_v51, %v1452_v52 }
 0x18c   : > { %1795 = vst [vmem:[%s217_s5 + $0x2] sm:$0x3] %v1453_v53 }
 0x18d PF: > { %s14_s15 = sadd.s32 1, %s2176_s15  }
 0x18e   : > { %p11_p4 = scmp.ge.s32.totalorder %s14_s15, 4  }
 0x190   :  { %13 = sbr.rel (!%p11_p4) target bundleno = 1 (0x1), region = 83 }

// kernel: sdxl_forward.37
= control target key start
LH: loop header
LB: loop body
LE: loop exit
PB: predicated region body
PF: predicated region fallthrough
CT: control target
= control target key end

     0   :  { %s2211_s15 = smov 0   ;;  %s2515_s0 = inlined_call_operand.vmem [shape: bf16[2,36,128], index: 0, kind: input, shape index: {}]   ;;  %s2516_s1 = inlined_call_operand.vmem [shape: bf16[9,128,128], index: 1, kind: input, shape index: {}]   ;;  %s2517_s2 = inlined_call_operand.vmem [shape: f32[1,128], index: 2, kind: input, shape index: {}]   ;;  %s2518_s3 = inlined_call_operand.vmem [shape: f32[2,1,128], index: 3, kind: input, shape index: {}]   ;;  %s2519_s4 = inlined_call_operand.vmem [shape: bf16[2,4,4,128], index: 4, kind: output, shape index: {}]  }
   0x1 LB: > { %s1565_s16 = sadd.s32 4294967295, %s2183_s15   ;;  %p1569_p0 = scmp.ge.s32.totalorder %s2183_s15, 1  ;;  %s2183_s15 = sphi %s2211_s15, %s14_s15  }
   0x2   : > { %p170_p1 = scmp.lt.s32.totalorder %s2183_s15, 3 }
   0x4   : > { %p171_p2 = pnand %p1569_p0, %p170_p1 }
   0x5   : > { %v2080_v0 = vld [vmem:[%s2516_s1 + $0x40] sm:$0xff] (!%p171_p2)   ;;  %p199_p3 = scmp.lt.s32.totalorder (!%p171_p2), %s1565_s16, 1  ;;  %v2082_v2 = vld [vmem:[%s2516_s1 + $0x48] sm:$0xff] (!%p171_p2)   ;;  %v2084_v4 = vld [vmem:[%s2516_s1 + $0x50] sm:$0xff] (!%p171_p2)   ;;  %vm258_vm0 = vsmask.f32 (!%p171_p2), 7424 }
   0x6   : > { %174 = sbr.rel (%p171_p2) target bundleno = 425 (0x1a9), region = 36  ;;  %v2081_v1 = vld [vmem:[%s2516_s1] sm:$0xff] (!%p171_p2)   ;;  %1890 = vmatprep.subr.bf16.mxu0 (!%p171_p2), %v2080_v0  ;;  %v2083_v3 = vld [vmem:[%s2516_s1 + $0x8] sm:$0xff] (!%p171_p2)   ;;  %v2085_v5 = vld [vmem:[%s2516_s1 + $0x10] sm:$0xff] (!%p171_p2)   ;;  %vm494_vm1 = vcmask (!%p171_p2), 1046528   ;;  %vm630_vm2 = vcmask (!%p171_p2), 1044480  }
   0x7   : > { %1910 = vmatprep.subr.bf16.mxu1 (!%p171_p2), %v2081_v1  ;;  %1891 = vmatpush3.bf16.msra.mxu0 (!%p171_p2), %v2080_v0  ;;  %v2086_v6 = vld [vmem:[%s2516_s1 + $0x58] sm:$0xff] (!%p171_p2)   ;;  %v2088_v8 = vld [vmem:[%s2516_s1 + $0x60] sm:$0xff] (!%p171_p2)   ;;  %v2090_v10 = vld [vmem:[%s2516_s1 + $0x68] sm:$0xff] (!%p171_p2)   ;;  %vm756_vm3 = vsmask.f32 (!%p171_p2), 4352  ;;  %vm1026_vm4 = vcmask (!%p171_p2), 1045504  }
   0x8   : > { %1911 = vmatpush3.bf16.msra.mxu1 (!%p171_p2), %v2081_v1  ;;  %1892 = vmatprep.subr.bf16.mxu0 (!%p171_p2), %v2082_v2  ;;  %v2087_v7 = vld [vmem:[%s2516_s1 + $0x18] sm:$0xff] (!%p171_p2)   ;;  %v2089_v9 = vld [vmem:[%s2516_s1 + $0x20] sm:$0xff] (!%p171_p2)   ;;  %v2091_v13 = vld [vmem:[%s2516_s1 + $0x28] sm:$0xff] (!%p171_p2)   ;;  %vm1152_vm5 = vsmask.f32 (!%p171_p2), 5376  ;;  %vm1457_vm6 = vcmask (!%p171_p2), 1040384  }
   0x9   : > { %1912 = vmatprep.subr.bf16.mxu1 (!%p171_p2), %v2083_v3  ;;  %v2092_v16 = vld [vmem:[%s2516_s1 + $0x70] sm:$0xff] (!%p171_p2)   ;;  %v2094_v24 = vld [vmem:[%s2516_s1 + $0x78] sm:$0xff] (!%p171_p2)   ;;  %v2099_v28 = vld [vmem:[%s2516_s1 + $0x80] sm:$0xff] (!%p171_p2)   ;;  %vm1458_vm7 = vcmask (!%p171_p2), 1042434   ;;  %vm1460_vm9 = vcmask (!%p171_p2), 1044484   ;;  %vm1462_vm11 = vcmask (!%p171_p2), 1046534  }
   0xa   : > { %v2093_v20 = vld [vmem:[%s2516_s1 + $0x30] sm:$0xff] (!%p171_p2)   ;;  %v2095_v25 = vld [vmem:[%s2516_s1 + $0x38] sm:$0xff] (!%p171_p2)   ;;  %v2100_v30 = vld [vmem:[%s2516_s1 + $0xc0] sm:$0xff] (!%p171_p2)  }
   0xb   : > { %1893 = vmatpush3.bf16.msra.mxu0 (!%p171_p2), %v2082_v2  ;;  %v2101_v32 = vld [vmem:[%s2516_s1 + $0x88] sm:$0xff] (!%p171_p2)   ;;  %v2103_v34 = vld [vmem:[%s2516_s1 + $0x90] sm:$0xff] (!%p171_p2)   ;;  %v2105_v46 = vld [vmem:[%s2516_s1 + $0x98] sm:$0xff] (!%p171_p2)  }
   0xc   : > { %1913 = vmatpush3.bf16.msra.mxu1 (!%p171_p2), %v2083_v3  ;;  %1894 = vmatprep.subr.bf16.mxu0 (!%p171_p2), %v2084_v4  ;;  %v2102_v33 = vld [vmem:[%s2516_s1 + $0xc8] sm:$0xff] (!%p171_p2)   ;;  %v2104_v36 = vld [vmem:[%s2516_s1 + $0xd0] sm:$0xff] (!%p171_p2)   ;;  %v2106_v50 = vld [vmem:[%s2516_s1 + $0xd8] sm:$0xff] (!%p171_p2)  }
   0xd   : > { %s2521_s16 = smov (!%p199_p3, %s1565_s16), 1  ;;  %1914 = vmatprep.subr.bf16.mxu1 %v2085_v5  ;;  %v2107_v52 = vld [vmem:[%s2516_s1 + $0xa0] sm:$0xff]   ;;  %v2109_v54 = vld [vmem:[%s2516_s1 + $0xa8] sm:$0xff]   ;;  %v2111_v56 = vld [vmem:[%s2516_s1 + $0xb0] sm:$0xff]  }
   0xe   : > { %s2070_s7 = smul.u32 20, %s2521_s16  ;;  %v2108_v53 = vld [vmem:[%s2516_s1 + $0xe0] sm:$0xff]   ;;  %v2110_v55 = vld [vmem:[%s2516_s1 + $0xe8] sm:$0xff]   ;;  %v2112_v57 = vld [vmem:[%s2516_s1 + $0xf0] sm:$0xff]   ;;  %s206_s27 = scalar_lea.vmem %s2518_s3, %s2521_s16 }
   0xf   : > { %1895 = vmatpush3.bf16.msra.mxu0 %v2084_v4  ;;  %v2113_v62 = vld [vmem:[%s2516_s1 + $0xb8] sm:$0xff]   ;;  %s1799_s28 = sshll.u32 %s2521_s16, 3  ;;  %vm1459_vm8 = vmor %vm1457_vm6, %vm1458_vm7 }
  0x10   : > { %1915 = vmatpush3.bf16.msra.mxu1 %v2085_v5  ;;  %1896 = vmatprep.subr.bf16.mxu0 %v2086_v6  ;;  %s2255_s14 = scalar_lea.vmem %s2515_s0, %s2070_s7  ;;  %v2114_v63 = vld [vmem:[%s2516_s1 + $0xf8] sm:$0xff]   ;;  %s211_s5 = scalar_lea.vmem %s2519_s4, %s1799_s28  ;;  %vm1461_vm10 = vmor %vm1459_vm8, %vm1460_vm9 }
  0x11   : > { %1916 = vmatprep.subr.bf16.mxu1 %v2087_v7  ;;  %v213_v11 = vld [vmem:[%s2255_s14] sm:$0xf]  ;;  %v214_v12 = vld [vmem:[%s2255_s14 + $0x4] sm:$0xf]  ;;  %v2266_v15 = vld [vmem:[%s2255_s14 + $0x8] ss:$0 sps:$4 sm:$0xff]  }
  0x12   : > { %v1589_v14 = vcombine.low %v213_v11, %v214_v12  ;;  %v267_v19 = vshll.u32 %v2266_v15, 16  ;;  %v271_v27 = vshrl.u32 %v2266_v15, 16  ;;  %v2098_v29 = vld [vmem:[%s2255_s14 + $0x8] ss:$0 sps:$4 sm:$0x77]   ;;  %v496_v38 = vrot.slane %v2266_v15, 1  ;;  %vm1463_vm12 = vmor %vm1461_vm10, %vm1462_vm11 }
  0x13   : > { %1897 = vmatpush3.bf16.msra.mxu0 %v2086_v6  ;;  %v473_v35 = vld [vmem:[%s2255_s14] sm:$0xe]  ;;  %v2305_v40 = vld [vmem:[%s2255_s14 + $0x4] sm:$0xf]  ;;  %v2308_v41 = vld [vmem:[%s2255_s14 + $0x8] sm:$0xf] }
  0x14   : > { %1917 = vmatpush3.bf16.msra.mxu1 %v2087_v7  ;;  %1898 = vmatprep.subr.bf16.mxu0 %v2088_v8  ;;  %v260_v17 = vshrl.u32 %v1589_v14, 16  ;;  %v262_v18 = vshll.u32 %v1589_v14, 16  ;;  %v269_v22 = vrot.slane %v267_v19, 1  ;;  %v1624_v37 = vcombine.low %v473_v35, %v214_v12  ;;  %v599_v39 = vld [vmem:[%s2255_s14] sm:$0x8]  ;;  %v2121_v11 = vld [vmem:[%s2516_s1 + $0x148] sm:$0xff]  }
  0x15   : > { %1918 = vmatprep.subr.bf16.mxu1 %v2089_v9  ;;  %1926 = vmatprep.mubr.bf16.mxu1 %v1589_v14  ;;  %v602_v42 = vld [vmem:[%s2255_s14 + $0xc] sm:$0x3]  ;;  %v1649_v44 = vcombine.low %v599_v39, %v2305_v40  ;;  %v2116_v6 = vld [vmem:[%s2516_s1 + $0x100] sm:$0xff]   ;;  %v2122_v14 = vld [vmem:[%s2516_s1 + $0x110] sm:$0xff]  }
  0x16   : > { %v264_v21 = vrot.slane %v262_v18, 1  ;;  %v273_v31 = vor.u32 %v271_v27, %v269_v22  ;;  %v495_v43 = vrot.slane %v1624_v37, 1  ;;  %v1650_v45 = vcombine.low %v2308_v41, %v602_v42  ;;  %v2342_v58 = vld [vmem:[%s2255_s14 + $0xc] sm:$0x7]  ;;  %v2119_v7 = vld [vmem:[%s2516_s1 + $0x140] sm:$0xff]   ;;  %v2123_v15 = vld [vmem:[%s2516_s1 + $0x150] sm:$0xff]  }
  0x17   : > { %1899 = vmatpush3.bf16.msra.mxu0 %v2088_v8  ;;  %v631_v48 = vrot.slane %v1649_v44, 3  ;;  %v758_v59 = vshrl.u32 %v1649_v44, 16  ;;  %v761_v60 = vshll.u32 %v1649_v44, 16  ;;  %v1675_v61 = vcombine.low %v2308_v41, %v2342_v58  ;;  %v2126_v18 = vld [vmem:[%s2516_s1 + $0x120] sm:$0xff]   ;;  %v997_v19 = vld [vmem:[%s2255_s14 + $0xc] sm:$0xf] }
  0x18   : > { %1919 = vmatpush3.bf16.msra.mxu1 %v2089_v9  ;;  %1900 = vmatprep.subr.bf16.mxu0 %v2090_v10  ;;  %v265_v23 = vor.u32 %v264_v21, %v260_v17  ;;  %v497_v47 = vsel %vm494_vm1, %v495_v43, %v496_v38  ;;  %v632_v49 = vrot.slane %v1650_v45, 3  ;;  %v2125_v17 = vld [vmem:[%s2516_s1 + $0x158] sm:$0xff]   ;;  %v2127_v21 = vld [vmem:[%s2516_s1 + $0x160] sm:$0xff]   ;;  %v2129_v27 = vld [vmem:[%s2516_s1 + $0x168] sm:$0xff]  }
  0x19   : > { %1920 = vmatprep.subr.bf16.mxu1 %v2091_v13  ;;  %v766_v0 = vshrl.u32 %v1675_v61, 16  ;;  %v769_v1 = vshll.u32 %v1675_v61, 16  ;;  %v760_v2 = vrot.slane %v758_v59, 3  ;;  %v763_v3 = vrot.slane %v761_v60, 4  ;;  %v998_v35 = vld [vmem:[%s2255_s14 + $0x10] sm:$0x1] }
  0x1a   : > { %v270_v26 = vsel %vm258_vm0, %v265_v23, %v269_v22  ;;  %v633_v51 = vsel %vm630_vm2, %v631_v48, %v632_v49  ;;  %v2128_v22 = vld [vmem:[%s2516_s1 + $0x128] sm:$0xff]   ;;  %v995_v23 = vld [vmem:[%s2255_s14 + $0x4] sm:$0xc]  ;;  %v1727_v42 = vcombine.low %v997_v19, %v998_v35  ;;  %v2142_v59 = vld [vmem:[%s2516_s1 + $0x1d0] sm:$0xff]  }
  0x1b   : > { %1901 = vmatpush3.bf16.msra.mxu0 %v2090_v10  ;;  %1906 = vmatprep.mubr.bf16.mxu0 %v270_v26  ;;  %v768_v4 = vrot.slane %v766_v0, 3  ;;  %v771_v5 = vrot.slane %v769_v1, 4  ;;  %v764_v8 = vor.u32 %v763_v3, %v760_v2  ;;  %v2120_v10 = vld [vmem:[%s2516_s1 + $0x108] sm:$0xff]   ;;  %v1271_v26 = vld [vmem:[%s2255_s14 + $0x4] sm:$0x8]  ;;  %v2143_v60 = vld [vmem:[%s2516_s1 + $0x198] sm:$0xff]  }
  0x1c   : > { %1921 = vmatpush3.bf16.msra.mxu1 %v2091_v13  ;;  %1902 = vmatprep.subr.bf16.mxu0 %v2092_v16  ;;  %v1700_v13 = vcombine.low %v2305_v40, %v2308_v41  ;;  %v2132_v40 = vld [vmem:[%s2516_s1 + $0x138] sm:$0xff]   ;;  %v2138_v48 = vld [vmem:[%s2516_s1 + $0x1c0] sm:$0xff]   ;;  %v2147_v0 = vld [vmem:[%s2516_s1 + $0x1a8] sm:$0xff]  }
  0x1d   : > { %1922 = vmatprep.subr.bf16.mxu1 %v2093_v20  ;;  %v2358_v9 = vor.u32 %v771_v5, %v768_v4  ;;  %v2133_v41 = vld [vmem:[%s2516_s1 + $0x178] sm:$0xff]   ;;  %v2148_v1 = vld [vmem:[%s2516_s1 + $0x1e8] sm:$0xff]   ;;  %v2149_v2 = vld [vmem:[%s2516_s1 + $0x1b0] sm:$0xff]  }
  0x1e   : > { %v2144_v61 = vld [vmem:[%s2516_s1 + $0x1d8] sm:$0xff]   ;;  %v2150_v3 = vld [vmem:[%s2516_s1 + $0x1f0] sm:$0xff]  }
  0x1f   : > { %1903 = vmatpush3.bf16.msra.mxu0 %v2092_v16  ;;  %v773_v12 = vsel %vm756_vm3, %v764_v8, %v2358_v9  ;;  %v2124_v16 = vld [vmem:[%s2516_s1 + $0x118] sm:$0xff]   ;;  %v2158_v8 = vld [vmem:[%s2516_s1 + $0x210] sm:$0xff]  }
  0x20   : > { %1923 = vmatpush3.bf16.msra.mxu1 %v2093_v20  ;;  %1904 = vmatprep.subr.bf16.mxu0 %v2094_v24  ;;  %v1131_v20 = vld [vmem:[%s2255_s14 + $0x10] sm:$0x3]  ;;  %v2151_v4 = vld [vmem:[%s2516_s1 + $0x1b8] sm:$0xff]  }
  0x21   : > { %1924 = vmatprep.subr.bf16.mxu1 %v2095_v25  ;;  %v2152_v5 = vld [vmem:[%s2516_s1 + $0x1f8] sm:$0xff]  }
  0x23   : > { %1905 = vmatpush3.bf16.msra.mxu0 %v2094_v24  ;;  %v2395_v24 = vcombine.low %v997_v19, %v1131_v20 }
  0x24   : > { %1925 = vmatpush3.bf16.msra.mxu1 %v2095_v25  ;;  %1930 = vmatprep.subr.bf16.mxu0 %v2099_v28  ;;  %v996_v25 = vld [vmem:[%s2255_s14 + $0x8] sm:$0xf] }
  0x25   : > { %1950 = vmatprep.subr.bf16.mxu1 %v2100_v30  ;;  %v1165_v39 = vshll.u32 %v2395_v24, 16 }
  0x26   : > { %1907 = vmatmul.mubr.bf16.vlgmr.msra.gmra.mrb[0].mxu0 %v273_v31 }
  0x27   : > { %1927 = vmatmul.mubr.bf16.vlgmr.msra.gmra.mrb[0].mxu1 %v2098_v29  ;;  %1931 = vmatpush3.bf16.msra.mxu0 %v2099_v28  ;;  %v1777_v28 = vcombine.low %v1271_v26, %v996_v25  ;;  %v1293_v29 = vrot.slane %v2395_v24, 3 }
  0x28   : > { %1951 = vmatpush3.bf16.msra.mxu1 %v2100_v30  ;;  %1932 = vmatprep.subr.bf16.mxu0 %v2101_v32  ;;  %v1726_v30 = vcombine.low %v995_v23, %v996_v25 }
  0x29   : > { %1952 = vmatprep.subr.bf16.mxu1 %v2102_v33  ;;  %1946 = vmatprep.mubr.bf16.mxu0 %v497_v47  ;;  %v1292_v31 = vrot.slane %v1777_v28, 3  ;;  %v2135_v47 = vld [vmem:[%s2516_s1 + $0x180] sm:$0xff]  }
  0x2a   : > { %1966 = vmatprep.mubr.bf16.mxu1 %v633_v51  ;;  %v1157_v37 = vshll.u32 %v1726_v30, 16  ;;  %v1701_v51 = vcombine.low %v2342_v58, %v2342_v58  ;;  %v2141_v58 = vld [vmem:[%s2516_s1 + $0x190] sm:$0xff]  }
  0x2b   : > { %1933 = vmatpush3.bf16.msra.mxu0 %v2101_v32  ;;  %v2130_v32 = vld [vmem:[%s2516_s1 + $0x130] sm:$0xff]  }
  0x2c   : > { %1953 = vmatpush3.bf16.msra.mxu1 %v2102_v33  ;;  %1934 = vmatprep.subr.bf16.mxu0 %v2103_v34  ;;  %v2131_v33 = vld [vmem:[%s2516_s1 + $0x170] sm:$0xff]   ;;  %v1159_v44 = vrot.slane %v1157_v37, 3 }
  0x2d   : > { %1954 = vmatprep.subr.bf16.mxu1 %v2104_v36 }
  0x2f   : > { %1935 = vmatpush3.bf16.msra.mxu0 %v2103_v34  ;;  %v2412_v34 = vsel %vm630_vm2, %v1292_v31, %v1293_v29 }
  0x30   : > { %1955 = vmatpush3.bf16.msra.mxu1 %v2104_v36  ;;  %1936 = vmatprep.subr.bf16.mxu0 %v2105_v46  ;;  %v1154_v36 = vshrl.u32 %v1726_v30, 16 }
  0x31   : > { %1956 = vmatprep.subr.bf16.mxu1 %v2106_v50 }
  0x32   : > { %v1156_v43 = vrot.slane %v1154_v36, 2 }
  0x33   : > { %1937 = vmatpush3.bf16.msra.mxu0 %v2105_v46  ;;  %v1167_v46 = vrot.slane %v1165_v39, 3 }
  0x34   : > { %1957 = vmatpush3.bf16.msra.mxu1 %v2106_v50  ;;  %1938 = vmatprep.subr.bf16.mxu0 %v2107_v52  ;;  %v1028_v50 = vrot.slane %v1727_v42, 2 }
  0x35   : > { %1958 = vmatprep.subr.bf16.mxu1 %v2108_v53 }
  0x37   : > { %1939 = vmatpush3.bf16.msra.mxu0 %v2107_v52  ;;  %v1160_v52 = vor.u32 %v1159_v44, %v1156_v43 }
  0x38   : > { %1959 = vmatpush3.bf16.msra.mxu1 %v2108_v53  ;;  %1940 = vmatprep.subr.bf16.mxu0 %v2109_v54 }
  0x39   : > { %1960 = vmatprep.subr.bf16.mxu1 %v2110_v55 }
  0x3b   : > { %1941 = vmatpush3.bf16.msra.mxu0 %v2109_v54  ;;  %v2139_v54 = vld [vmem:[%s2516_s1 + $0x188] sm:$0xff]  }
  0x3c   : > { %1961 = vmatpush3.bf16.msra.mxu1 %v2110_v55  ;;  %1942 = vmatprep.subr.bf16.mxu0 %v2111_v56  ;;  %v2140_v55 = vld [vmem:[%s2516_s1 + $0x1c8] sm:$0xff]  }
  0x3d   : > { %1962 = vmatprep.subr.bf16.mxu1 %v2112_v57 }
  0x3f   : > { %1943 = vmatpush3.bf16.msra.mxu0 %v2111_v56 }
  0x40   : > { %1963 = vmatpush3.bf16.msra.mxu1 %v2112_v57  ;;  %1944 = vmatprep.subr.bf16.mxu0 %v2113_v62 }
  0x41   : > { %1964 = vmatprep.subr.bf16.mxu1 %v2114_v63 }
  0x43   : > { %1945 = vmatpush3.bf16.msra.mxu0 %v2113_v62  ;;  %v2145_v62 = vld [vmem:[%s2516_s1 + $0x1a0] sm:$0xff]  }
  0x44   : > { %1965 = vmatpush3.bf16.msra.mxu1 %v2114_v63  ;;  %1970 = vmatprep.subr.bf16.mxu0 %v2116_v6  ;;  %v2146_v63 = vld [vmem:[%s2516_s1 + $0x1e0] sm:$0xff]  }
  0x45   : > { %1990 = vmatprep.subr.bf16.mxu1 %v2119_v7 }
  0x46   : > { %1947 = vmatmul.mubr.bf16.vlgmr.msra.gmra.mrb[4].mxu0 %v496_v38  ;;  %v1162_v38 = vshrl.u32 %v2395_v24, 16 }
  0x47   : > { %1971 = vmatpush3.bf16.msra.mxu0 %v2116_v6  ;;  %1967 = vmatmul.mubr.bf16.vlgmr.msra.gmra.mrb[4].mxu1 %v632_v49  ;;  %v1027_v49 = vrot.slane %v1726_v30, 2  ;;  %v2156_v6 = vld [vmem:[%s2516_s1 + $0x200] sm:$0xff]  }
  0x48   : > { %1991 = vmatpush3.bf16.msra.mxu1 %v2119_v7  ;;  %1972 = vmatprep.subr.bf16.mxu0 %v2120_v10  ;;  %v1164_v45 = vrot.slane %v1162_v38, 2  ;;  %v2157_v7 = vld [vmem:[%s2516_s1 + $0x208] sm:$0xff]  }
  0x49   : > { %1992 = vmatprep.subr.bf16.mxu1 %v2121_v11  ;;  %1986 = vmatprep.mubr.bf16.mxu0 %v773_v12  ;;  %v1029_v56 = vsel %vm1026_vm4, %v1027_v49, %v1028_v50  ;;  %v2162_v12 = vld [vmem:[%s2516_s1 + $0x230] sm:$0xff]  }
  0x4a   : > { %2006 = vmatprep.mubr.bf16.mxu1 %v1700_v13  ;;  %v1168_v53 = vor.u32 %v1167_v46, %v1164_v45  ;;  %v2163_v13 = vld [vmem:[%s2516_s1 + $0x238] sm:$0xff]  }
  0x4b   : > { %1973 = vmatpush3.bf16.msra.mxu0 %v2120_v10  ;;  %v2160_v10 = vld [vmem:[%s2516_s1 + $0x220] sm:$0xff]  }
  0x4c   : > { %1993 = vmatpush3.bf16.msra.mxu1 %v2121_v11  ;;  %1974 = vmatprep.subr.bf16.mxu0 %v2122_v14  ;;  %v1169_v57 = vsel %vm1152_vm5, %v1160_v52, %v1168_v53  ;;  %v2161_v11 = vld [vmem:[%s2516_s1 + $0x228] sm:$0xff]  }
  0x4d   : > { %1994 = vmatprep.subr.bf16.mxu1 %v2123_v15 }
  0x4f   : > { %1975 = vmatpush3.bf16.msra.mxu0 %v2122_v14 }
  0x50   : > { %1995 = vmatpush3.bf16.msra.mxu1 %v2123_v15  ;;  %1976 = vmatprep.subr.bf16.mxu0 %v2124_v16 }
  0x51   : > { %1996 = vmatprep.subr.bf16.mxu1 %v2125_v17 }
  0x53   : > { %1977 = vmatpush3.bf16.msra.mxu0 %v2124_v16 }
  0x54   : > { %1997 = vmatpush3.bf16.msra.mxu1 %v2125_v17  ;;  %1978 = vmatprep.subr.bf16.mxu0 %v2126_v18 }
  0x55   : > { %1998 = vmatprep.subr.bf16.mxu1 %v2127_v21 }
  0x57   : > { %1979 = vmatpush3.bf16.msra.mxu0 %v2126_v18 }
  0x58   : > { %1999 = vmatpush3.bf16.msra.mxu1 %v2127_v21  ;;  %1980 = vmatprep.subr.bf16.mxu0 %v2128_v22 }
  0x59   : > { %2000 = vmatprep.subr.bf16.mxu1 %v2129_v27 }
  0x5b   : > { %1981 = vmatpush3.bf16.msra.mxu0 %v2128_v22 }
  0x5c   : > { %2001 = vmatpush3.bf16.msra.mxu1 %v2129_v27  ;;  %1982 = vmatprep.subr.bf16.mxu0 %v2130_v32 }
  0x5d   : > { %2002 = vmatprep.subr.bf16.mxu1 %v2131_v33 }
  0x5f   : > { %1983 = vmatpush3.bf16.msra.mxu0 %v2130_v32 }
  0x60   : > { %2003 = vmatpush3.bf16.msra.mxu1 %v2131_v33  ;;  %1984 = vmatprep.subr.bf16.mxu0 %v2132_v40 }
  0x61   : > { %2004 = vmatprep.subr.bf16.mxu1 %v2133_v41 }
  0x63   : > { %1985 = vmatpush3.bf16.msra.mxu0 %v2132_v40 }
  0x64   : > { %2005 = vmatpush3.bf16.msra.mxu1 %v2133_v41  ;;  %2010 = vmatprep.subr.bf16.mxu0 %v2135_v47 }
  0x65   : > { %2030 = vmatprep.subr.bf16.mxu1 %v2138_v48 }
  0x66   : > { %1987 = vmatmul.mubr.bf16.vlgmr.msra.gmra.mrb[8].mxu0 %v2358_v9  ;;  %v2159_v9 = vld [vmem:[%s2516_s1 + $0x218] sm:$0xff]  }
  0x67   : > { %2011 = vmatpush3.bf16.msra.mxu0 %v2135_v47  ;;  %2007 = vmatmul.mubr.bf16.vlgmr.msra.gmra.mrb[8].mxu1 %v1701_v51 }
  0x68   : > { %2031 = vmatpush3.bf16.msra.mxu1 %v2138_v48  ;;  %2012 = vmatprep.subr.bf16.mxu0 %v2139_v54 }
  0x69   : > { %2032 = vmatprep.subr.bf16.mxu1 %v2140_v55  ;;  %2026 = vmatprep.mubr.bf16.mxu0 %v1029_v56 }
  0x6a   : > { %2046 = vmatprep.mubr.bf16.mxu1 %v1169_v57 }
  0x6b   : > { %2013 = vmatpush3.bf16.msra.mxu0 %v2139_v54 }
  0x6c   : > { %2033 = vmatpush3.bf16.msra.mxu1 %v2140_v55  ;;  %2014 = vmatprep.subr.bf16.mxu0 %v2141_v58 }
  0x6d   : > { %2034 = vmatprep.subr.bf16.mxu1 %v2142_v59 }
  0x6f   : > { %2015 = vmatpush3.bf16.msra.mxu0 %v2141_v58 }
  0x70   : > { %2035 = vmatpush3.bf16.msra.mxu1 %v2142_v59  ;;  %2016 = vmatprep.subr.bf16.mxu0 %v2143_v60 }
  0x71   : > { %2036 = vmatprep.subr.bf16.mxu1 %v2144_v61 }
  0x73   : > { %2017 = vmatpush3.bf16.msra.mxu0 %v2143_v60 }
  0x74   : > { %2037 = vmatpush3.bf16.msra.mxu1 %v2144_v61  ;;  %2018 = vmatprep.subr.bf16.mxu0 %v2145_v62 }
  0x75   : > { %2038 = vmatprep.subr.bf16.mxu1 %v2146_v63 }
  0x77   : > { %2019 = vmatpush3.bf16.msra.mxu0 %v2145_v62 }
  0x78   : > { %2039 = vmatpush3.bf16.msra.mxu1 %v2146_v63  ;;  %2020 = vmatprep.subr.bf16.mxu0 %v2147_v0 }
  0x79   : > { %2040 = vmatprep.subr.bf16.mxu1 %v2148_v1 }
  0x7b   : > { %2021 = vmatpush3.bf16.msra.mxu0 %v2147_v0 }
  0x7c   : > { %2041 = vmatpush3.bf16.msra.mxu1 %v2148_v1  ;;  %2022 = vmatprep.subr.bf16.mxu0 %v2149_v2 }
  0x7d   : > { %2042 = vmatprep.subr.bf16.mxu1 %v2150_v3 }
  0x7f   : > { %2023 = vmatpush3.bf16.msra.mxu0 %v2149_v2 }
  0x80   : > { %2043 = vmatpush3.bf16.msra.mxu1 %v2150_v3  ;;  %2024 = vmatprep.subr.bf16.mxu0 %v2151_v4 }
  0x81   : > { %2044 = vmatprep.subr.bf16.mxu1 %v2152_v5 }
  0x83   : > { %2025 = vmatpush3.bf16.msra.mxu0 %v2151_v4  ;;  %v1786_v4 = vld [vmem:[%s2517_s2] ss:$0 sm:$0xff] }
  0x84   : > { %2045 = vmatpush3.bf16.msra.mxu1 %v2152_v5  ;;  %2050 = vmatprep.subr.bf16.mxu0 %v2156_v6 }
  0x86   : > { %2027 = vmatmul.mubr.bf16.vlgmr.msra.gmra.mrb[12].mxu0 %v1028_v50 }
  0x87   : > { %2051 = vmatpush3.bf16.msra.mxu0 %v2156_v6  ;;  %2047 = vmatmul.mubr.bf16.vlgmr.msra.gmra.mrb[12].mxu1 %v1168_v53 }
  0x88   : > { %2052 = vmatprep.subr.bf16.mxu0 %v2157_v7  ;;  %2066 = vmatprep.mubr.bf16.mxu0 %v2412_v34 }
  0x8b   : > { %2053 = vmatpush3.bf16.msra.mxu0 %v2157_v7 }
  0x8c   : > { %2054 = vmatprep.subr.bf16.mxu0 %v2158_v8 }
  0x8f   : > { %2055 = vmatpush3.bf16.msra.mxu0 %v2158_v8 }
  0x90   : > { %2056 = vmatprep.subr.bf16.mxu0 %v2159_v9 }
  0x93   : > { %2057 = vmatpush3.bf16.msra.mxu0 %v2159_v9 }
  0x94   : > { %2058 = vmatprep.subr.bf16.mxu0 %v2160_v10 }
  0x97   : > { %2059 = vmatpush3.bf16.msra.mxu0 %v2160_v10 }
  0x98   : > { %2060 = vmatprep.subr.bf16.mxu0 %v2161_v11 }
  0x9b   : > { %2061 = vmatpush3.bf16.msra.mxu0 %v2161_v11 }
  0x9c   : > { %2062 = vmatprep.subr.bf16.mxu0 %v2162_v12 }
  0x9f   : > { %2063 = vmatpush3.bf16.msra.mxu0 %v2162_v12 }
  0xa0   : > { %2064 = vmatprep.subr.bf16.mxu0 %v2163_v13 }
  0xa3   : > { %2065 = vmatpush3.bf16.msra.mxu0 %v2163_v13 }
  0xa6   : > { %2067 = vmatmul.mubr.bf16.vlgmr.msra.gmra.mrb[16].mxu0 %v1293_v29 }
  0xf9   : > { %v1908_v14 = vpop.f32.mrb[0].mxu0 }
  0xfa   : > { %v1928_v15 = vpop.f32.mrb[0].mxu1  ;;  %v358_v16 = vpop.f32.mrb[1].mxu0 }
  0xfb   : > { %v468_v17 = vadd.f32 %v1928_v15, %v1908_v14  ;;  %v459_v18 = vpop.f32.mrb[1].mxu1  ;;  %v1909_v19 = vpop.f32.mrb[2].mxu0 }
  0xfc   : > { %v460_v20 = vadd.f32 %v459_v18, %v358_v16  ;;  %v1929_v21 = vpop.f32.mrb[2].mxu1  ;;  %v361_v22 = vpop.f32.mrb[3].mxu0 }
  0xfd   : > { %v462_v23 = vpop.f32.mrb[3].mxu1 }
  0xfe   : > { %v463_v25 = vadd.f32 %v462_v23, %v361_v22  ;;  %v2185_v23 = vmov 1983009808  }
 0x119   : > { %v1948_v26 = vpop.f32.mrb[4].mxu0 }
 0x11a   : > { %v598_v27 = vadd.f32 %v1948_v26, %v468_v17  ;;  %v582_v28 = vpop.f32.mrb[5].mxu0  ;;  %v1968_v30 = vpop.f32.mrb[4].mxu1  ;;  %v1445_v26 = vlaneseq }
 0x11b   : > { %v596_v31 = vadd.f32 %v582_v28, %v460_v20  ;;  %v1949_v32 = vpop.f32.mrb[6].mxu0  ;;  %v718_v33 = vpop.f32.mrb[5].mxu1 }
 0x11c   : > { %v734_v24 = vadd.f32 %v1968_v30, %v598_v27  ;;  %v585_v29 = vpop.f32.mrb[7].mxu0  ;;  %v1969_v34 = vpop.f32.mrb[6].mxu1  ;;  %v1446_v28 = vshrl.u32 %v1445_v26, 7 }
 0x11d   : > { %v597_v35 = vadd.f32 %v585_v29, %v463_v25  ;;  %v732_v36 = vadd.f32 %v718_v33, %v596_v31  ;;  %v721_v37 = vpop.f32.mrb[7].mxu1  ;;  %v1443_v25 = vunpack.c.l.s4 %v2185_v23  ;;  %v1790_v31 = vld [vmem:[%s206_s27] ss:$0 sm:$0xff] }
 0x11f   : > { %v733_v38 = vadd.f32 %v721_v37, %v597_v35  ;;  %v1444_v27 = vunpack.c.0.s8 %v1443_v25 }
 0x121   : > { %v1447_v35 = vsub.s32 %v1444_v27, %v1446_v28 }
 0x139   : > { %v1988_v39 = vpop.f32.mrb[8].mxu0 }
 0x13a   : > { %v874_v40 = vadd.f32 %v1988_v39, %v734_v24  ;;  %v858_v41 = vpop.f32.mrb[9].mxu0  ;;  %v2008_v42 = vpop.f32.mrb[8].mxu1 }
 0x13b   : > { %v872_v43 = vadd.f32 %v858_v41, %v732_v36  ;;  %v1989_v44 = vpop.f32.mrb[10].mxu0  ;;  %v978_v45 = vpop.f32.mrb[9].mxu1 }
 0x13c   : > { %v994_v46 = vadd.f32 %v2008_v42, %v874_v40  ;;  %v861_v47 = vpop.f32.mrb[11].mxu0  ;;  %v2009_v48 = vpop.f32.mrb[10].mxu1 }
 0x13d   : > { %v873_v49 = vadd.f32 %v861_v47, %v733_v38  ;;  %v992_v50 = vadd.f32 %v978_v45, %v872_v43  ;;  %v981_v51 = vpop.f32.mrb[11].mxu1 }
 0x13f   : > { %v993_v52 = vadd.f32 %v981_v51, %v873_v49 }
 0x159   : > { %v2028_v53 = vpop.f32.mrb[12].mxu0 }
 0x15a   : > { %v1130_v54 = vadd.f32 %v2028_v53, %v994_v46  ;;  %v1114_v55 = vpop.f32.mrb[13].mxu0  ;;  %v2048_v56 = vpop.f32.mrb[12].mxu1 }
 0x15b   : > { %v1128_v57 = vadd.f32 %v1114_v55, %v992_v50  ;;  %v2029_v58 = vpop.f32.mrb[14].mxu0  ;;  %v1254_v59 = vpop.f32.mrb[13].mxu1 }
 0x15c   : > { %v1270_v60 = vadd.f32 %v2048_v56, %v1130_v54  ;;  %v1117_v61 = vpop.f32.mrb[15].mxu0  ;;  %v2049_v62 = vpop.f32.mrb[14].mxu1 }
 0x15d   : > { %v1129_v63 = vadd.f32 %v1117_v61, %v993_v52  ;;  %v1268_v0 = vadd.f32 %v1254_v59, %v1128_v57  ;;  %v1257_v1 = vpop.f32.mrb[15].mxu1 }
 0x15f   : > { %v1269_v2 = vadd.f32 %v1257_v1, %v1129_v63 }
 0x179   : > { %v2068_v3 = vpop.f32.mrb[16].mxu0 }
 0x17a   : > { %v1395_v5 = vadd.f32 %v2068_v3, %v1270_v60  ;;  %v1379_v6 = vpop.f32.mrb[17].mxu0 }
 0x17b   : > { %v1393_v7 = vadd.f32 %v1379_v6, %v1268_v0  ;;  %v2069_v8 = vpop.f32.mrb[18].mxu0 }
 0x17c   : > { %v1405_v9 = vadd.f32 %v1786_v4, %v1395_v5  ;;  %v1382_v10 = vpop.f32.mrb[19].mxu0 }
 0x17d   : > { %v1403_v11 = vadd.f32 %v1786_v4, %v1393_v7  ;;  %v1394_v12 = vadd.f32 %v1382_v10, %v1269_v2 }
 0x17e   : > { %v1789_v13 = vmul.f32 -1.442695, %v1405_v9 }
 0x17f   : > { %v1787_v14 = vmul.f32 -1.442695, %v1403_v11  ;;  %v1404_v15 = vadd.f32 %v1786_v4, %v1394_v12 }
 0x180   : > { %2165 = vpow2.f32 %v1789_v13 }
 0x181   : > { %2167 = vpow2.f32 %v1787_v14  ;;  %v1788_v16 = vmul.f32 -1.442695, %v1404_v15 }
 0x183   : > { %2169 = vpow2.f32 %v1788_v16 }
 0x18a   : > { %v2166_v17 = vpop.eup %2165 }
 0x18b   : > { %v2168_v18 = vpop.eup %2167  ;;  %v1417_v19 = vadd.f32 1.0, %v2166_v17 }
 0x18c   : > { %v1415_v20 = vadd.f32 1.0, %v2168_v18 }
 0x18d   : > { %v2170_v21 = vpop.eup %2169  ;;  %2171 = vrcp.f32 %v1417_v19 }
 0x18e   : > { %2173 = vrcp.f32 %v1415_v20  ;;  %v1416_v22 = vadd.f32 1.0, %v2170_v21 }
 0x190   : > { %2175 = vrcp.f32 %v1416_v22 }
 0x197   : > { %v2172_v30 = vpop.eup %2171 }
 0x198   : > { %v2174_v32 = vpop.eup %2173  ;;  %v1426_v33 = vmul.f32 %v2172_v30, %v1405_v9 }
 0x199   : > { %v1424_v24 = vmul.f32 %v2174_v32, %v1403_v11 }
 0x19a   : > { %v2176_v29 = vpop.eup %2175  ;;  %v1436_v34 = vadd.f32 %v1790_v31, %v1426_v33 }
 0x19b   : > { %v1434_v36 = vadd.f32 %v1790_v31, %v1424_v24  ;;  %v1425_v37 = vmul.f32 %v2176_v29, %v1404_v15 }
 0x19c   : > { %v1484_v38 = vpack.c.bf16 %v1436_v34, %v1436_v34 }
 0x19d   : > { %v1437_v39 = vpack.c.bf16 %v1434_v36, %v1434_v36  ;;  %v1435_v40 = vadd.f32 %v1790_v31, %v1425_v37 }
 0x19e   : > { %v1492_v41 = vrot.slane %v1484_v38, %v1447_v35 }
 0x19f   : > { %1438 = vst [vmem:[%s211_s5] sm:$0x3] %v1437_v39  ;;  %v1439_v42 = vpack.c.bf16 %v1435_v40, %v1434_v36  ;;  %v1791_v43 = vpack.c.bf16 %v1435_v40, %v1435_v40 }
 0x1a0   : > { %v1493_v44 = vcombine.high %v1492_v41, %v1492_v41  ;;  %v1795_v47 = vrot.slane %v1492_v41, 9 }
 0x1a1   : > { %v1448_v45 = vrot.slane %v1439_v42, %v1447_v35  ;;  %v1455_v46 = vrot.slane %v1791_v43, %v1447_v35 }
 0x1a2   : > { %v1496_v48 = vrot.slane %v1493_v44, 7 }
 0x1a3   : > { %v1456_v49 = vcombine.high %v1448_v45, %v1448_v45  ;;  %v1480_v50 = vcombine.high %v1455_v46, %v1455_v46  ;;  %v1466_v53 = vrot.slane %v1455_v46, 7 }
 0x1a4   : > { %v1497_v51 = vsel %vm1463_vm12, %v1795_v47, %v1496_v48 }
 0x1a5   : > { %1796 = vst [vmem:[%s211_s5 + $0x6] sm:$0x3] %v1497_v51  ;;  %v1792_v52 = vrot.slane %v1456_v49, 9  ;;  %1794 = vst [vmem:[%s211_s5 + $0x4] sm:$0x3] %v1480_v50 }
 0x1a7   : > { %v1467_v54 = vsel %vm1463_vm12, %v1792_v52, %v1466_v53 }
 0x1a8   : > { %1793 = vst [vmem:[%s211_s5 + $0x2] sm:$0x3] %v1467_v54 }
 0x1a9 PF: > { %s14_s15 = sadd.s32 1, %s2183_s15  }
 0x1aa   : > { %p11_p4 = scmp.ge.s32.totalorder %s14_s15, 4  }
 0x1ac   :  { %13 = sbr.rel (!%p11_p4) target bundleno = 1 (0x1), region = 80 }

// kernel: sdxl_forward.39
= control target key start
LH: loop header
LB: loop body
LE: loop exit
PB: predicated region body
PF: predicated region fallthrough
CT: control target
= control target key end

     0   :  { %s1237_s24 = smov 0   ;;  %s1430_s0 = inlined_call_operand.vmem [shape: bf16[2,16,128], index: 0, kind: input, shape index: {}]   ;;  %s1431_s1 = inlined_call_operand.vmem [shape: bf16[128,128], index: 1, kind: input, shape index: {}]   ;;  %s1432_s2 = inlined_call_operand.vmem [shape: f32[1,128], index: 2, kind: input, shape index: {}]   ;;  %s1433_s3 = inlined_call_operand.vmem [shape: bf16[2,8,128], index: 3, kind: input, shape index: {}]   ;;  %s1434_s4 = inlined_call_operand.vmem [shape: bf16[128,256], index: 4, kind: input, shape index: {}]   ;;  %s1435_s5 = inlined_call_operand.vmem [shape: f32[1,256], index: 5, kind: input, shape index: {}]   ;;  %s1436_s6 = inlined_call_operand.vmem [shape: bf16[128,128], index: 6, kind: input, shape index: {}]   ;;  %s1437_s7 = inlined_call_operand.vmem [shape: bf16[2,16,128], index: 7, kind: output, shape index: {}]  }
   0x1 LB: > { %s943_s25 = sadd.s32 4294967295, %s1193_s24   ;;  %p947_p0 = scmp.ge.s32.totalorder %s1193_s24, 1  ;;  %s1193_s24 = sphi %s1237_s24, %s17_s24  }
   0x2   : > { %p246_p1 = scmp.lt.s32.totalorder %s1193_s24, 3 }
   0x4   : > { %p247_p2 = pnand %p947_p0, %p246_p1 }
   0x5   : > { %v1146_v0 = vld [vmem:[%s1431_s1] sm:$0xff] (!%p247_p2)   ;;  %v1195_v1 = vmov (!%p247_p2), 0.0   ;;  %v1147_v3 = vld [vmem:[%s1434_s4 + $0x10] ss:$8 sps:$4 sm:$0xff] (!%p247_p2)   ;;  %v1148_v4 = vld [vmem:[%s1431_s1 + $0x8] sm:$0xff] (!%p247_p2)   ;;  %vm1196_vm0 = vmmov (!%p247_p2), 0  }
   0x6   : > { %250 = sbr.rel (%p247_p2) target bundleno = 1230 (0x4ce), region = 48  ;;  %1063 = vmatprep.subr.bf16.mxu1 (!%p247_p2), %v1195_v1  ;;  %v1145_v2 = vld [vmem:[%s1434_s4] ss:$8 sps:$4 sm:$0xff] (!%p247_p2)   ;;  %1043 = vmatprep.subr.bf16.mxu0 (!%p247_p2), %v1195_v1  ;;  %v1150_v5 = vld [vmem:[%s1431_s1 + $0x10] sm:$0xff] (!%p247_p2)   ;;  %v1152_v7 = vld [vmem:[%s1431_s1 + $0x18] sm:$0xff] (!%p247_p2)   ;;  %p282_p3 = scmp.lt.s32.totalorder (!%p247_p2), %s943_s25, 1 }
   0x7   : > { %1044 = vmatpush3.bf16.msra.mxu0 (!%p247_p2), %v1146_v0  ;;  %1064 = vmatpush3.bf16.msra.mxu1 (!%p247_p2), %v1145_v2  ;;  %v1149_v6 = vld [vmem:[%s1434_s4 + $0x20] ss:$8 sps:$4 sm:$0xff] (!%p247_p2)   ;;  %v1151_v8 = vld [vmem:[%s1434_s4 + $0x30] ss:$8 sps:$4 sm:$0xff] (!%p247_p2)   ;;  %v1162_v18 = vld [vmem:[%s1434_s4 + $0x4] ss:$8 sps:$4 sm:$0xff] (!%p247_p2)  }
   0x8   : > { %1045 = vmatprep.subr.bf16.mxu0 (!%p247_p2), %v1195_v1  ;;  %1065 = vmatprep.subr.bf16.mxu1 (!%p247_p2), %v1195_v1  ;;  %v1154_v9 = vld [vmem:[%s1431_s1 + $0x20] sm:$0xff] (!%p247_p2)   ;;  %v1156_v11 = vld [vmem:[%s1431_s1 + $0x28] sm:$0xff] (!%p247_p2)   ;;  %v1155_v12 = vld [vmem:[%s1434_s4 + $0x50] ss:$8 sps:$4 sm:$0xff] (!%p247_p2)   ;;  %vm713_vm1 = vcmask (!%p247_p2), 1043456   ;;  %vm685_vm2 = vcmask (!%p247_p2), 64512  }
   0x9   : > { %1079 = vmatprep.mubr.msk.bf16.mxu1 (!%p247_p2), %vm1196_vm0, %v1195_v1  ;;  %1059 = vmatprep.mubr.msk.bf16.mxu0 (!%p247_p2), %vm1196_vm0, %v1195_v1  ;;  %v1153_v10 = vld [vmem:[%s1434_s4 + $0x40] ss:$8 sps:$4 sm:$0xff] (!%p247_p2)   ;;  %v1158_v13 = vld [vmem:[%s1431_s1 + $0x30] sm:$0xff] (!%p247_p2)   ;;  %v1160_v15 = vld [vmem:[%s1431_s1 + $0x38] sm:$0xff] (!%p247_p2)  }
   0xa   : > { %v1157_v14 = vld [vmem:[%s1434_s4 + $0x60] ss:$8 sps:$4 sm:$0xff] (!%p247_p2)   ;;  %v1159_v17 = vld [vmem:[%s1434_s4 + $0x70] ss:$8 sps:$4 sm:$0xff] (!%p247_p2)   ;;  %v1163_v20 = vld [vmem:[%s1434_s4 + $0x14] ss:$8 sps:$4 sm:$0xff] (!%p247_p2)  }
   0xb   : > { %1046 = vmatpush3.bf16.msra.mxu0 (!%p247_p2), %v1148_v4  ;;  %1066 = vmatpush3.bf16.msra.mxu1 (!%p247_p2), %v1147_v3  ;;  %v1164_v21 = vld [vmem:[%s1434_s4 + $0x24] ss:$8 sps:$4 sm:$0xff] (!%p247_p2)   ;;  %v1165_v22 = vld [vmem:[%s1434_s4 + $0x34] ss:$8 sps:$4 sm:$0xff] (!%p247_p2)   ;;  %v953_v27 = vld [vmem:[%s1432_s2] ss:$0 sm:$0xff] (!%p247_p2) }
   0xc   : > { %1047 = vmatprep.subr.bf16.mxu0 (!%p247_p2), %v1195_v1  ;;  %1067 = vmatprep.subr.bf16.mxu1 (!%p247_p2), %v1195_v1  ;;  %v1166_v23 = vld [vmem:[%s1434_s4 + $0x44] ss:$8 sps:$4 sm:$0xff] (!%p247_p2)   ;;  %v1167_v24 = vld [vmem:[%s1434_s4 + $0x54] ss:$8 sps:$4 sm:$0xff] (!%p247_p2)   ;;  %v963_v28 = vld [vmem:[%s1435_s5] ss:$0 sm:$0xff] (!%p247_p2) }
   0xd   : > { %s1439_s25 = smov (!%p282_p3, %s943_s25), 1  ;;  %v1168_v25 = vld [vmem:[%s1434_s4 + $0x64] ss:$8 sps:$4 sm:$0xff]   ;;  %v1169_v26 = vld [vmem:[%s1434_s4 + $0x74] ss:$8 sps:$4 sm:$0xff]  }
   0xe   : > { %s994_s27 = sshll.u32 %s1439_s25, 3  ;;  %s950_s16 = sshll.u32 %s1439_s25, 2  ;;  %v972_v42 = vld [vmem:[%s1435_s5 + $0x1] ss:$0 sm:$0xff] }
   0xf   : > { %1048 = vmatpush3.bf16.msra.mxu0 %v1150_v5  ;;  %1068 = vmatpush3.bf16.msra.mxu1 %v1149_v6  ;;  %s286_s9 = scalar_lea.vmem %s1430_s0, %s994_s27  ;;  %s290_s21 = scalar_lea.vmem %s1433_s3, %s950_s16 }
  0x10   : > { %1049 = vmatprep.subr.bf16.mxu0 %v1195_v1  ;;  %1069 = vmatprep.subr.bf16.mxu1 %v1195_v1  ;;  %v1321_v16 = vld [vmem:[%s286_s9] sm:$0xff]   ;;  %s295_s22 = scalar_lea.vmem %s1437_s7, %s994_s27 }
  0x11   : > { %v417_v19 = vld [vmem:[%s290_s21] sm:$0xf] }
  0x13   : > { %1050 = vmatpush3.bf16.msra.mxu0 %v1152_v7  ;;  %1070 = vmatpush3.bf16.msra.mxu1 %v1151_v8 }
  0x14   : > { %1051 = vmatprep.subr.bf16.mxu0 %v1195_v1  ;;  %1071 = vmatprep.subr.bf16.mxu1 %v1195_v1 }
  0x17   : > { %1052 = vmatpush3.bf16.msra.mxu0 %v1154_v9  ;;  %1072 = vmatpush3.bf16.msra.mxu1 %v1153_v10 }
  0x18   : > { %1053 = vmatprep.subr.bf16.mxu0 %v1195_v1  ;;  %1073 = vmatprep.subr.bf16.mxu1 %v1195_v1 }
  0x1b   : > { %1054 = vmatpush3.bf16.msra.mxu0 %v1156_v11  ;;  %1074 = vmatpush3.bf16.msra.mxu1 %v1155_v12  ;;  %v1170_v11 = vld [vmem:[%s1436_s6] sm:$0xff]  }
  0x1c   : > { %1055 = vmatprep.subr.bf16.mxu0 %v1195_v1  ;;  %1075 = vmatprep.subr.bf16.mxu1 %v1195_v1 }
  0x1f   : > { %1056 = vmatpush3.bf16.msra.mxu0 %v1158_v13  ;;  %1076 = vmatpush3.bf16.msra.mxu1 %v1157_v14  ;;  %v1171_v13 = vld [vmem:[%s1436_s6 + $0x8] sm:$0xff]   ;;  %v1172_v14 = vld [vmem:[%s1436_s6 + $0x10] sm:$0xff]  }
  0x20   : > { %1057 = vmatprep.subr.bf16.mxu0 %v1195_v1  ;;  %1077 = vmatprep.subr.bf16.mxu1 %v1195_v1 }
  0x23   : > { %1058 = vmatpush3.bf16.msra.mxu0 %v1160_v15  ;;  %1078 = vmatpush3.bf16.msra.mxu1 %v1159_v17  ;;  %v1173_v15 = vld [vmem:[%s1436_s6 + $0x18] sm:$0xff]   ;;  %v1174_v17 = vld [vmem:[%s1436_s6 + $0x20] sm:$0xff]  }
  0x24   : > { %1083 = vmatprep.subr.bf16.mxu0 %v1195_v1  ;;  %1109 = vmatprep.subr.bf16.mxu1 %v1195_v1 }
  0x26   : > { %1060 = vmatmul.mubr.bf16.vlgmr.msra.gmra.mrb[0].mxu0 %v1321_v16  ;;  %1080 = vmatmul.mubr.bf16.vlgmr.msra.gmra.mrb[0].mxu1 %v417_v19 }
  0x27   : > { %1084 = vmatpush3.bf16.msra.mxu0 %v1162_v18  ;;  %1099 = vmatprep.mubr.msk.bf16.mxu0 %vm1196_vm0, %v1195_v1  ;;  %v1175_v18 = vld [vmem:[%s1436_s6 + $0x28] sm:$0xff]  }
  0x28   : > { %1085 = vmatprep.subr.bf16.mxu0 %v1195_v1  ;;  %1111 = vmatprep.mubr.msk.bf16.mxu1 %vm1196_vm0, %v1195_v1 }
  0x2b   : > { %1086 = vmatpush3.bf16.msra.mxu0 %v1163_v20  ;;  %v1177_v20 = vld [vmem:[%s1436_s6 + $0x38] sm:$0xff]  }
  0x2c   : > { %1087 = vmatprep.subr.bf16.mxu0 %v1195_v1 }
  0x2f   : > { %1088 = vmatpush3.bf16.msra.mxu0 %v1164_v21 }
  0x30   : > { %1089 = vmatprep.subr.bf16.mxu0 %v1195_v1 }
  0x33   : > { %1090 = vmatpush3.bf16.msra.mxu0 %v1165_v22 }
  0x34   : > { %1091 = vmatprep.subr.bf16.mxu0 %v1195_v1 }
  0x37   : > { %1092 = vmatpush3.bf16.msra.mxu0 %v1166_v23 }
  0x38   : > { %1093 = vmatprep.subr.bf16.mxu0 %v1195_v1 }
  0x3b   : > { %1094 = vmatpush3.bf16.msra.mxu0 %v1167_v24 }
  0x3c   : > { %1095 = vmatprep.subr.bf16.mxu0 %v1195_v1 }
  0x3f   : > { %1096 = vmatpush3.bf16.msra.mxu0 %v1168_v25 }
  0x40   : > { %1097 = vmatprep.subr.bf16.mxu0 %v1195_v1 }
  0x43   : > { %1098 = vmatpush3.bf16.msra.mxu0 %v1169_v26  ;;  %v775_v26 = vunpack.c.l.bf16 %v1321_v16 }
  0x44   : > { %1103 = vmatprep.subr.bf16.mxu0 %v1195_v1 }
  0x46   : > { %1100 = vmatmul.mubr.bf16.vlgmr.msra.gmra.mrb[4].mxu0 %v417_v19  ;;  %v1176_v19 = vld [vmem:[%s1436_s6 + $0x30] sm:$0xff]  }
  0x47   : > { %1105 = vmatprep.mubr.msk.bf16.mxu0 %vm1196_vm0, %v1195_v1 }
  0xf9   : > { %v410_v29 = vpop.f32.mrb[0].mxu0  ;;  %v523_v30 = vpop.f32.mrb[0].mxu1 }
  0xfa   : > { %v411_v31 = vadd.f32 %v953_v27, %v410_v29  ;;  %v1061_v32 = vpop.f32.mrb[1].mxu0  ;;  %v524_v33 = vadd.f32 %v963_v28, %v523_v30  ;;  %v1081_v34 = vpop.f32.mrb[1].mxu1 }
  0xfb   : > { %v413_v35 = vpop.f32.mrb[2].mxu0  ;;  %v526_v36 = vpop.f32.mrb[2].mxu1 }
  0xfc   : > { %v414_v37 = vadd.f32 %v953_v27, %v413_v35  ;;  %v1062_v38 = vpop.f32.mrb[3].mxu0  ;;  %v641_v39 = vpack.c.bf16 %v524_v33, %v524_v33  ;;  %v1082_v40 = vpop.f32.mrb[3].mxu1  ;;  %v776_v27 = vunpack.c.h.bf16 %v1321_v16 }
  0xfe   : > { %v640_v41 = vpack.c.bf16 %v414_v37, %v411_v31  ;;  %1104 = vmatpush3.bf16.xpose.msra.mxu0 %v641_v39 }
 0x105   : > { %1106 = vmatmul.mubr.bf16.vlgmr.msra.gmra.mrb[8].mxu0 %v640_v41 }
 0x119   : > { %v634_v43 = vpop.f32.mrb[4].mxu0 }
 0x11a   : > { %v635_v44 = vadd.f32 %v972_v42, %v634_v43  ;;  %v1101_v45 = vpop.f32.mrb[5].mxu0 }
 0x11b   : > { %v637_v46 = vpop.f32.mrb[6].mxu0 }
 0x11c   : > { %v709_v47 = vpack.c.bf16 %v635_v44, %v635_v44  ;;  %v1102_v48 = vpop.f32.mrb[7].mxu0 }
 0x11e   : > { %v715_v49 = vsel %vm713_vm1, %v709_v47, 0 }
 0x11f   : > { %1110 = vmatpush3.bf16.msra.mxu1 %v715_v49 }
 0x120   : > { %1115 = vmatprep.subr.bf16.mxu1 %v1195_v1 }
 0x1d8   : > { %v676_v50 = vpop.f32.mrb[8].mxu0 }
 0x1d9   : > { %v683_v51 = vmul.f32 0.17677669, %v676_v50  ;;  %v1107_v52 = vpop.f32.mrb[9].mxu0 }
 0x1da   : > { %v679_v53 = vpop.f32.mrb[10].mxu0 }
 0x1db   : > { %v684_v54 = vmul.f32 0.17677669, %v679_v53  ;;  %v1108_v55 = vpop.f32.mrb[11].mxu0  ;;  %v686_v56 = vsel %vm685_vm2, %v683_v51, -inf }
 0x1dc   : > { %687 = vmax.xlane.f32.xlu0 %v686_v56 }
 0x1dd   : > { %v689_v57 = vsel %vm685_vm2, %v684_v54, -inf }
 0x1e0   : > { %690 = vmax.xlane.f32.xlu0 %v689_v57 }
 0x269   : > { %v688_v58 = vpop.xlane.xlu0 %687 }
 0x26a   : > { %v692_v59 = vsub.f32 %v683_v51, %v688_v58 }
 0x26c   : > { %v694_v60 = vmul.f32 1.442695, %v692_v59 }
 0x26d   : > { %v691_v61 = vpop.xlane.xlu0 %690 }
 0x26e   : > { %1179 = vpow2.f32 %v694_v60  ;;  %v693_v62 = vsub.f32 %v684_v54, %v691_v61 }
 0x270   : > { %v696_v63 = vmul.f32 1.442695, %v693_v62 }
 0x272   : > { %1181 = vpow2.f32 %v696_v63 }
 0x278   : > { %v1180_v0 = vpop.eup %1179 }
 0x279   : > { %v698_v2 = vsel %vm685_vm2, %v1180_v0, 0.0 }
 0x27a   : > { %699 = vadd.xlane.f32.xlu1 %v698_v2 }
 0x27c   : > { %v1182_v3 = vpop.eup %1181 }
 0x27d   : > { %v701_v4 = vsel %vm685_vm2, %v1182_v3, 0.0 }
 0x27e   : > { %702 = vadd.xlane.f32.xlu1 %v701_v4 }
 0x307   : > { %v700_v5 = vpop.xlane.xlu1 %699 }
 0x308   : > { %1183 = vrcp.f32 %v700_v5 }
 0x30b   : > { %v703_v6 = vpop.xlane.xlu1 %702 }
 0x30c   : > { %1185 = vrcp.f32 %v703_v6 }
 0x312   : > { %v1184_v7 = vpop.eup %1183 }
 0x313   : > { %v706_v9 = vmul.f32 %v1184_v7, %v1180_v0 }
 0x316   : > { %v1186_v8 = vpop.eup %1185 }
 0x317   : > { %v707_v10 = vmul.f32 %v1186_v8, %v1182_v3 }
 0x319   : > { %v708_v12 = vpack.c.bf16 %v707_v10, %v706_v9 }
 0x31b   : > { %1112 = vmatmul.mubr.msk.bf16.vlgmr.msra.gmra.mrb[4].mxu1 %vm685_vm2, %v708_v12 }
 0x31c   : > { %1116 = vmatpush3.bf16.msra.mxu1 %v1170_v11  ;;  %1131 = vmatprep.mubr.msk.bf16.mxu1 %vm1196_vm0, %v1195_v1 }
 0x31d   : > { %1117 = vmatprep.subr.bf16.mxu1 %v1195_v1 }
 0x320   : > { %1118 = vmatpush3.bf16.msra.mxu1 %v1171_v13 }
 0x321   : > { %1119 = vmatprep.subr.bf16.mxu1 %v1195_v1 }
 0x324   : > { %1120 = vmatpush3.bf16.msra.mxu1 %v1172_v14 }
 0x325   : > { %1121 = vmatprep.subr.bf16.mxu1 %v1195_v1 }
 0x328   : > { %1122 = vmatpush3.bf16.msra.mxu1 %v1173_v15 }
 0x329   : > { %1123 = vmatprep.subr.bf16.mxu1 %v1195_v1 }
 0x32c   : > { %1124 = vmatpush3.bf16.msra.mxu1 %v1174_v17 }
 0x32d   : > { %1125 = vmatprep.subr.bf16.mxu1 %v1195_v1 }
 0x330   : > { %1126 = vmatpush3.bf16.msra.mxu1 %v1175_v18 }
 0x331   : > { %1127 = vmatprep.subr.bf16.mxu1 %v1195_v1 }
 0x334   : > { %1128 = vmatpush3.bf16.msra.mxu1 %v1176_v19 }
 0x335   : > { %1129 = vmatprep.subr.bf16.mxu1 %v1195_v1 }
 0x338   : > { %1130 = vmatpush3.bf16.msra.mxu1 %v1177_v20 }
 0x3ee   : > { %v751_v21 = vpop.f32.mrb[4].mxu1 }
 0x3ef   : > { %v1113_v22 = vpop.f32.mrb[5].mxu1 }
 0x3f0   : > { %v754_v23 = vpop.f32.mrb[6].mxu1 }
 0x3f1   : > { %v758_v24 = vpack.c.bf16 %v754_v23, %v751_v21  ;;  %v1114_v25 = vpop.f32.mrb[7].mxu1 }
 0x3f3   : > { %1132 = vmatmul.mubr.bf16.vlgmr.msra.gmra.mrb[8].mxu1 %v758_v24 }
 0x4c6   : > { %v859_v28 = vpop.f32.mrb[8].mxu1 }
 0x4c7   : > { %v1133_v29 = vpop.f32.mrb[9].mxu1  ;;  %v860_v1 = vadd.f32 %v859_v28, %v775_v26 }
 0x4c8   : > { %v862_v30 = vpop.f32.mrb[10].mxu1 }
 0x4c9   : > { %v863_v31 = vadd.f32 %v862_v30, %v776_v27  ;;  %v1134_v32 = vpop.f32.mrb[11].mxu1 }
 0x4cb   : > { %v1001_v33 = vpack.c.bf16 %v863_v31, %v860_v1 }
 0x4cd   : > { %1002 = vst [vmem:[%s295_s22] sm:$0xff] %v1001_v33  }
 0x4ce PF: > { %s17_s24 = sadd.s32 1, %s1193_s24  }
 0x4cf   : > { %p14_p4 = scmp.ge.s32.totalorder %s17_s24, 4  }
 0x4d1   :  { %16 = sbr.rel (!%p14_p4) target bundleno = 1 (0x1), region = 81 }

// kernel: sdxl_forward.41
= control target key start
LH: loop header
LB: loop body
LE: loop exit
PB: predicated region body
PF: predicated region fallthrough
CT: control target
= control target key end

     0   :  { %s143_s0 = inlined_call_operand.vmem [shape: bf16[32,128], index: 0, kind: input, shape index: {}]   ;;  %s144_s1 = inlined_call_operand.vmem [shape: f32[32,128], index: 1, kind: input, shape index: {}]   ;;  %s145_s2 = inlined_call_operand.hbm [shape: f32[1,1], index: 2, kind: output, shape index: {}]  }
   0x1   :  { %v74_v0 = vld [vmem:[%s143_s0] sm:$0xff]   ;;  %v81_v1 = vld [vmem:[%s143_s0 + $0x8] sm:$0xff]   ;;  %v28_v8 = vld [vmem:[%s144_s1 + $0x10] sm:$0xff] }
   0x2   :  { %v26_v2 = vld [vmem:[%s144_s1] sm:$0xff]  ;;  %v75_v3 = vunpack.c.l.bf16 %v74_v0  ;;  %v76_v4 = vunpack.c.h.bf16 %v74_v0  ;;  %v79_v5 = vunpack.c.l.bf16 %v81_v1  ;;  %v80_v6 = vunpack.c.h.bf16 %v81_v1  ;;  %v27_v7 = vld [vmem:[%s144_s1 + $0x8] sm:$0xff]  ;;  %v29_v9 = vld [vmem:[%s144_s1 + $0x18] sm:$0xff] }
   0x3   :  { %7 = vsyncpa [#allocation4], 0  ;;  %s85_s22 = scalar_lea.hbm %s145_s2, 16 }
   0x4   :  { %v30_v10 = vsub.f32 %v75_v3, %v26_v2  ;;  %v31_v11 = vsub.f32 %v76_v4, %v27_v7  ;;  %v32_v12 = vsub.f32 %v79_v5, %v28_v8  ;;  %v33_v13 = vsub.f32 %v80_v6, %v29_v9  ;;  %p86_p0 = scmp.ne.s32.totalorder %s145_s2, %s85_s22  ;;  %p89_p1 = scmp.lt.u32.totalorder %s85_s22, %s145_s2 }
   0x6   :  { %v35_v14 = vmul.f32 %v30_v10, %v30_v10  ;;  %v36_v15 = vmul.f32 %v31_v11, %v31_v11  ;;  %v37_v16 = vmul.f32 %v32_v12, %v32_v12  ;;  %v38_v17 = vmul.f32 %v33_v13, %v33_v13  ;;  %p91_p2 = pnand %p89_p1, %p86_p0 }
   0x8   :  { %v39_v18 = vadd.f32 %v36_v15, %v35_v14 }
   0xa   :  { %v40_v19 = vadd.f32 %v39_v18, %v37_v16 }
   0xc   :  { %v41_v20 = vadd.f32 %v40_v19, %v38_v17 }
   0xe   :  { %42 = vadd.xlane.f32.xlu0 %v41_v20 }
  0x9b   :  { %v43_v21 = vpop.xlane.xlu0 %42 }
  0x9c   :  { %v44_v22 = vrot.slane %v43_v21, 4 }
  0x9e   :  { %v45_v23 = vadd.f32 %v44_v22, %v43_v21 }
  0xa0   :  { %v46_v24 = vrot.slane %v45_v23, 2 }
  0xa2   :  { %v47_v25 = vadd.f32 %v46_v24, %v45_v23 }
  0xa4   :  { %v48_v26 = vrot.slane %v47_v25, 1 }
  0xa6   :  { %v49_v27 = vadd.f32 %v48_v26, %v47_v25 }
  0xa8   :  { %82 = vpush %v49_v27 }
  0xd9   :  { %s83_s0 = spop %82 }
  0xda   :  { %59 = sst [smem:[#allocation3]] %s83_s0 }
  0xdb   :  { %94 = shalt.err (!%p91_p2)
}
  0xdc   :  { %s97_s27 = smov [#allocation3]  }
  0xdd   :  { %67 = dma.smem_to_hbm %s97_s27, 16, %s145_s2, [#allocation4]  }
  0xde   :  { %95 = dma.done.wait [#allocation4], 16  }
  0xdf   :  { %96 = vsyncadd [#allocation4], 4294967280 }
  0xe0   :  { %71 = sfence }
  0xe1   :  { %72 = vsyncpa [#allocation4], 1 }

</bundles_post_ra>
